<compile_context>
chip_gen: v7x
topology: tpu7x:2x2x1
jax: 0.10.0
libtpu: 0.0.40
codegen_flags: <defaults>
</compile_context>

<pallas_src>
import functools

import jax
import jax.numpy as jnp
from jax.experimental import pallas as pl
from jax.experimental.pallas import tpu as pltpu


def _round_up(x, m):
    return (x + m - 1) // m * m


# ---------------------------------------------------------------------------
# Fused kernel: MaxUnpool2d(2,2) + conv3x3/BN/ReLU + conv3x3/BN/ReLU
# ---------------------------------------------------------------------------
def _segnet_up2_kernel(x_ref, sel_ref, w1_ref, sc1_ref, sh1_ref,
                       w2_ref, sc2_ref, sh2_ref, o_ref, q0_ref, q1_ref):
    # x_ref  : (1, H, W, Cin)      bf16  pooled activations (NHWC)
    # sel_ref: (1, H, W, Cin)      int32 quadrant of the max in its 2x2 window
    # w1_ref : (9*Cin, Cin)        bf16  conv1 weights, taps flattened into K
    # sc1_ref: (1, Cin)            f32   conv1 BN scale  (gamma / sqrt(var+eps))
    # sh1_ref: (1, Cin)            f32   conv1 shift     (beta + (b-mean)*scale)
    # w2_ref : (9*Cin, Cout)       bf16  conv2 weights
    # sc2_ref: (1, Cout)           f32
    # sh2_ref: (1, Cout)           f32
    # o_ref  : (1, 2, H*W, 2*Cout) f32   o[0,py,h*W+w,px*Cout+c] = out(2h+py,2w+px,c)
    # q0/q1  : (2, 2, H+2, Wp, Cin) f32  zero-haloed quadrant planes of the
    #          unpooled image / of the conv1 activation (Wp = ceil8(W+2)).
    H, W, Cin = x_ref.shape[1], x_ref.shape[2], x_ref.shape[3]
    HW = H * W
    Wp = q0_ref.shape[3]

    # ---- (re)zero only the 1-px halo border; interiors are fully rewritten
    #      every grid step, so no cross-iteration state is needed.
    zrow = jnp.zeros((Wp, Cin), jnp.float32)
    zcol_l = jnp.zeros((H + 2, 1, Cin), jnp.float32)
    zcol_r = jnp.zeros((H + 2, Wp - (W + 1), Cin), jnp.float32)
    for q_ref in (q0_ref, q1_ref):
        for qy in range(2):
            for qx in range(2):
                q_ref[qy, qx, 0, :, :] = zrow
                q_ref[qy, qx, H + 1, :, :] = zrow
                q_ref[qy, qx, :, 0:1, :] = zcol_l
                q_ref[qy, qx, :, W + 1:, :] = zcol_r

    # ---- MaxUnpool2d(2, 2), kept in quadrant (space-to-batch) form ----------
    # quadrant (qy, qx): unpooled[2h+qy, 2w+qx, c] = x[h,w,c] iff sel == 2*qy+qx.
    x = x_ref[0].astype(jnp.float32)      # (H, W, Cin)
    sel = sel_ref[0]                      # (H, W, Cin)
    for qy in range(2):
        for qx in range(2):
            q0_ref[qy, qx, 1:H + 1, 1:W + 1, :] = jnp.where(sel == 2 * qy + qx, x, 0.0)

    # ---- 3x3 conv (stride 1, pad 1) on the quadrant decomposition -----------
    # Output pixel (2a+py, 2b+px) tap (ky,kx) reads quadrant (ry,rx) shifted by
    # (sy,sx).  All 9 shifted slices are concatenated along the channel/lane
    # axis and contracted in ONE (H*W, 9*Cin) x (9*Cin, Cout) MXU matmul.
    def conv3x3_quadrant(src_ref, w_ref, py, px):
        cin = src_ref.shape[-1]
        taps = []
        for ky in range(3):
            ty = py + ky - 1
            ry, sy = ty % 2, 1 + ty // 2
            for kx in range(3):
                tx = px + kx - 1
                rx, sx = tx % 2, 1 + tx // 2
                taps.append(src_ref[ry, rx, sy:sy + H, sx:sx + W, :].reshape(HW, cin))
        patch = jnp.concatenate(taps, axis=-1).astype(jnp.bfloat16)   # (HW, 9*cin)
        return jnp.dot(patch, w_ref[...], preferred_element_type=jnp.float32)

    # conv1 (+BN+ReLU), Cin -> Cin; each quadrant written back to scratch as
    # soon as it is computed (no four-plane live set, result never leaves VMEM).
    sc1, sh1 = sc1_ref[...], sh1_ref[...]
    for py in range(2):
        for px in range(2):
            acc = conv3x3_quadrant(q0_ref, w1_ref, py, px)        # (HW, Cin) f32
            y1 = jnp.maximum(acc * sc1 + sh1, 0.0)
            q1_ref[py, px, 1:H + 1, 1:W + 1, :] = y1.reshape(H, W, Cin)

    # conv2 (+BN+ReLU), Cin -> Cout; the two px quadrants of an output row are
    # fused on the lane axis so the store last dim is 2*Cout (denser store).
    sc2, sh2 = sc2_ref[...], sh2_ref[...]
    for py in range(2):
        row = []
        for px in range(2):
            acc = conv3x3_quadrant(q1_ref, w2_ref, py, px)        # (HW, Cout) f32
            row.append(jnp.maximum(acc * sc2 + sh2, 0.0))
        o_ref[0, py] = jnp.concatenate(row, axis=-1).astype(o_ref.dtype)


# ---------------------------------------------------------------------------
# Wrapper
# ---------------------------------------------------------------------------
def _prep_conv_bn(p, eps=1e-5):
    """Conv (OIHW) + eval-mode BN -> (9*Cin, Cout) bf16 weights, f32 scale/shift."""
    cout, cin = p["w"].shape[0], p["w"].shape[1]
    scale = p["gamma"] / jnp.sqrt(p["var"] + eps)                  # (Cout,)
    shift = p["beta"] + (p["b"] - p["mean"]) * scale               # (Cout,)
    # (Cout, Cin, ky, kx) -> (ky, kx, Cin, Cout) -> (9*Cin, Cout); the K index
    # is (ky*3+kx)*Cin + ci, matching the tap-concatenation order in the kernel.
    w = jnp.transpose(p["w"], (2, 3, 1, 0)).reshape(9 * cin, cout)
    return (w.astype(jnp.bfloat16),
            scale.reshape(1, -1).astype(jnp.float32),
            shift.reshape(1, -1).astype(jnp.float32))


@functools.partial(jax.jit, static_argnums=(2,))
def segnet_up2_forward(inputs_nchw, indices_nchw, output_shape, params):
    """segnetUp2.forward(inputs, indices, output_shape) with PyTorch NCHW I/O."""
    N, Cin, H, W = inputs_nchw.shape
    # TODO(synk): only output_size == (2H, 2W) (standard MaxUnpool2d(2,2)) is
    #             supported; odd / custom output sizes are not handled.
    assert (output_shape[1] == Cin and output_shape[2] == 2 * H
            and output_shape[3] == 2 * W)
    Hout, Wout = 2 * H, 2 * W
    HW = H * W
    Wp = _round_up(W + 2, 8)              # 8-sublane aligned scratch slab

    # NCHW -> NHWC; activations go over the wire as bf16 (kernel computes
    # bf16 x bf16 -> f32 anyway); indices reduced to a single int32 selector.
    x = jnp.transpose(inputs_nchw, (0, 2, 3, 1)).astype(jnp.bfloat16)
    idx = jnp.transpose(indices_nchw, (0, 2, 3, 1)).astype(jnp.int32)
    # MaxPool2d(2,2) indices always fall inside their own 2x2 window, so only
    # the two parity bits of the flat index (h*Wout + w) matter.
    sel = 2 * ((idx // Wout) & 1) + (idx & 1)

    w1, sc1, sh1 = _prep_conv_bn(params["conv1"])
    w2, sc2, sh2 = _prep_conv_bn(params["conv2"])
    Cout = w2.shape[-1]

    out_q = pl.pallas_call(
        _segnet_up2_kernel,
        out_shape=jax.ShapeDtypeStruct((N, 2, HW, 2 * Cout), jnp.float32),
        grid=(N,),
        in_specs=[
            pl.BlockSpec((1, H, W, Cin), lambda n: (n, 0, 0, 0)),
            pl.BlockSpec((1, H, W, Cin), lambda n: (n, 0, 0, 0)),
            pl.BlockSpec((9 * Cin, Cin), lambda n: (0, 0)),
            pl.BlockSpec((1, Cin), lambda n: (0, 0)),
            pl.BlockSpec((1, Cin), lambda n: (0, 0)),
            pl.BlockSpec((9 * Cin, Cout), lambda n: (0, 0)),
            pl.BlockSpec((1, Cout), lambda n: (0, 0)),
            pl.BlockSpec((1, Cout), lambda n: (0, 0)),
        ],
        out_specs=pl.BlockSpec((1, 2, HW, 2 * Cout), lambda n: (n, 0, 0, 0)),
        scratch_shapes=[
            pltpu.VMEM((2, 2, H + 2, Wp, Cin), jnp.float32),
            pltpu.VMEM((2, 2, H + 2, Wp, Cin), jnp.float32),
        ],
        compiler_params=pltpu.CompilerParams(
            dimension_semantics=("parallel",),     # batch -> both TCs on v7x
            vmem_limit_bytes=48 * 1024 * 1024,     # headroom below v7x's 64 MiB
        ),
    )(x, sel, w1, sc1, sh1, w2, sc2, sh2)

    # (n, py, h*W+w, px*Cout+c) -> NCHW (n, c, 2h+py, 2w+px).  This reshuffle
    # fuses with the NHWC->NCHW transpose the caller needs anyway.
    out = out_q.reshape(N, 2, H, W, 2, Cout)
    out = jnp.transpose(out, (0, 5, 2, 1, 3, 4)).reshape(N, Cout, Hout, Wout)
    return out


# ---------------------------------------------------------------------------
# Pure-JAX reference (unpool scatter + conv + eval BN + ReLU), for validation
# ---------------------------------------------------------------------------
def _ref_cbr(x, p, eps=1e-5):
    y = jax.lax.conv_general_dilated(
        x, p["w"], window_strides=(1, 1), padding="SAME",
        dimension_numbers=("NCHW", "OIHW", "NCHW"))
    y = y + p["b"][None, :, None, None]
    scale = (p["gamma"] / jnp.sqrt(p["var"] + eps))[None, :, None, None]
    y = scale * (y - p["mean"][None, :, None, None]) + p["beta"][None, :, None, None]
    return jnp.maximum(y, 0.0)


def segnet_up2_reference(inputs, indices, output_shape, params):
    N, C, _, _ = inputs.shape
    Hout, Wout = output_shape[2], output_shape[3]
    flat = jnp.zeros((N, C, Hout * Wout), jnp.float32)
    scatter = jax.vmap(jax.vmap(lambda f, i, v: f.at[i].set(v)))
    flat = scatter(flat, indices.reshape(N, C, -1), inputs.reshape(N, C, -1))
    up = flat.reshape(N, C, Hout, Wout)
    return _ref_cbr(_ref_cbr(up, params["conv1"]), params["conv2"])


# ---------------------------------------------------------------------------
# Parameter init (matches nn.Conv2d / nn.BatchNorm2d shapes, deterministic)
# ---------------------------------------------------------------------------
def init_cbr_params(key, cin, cout):
    kw, kb, kg, kbeta, km, kv = jax.random.split(key, 6)
    return dict(
        w=jax.random.normal(kw, (cout, cin, 3, 3), jnp.float32) * 0.1,
        b=jax.random.normal(kb, (cout,), jnp.float32) * 0.1,
        gamma=1.0 + 0.1 * jax.random.normal(kg, (cout,), jnp.float32),
        beta=0.1 * jax.random.normal(kbeta, (cout,), jnp.float32),
        mean=0.1 * jax.random.normal(km, (cout,), jnp.float32),
        var=0.5 + jnp.abs(jax.random.normal(kv, (cout,), jnp.float32)),
    )


def init_segnet_up2_params(key, in_size, out_size):
    k1, k2 = jax.random.split(key)
    return dict(
        conv1=init_cbr_params(k1, in_size, in_size),    # in_size -> in_size
        conv2=init_cbr_params(k2, in_size, out_size),   # in_size -> out_size
    )


if __name__ == "__main__":
    key = jax.random.PRNGKey(0)
    kx, kd1, kd2, kp = jax.random.split(key, 4)

    in_size, out_size = 8, 4
    N, H, W = 2, 8, 8                    # pooled spatial size
    Hout, Wout = 2 * H, 2 * W

    inputs = jax.random.normal(kx, (N, in_size, H, W), jnp.float32)      # NCHW
    # Indices exactly as MaxPool2d(2, 2, return_indices=True) would produce:
    # one winner inside every 2x2 window, flat index h*Wout + w of the unpooled plane.
    dy = jax.random.randint(kd1, (N, in_size, H, W), 0, 2)
    dx = jax.random.randint(kd2, (N, in_size, H, W), 0, 2)
    oh = jnp.arange(H).reshape(1, 1, H, 1)
    ow = jnp.arange(W).reshape(1, 1, 1, W)
    indices = ((2 * oh + dy) * Wout + (2 * ow + dx)).astype(jnp.int32)

    params = init_segnet_up2_params(kp, in_size, out_size)
    output_shape = (N, in_size, Hout, Wout)              # PyTorch-style unpooled shape

    out = segnet_up2_forward(inputs, indices, output_shape, params)
    jax.block_until_ready(out)

    assert out.shape == (N, out_size, Hout, Wout)
    assert bool(jnp.isfinite(out).all())

    # Validate against the pure-JAX reference (tolerance covers bf16 compute).
    ref = segnet_up2_reference(inputs, indices, output_shape, params)
    max_err = float(jnp.max(jnp.abs(out - ref)))
    assert max_err < 1e-1, f"mismatch vs reference: max abs err = {max_err}"
    print("KERNEL_OK")
</pallas_src>

<mosaic_0001>
module attributes {stable_mosaic.version = 11 : i64} {
  func.func @_segnet_up2_kernel(%arg0: i32, %arg1: memref<1x8x8x8xbf16, #tpu.memory_space<vmem>>, %arg2: memref<1x8x8x8xi32, #tpu.memory_space<vmem>>, %arg3: memref<72x8xbf16, #tpu.memory_space<vmem>>, %arg4: memref<1x8xf32, #tpu.memory_space<vmem>>, %arg5: memref<1x8xf32, #tpu.memory_space<vmem>>, %arg6: memref<72x4xbf16, #tpu.memory_space<vmem>>, %arg7: memref<1x4xf32, #tpu.memory_space<vmem>>, %arg8: memref<1x4xf32, #tpu.memory_space<vmem>>, %arg9: memref<1x2x64x8xf32, #tpu.memory_space<vmem>>, %arg10: memref<2x2x10x16x8xf32, #tpu.memory_space<vmem>>, %arg11: memref<2x2x10x16x8xf32, #tpu.memory_space<vmem>>) attributes {dimension_semantics = [#tpu.dimension_semantics<parallel>], iteration_bounds = array<i64: 2>, scalar_prefetch = 0 : i64, scratch_operands = 2 : i64, tpu.core_type = #tpu.core_type<tc>, window_params = [{transform_indices = @transform_0, window_bounds = array<i64: 1, 8, 8, 8>}, {transform_indices = @transform_1, window_bounds = array<i64: 1, 8, 8, 8>}, {pipeline_mode = #tpu.pipeline_mode<synchronous>, transform_indices = @transform_2, window_bounds = array<i64: 72, 8>}, {pipeline_mode = #tpu.pipeline_mode<synchronous>, transform_indices = @transform_3, window_bounds = array<i64: 1, 8>}, {pipeline_mode = #tpu.pipeline_mode<synchronous>, transform_indices = @transform_4, window_bounds = array<i64: 1, 8>}, {pipeline_mode = #tpu.pipeline_mode<synchronous>, transform_indices = @transform_5, window_bounds = array<i64: 72, 4>}, {pipeline_mode = #tpu.pipeline_mode<synchronous>, transform_indices = @transform_6, window_bounds = array<i64: 1, 4>}, {pipeline_mode = #tpu.pipeline_mode<synchronous>, transform_indices = @transform_7, window_bounds = array<i64: 1, 4>}, {transform_indices = @transform_8, window_bounds = array<i64: 1, 2, 64, 8>}]} {
    %cst = arith.constant 0.000000e+00 : f32
    %0 = vector.broadcast %cst : f32 to vector<16x8xf32>
    %cst_0 = arith.constant 0.000000e+00 : f32
    %1 = vector.broadcast %cst_0 : f32 to vector<10x1x8xf32>
    %cst_1 = arith.constant 0.000000e+00 : f32
    %2 = vector.broadcast %cst_1 : f32 to vector<10x7x8xf32>
    %c0 = arith.constant 0 : index
    %c0_2 = arith.constant 0 : index
    %c0_3 = arith.constant 0 : index
    %c0_4 = arith.constant 0 : index
    %c0_5 = arith.constant 0 : index
    %3 = vector.load %arg10[%c0, %c0_2, %c0_3, %c0_4, %c0_5] : memref<2x2x10x16x8xf32, #tpu.memory_space<vmem>>, vector<1x1x1x16x8xf32>
    %4 = vector.shape_cast %3 : vector<1x1x1x16x8xf32> to vector<16x8xf32>
    %5 = vector.shape_cast %0 : vector<16x8xf32> to vector<1x1x1x16x8xf32>
    tpu.vector_store %arg10[%c0, %c0_2, %c0_3, %c0_4, %c0_5], %5 {strides = array<i32>} : memref<2x2x10x16x8xf32, #tpu.memory_space<vmem>>, vector<1x1x1x16x8xf32>,
    %c0_6 = arith.constant 0 : index
    %c0_7 = arith.constant 0 : index
    %c9 = arith.constant 9 : index
    %c0_8 = arith.constant 0 : index
    %c0_9 = arith.constant 0 : index
    %6 = vector.load %arg10[%c0_6, %c0_7, %c9, %c0_8, %c0_9] : memref<2x2x10x16x8xf32, #tpu.memory_space<vmem>>, vector<1x1x1x16x8xf32>
    %7 = vector.shape_cast %6 : vector<1x1x1x16x8xf32> to vector<16x8xf32>
    %8 = vector.shape_cast %0 : vector<16x8xf32> to vector<1x1x1x16x8xf32>
    tpu.vector_store %arg10[%c0_6, %c0_7, %c9, %c0_8, %c0_9], %8 {strides = array<i32>} : memref<2x2x10x16x8xf32, #tpu.memory_space<vmem>>, vector<1x1x1x16x8xf32>,
    %c0_10 = arith.constant 0 : index
    %c0_11 = arith.constant 0 : index
    %c0_12 = arith.constant 0 : index
    %c0_13 = arith.constant 0 : index
    %c0_14 = arith.constant 0 : index
    %9 = vector.load %arg10[%c0_10, %c0_11, %c0_12, %c0_13, %c0_14] : memref<2x2x10x16x8xf32, #tpu.memory_space<vmem>>, vector<1x1x10x1x8xf32>
    %10 = vector.shape_cast %9 : vector<1x1x10x1x8xf32> to vector<10x1x8xf32>
    %11 = vector.shape_cast %1 : vector<10x1x8xf32> to vector<1x1x10x1x8xf32>
    tpu.vector_store %arg10[%c0_10, %c0_11, %c0_12, %c0_13, %c0_14], %11 {strides = array<i32>} : memref<2x2x10x16x8xf32, #tpu.memory_space<vmem>>, vector<1x1x10x1x8xf32>,
    %c0_15 = arith.constant 0 : index
    %c0_16 = arith.constant 0 : index
    %c0_17 = arith.constant 0 : index
    %c9_18 = arith.constant 9 : index
    %c0_19 = arith.constant 0 : index
    %12 = vector.load %arg10[%c0_15, %c0_16, %c0_17, %c9_18, %c0_19] : memref<2x2x10x16x8xf32, #tpu.memory_space<vmem>>, vector<1x1x10x7x8xf32>
    %13 = vector.shape_cast %12 : vector<1x1x10x7x8xf32> to vector<10x7x8xf32>
    %14 = vector.shape_cast %2 : vector<10x7x8xf32> to vector<1x1x10x7x8xf32>
    tpu.vector_store %arg10[%c0_15, %c0_16, %c0_17, %c9_18, %c0_19], %14 {strides = array<i32>} : memref<2x2x10x16x8xf32, #tpu.memory_space<vmem>>, vector<1x1x10x7x8xf32>,
    %c0_20 = arith.constant 0 : index
    %c1 = arith.constant 1 : index
    %c0_21 = arith.constant 0 : index
    %c0_22 = arith.constant 0 : index
    %c0_23 = arith.constant 0 : index
    %15 = vector.load %arg10[%c0_20, %c1, %c0_21, %c0_22, %c0_23] : memref<2x2x10x16x8xf32, #tpu.memory_space<vmem>>, vector<1x1x1x16x8xf32>
    %16 = vector.shape_cast %15 : vector<1x1x1x16x8xf32> to vector<16x8xf32>
    %17 = vector.shape_cast %0 : vector<16x8xf32> to vector<1x1x1x16x8xf32>
    tpu.vector_store %arg10[%c0_20, %c1, %c0_21, %c0_22, %c0_23], %17 {strides = array<i32>} : memref<2x2x10x16x8xf32, #tpu.memory_space<vmem>>, vector<1x1x1x16x8xf32>,
    %c0_24 = arith.constant 0 : index
    %c1_25 = arith.constant 1 : index
    %c9_26 = arith.constant 9 : index
    %c0_27 = arith.constant 0 : index
    %c0_28 = arith.constant 0 : index
    %18 = vector.load %arg10[%c0_24, %c1_25, %c9_26, %c0_27, %c0_28] : memref<2x2x10x16x8xf32, #tpu.memory_space<vmem>>, vector<1x1x1x16x8xf32>
    %19 = vector.shape_cast %18 : vector<1x1x1x16x8xf32> to vector<16x8xf32>
    %20 = vector.shape_cast %0 : vector<16x8xf32> to vector<1x1x1x16x8xf32>
    tpu.vector_store %arg10[%c0_24, %c1_25, %c9_26, %c0_27, %c0_28], %20 {strides = array<i32>} : memref<2x2x10x16x8xf32, #tpu.memory_space<vmem>>, vector<1x1x1x16x8xf32>,
    %c0_29 = arith.constant 0 : index
    %c1_30 = arith.constant 1 : index
    %c0_31 = arith.constant 0 : index
    %c0_32 = arith.constant 0 : index
    %c0_33 = arith.constant 0 : index
    %21 = vector.load %arg10[%c0_29, %c1_30, %c0_31, %c0_32, %c0_33] : memref<2x2x10x16x8xf32, #tpu.memory_space<vmem>>, vector<1x1x10x1x8xf32>
    %22 = vector.shape_cast %21 : vector<1x1x10x1x8xf32> to vector<10x1x8xf32>
    %23 = vector.shape_cast %1 : vector<10x1x8xf32> to vector<1x1x10x1x8xf32>
    tpu.vector_store %arg10[%c0_29, %c1_30, %c0_31, %c0_32, %c0_33], %23 {strides = array<i32>} : memref<2x2x10x16x8xf32, #tpu.memory_space<vmem>>, vector<1x1x10x1x8xf32>,
    %c0_34 = arith.constant 0 : index
    %c1_35 = arith.constant 1 : index
    %c0_36 = arith.constant 0 : index
    %c9_37 = arith.constant 9 : index
    %c0_38 = arith.constant 0 : index
    %24 = vector.load %arg10[%c0_34, %c1_35, %c0_36, %c9_37, %c0_38] : memref<2x2x10x16x8xf32, #tpu.memory_space<vmem>>, vector<1x1x10x7x8xf32>
    %25 = vector.shape_cast %24 : vector<1x1x10x7x8xf32> to vector<10x7x8xf32>
    %26 = vector.shape_cast %2 : vector<10x7x8xf32> to vector<1x1x10x7x8xf32>
    tpu.vector_store %arg10[%c0_34, %c1_35, %c0_36, %c9_37, %c0_38], %26 {strides = array<i32>} : memref<2x2x10x16x8xf32, #tpu.memory_space<vmem>>, vector<1x1x10x7x8xf32>,
    %c1_39 = arith.constant 1 : index
    %c0_40 = arith.constant 0 : index
    %c0_41 = arith.constant 0 : index
    %c0_42 = arith.constant 0 : index
    %c0_43 = arith.constant 0 : index
    %27 = vector.load %arg10[%c1_39, %c0_40, %c0_41, %c0_42, %c0_43] : memref<2x2x10x16x8xf32, #tpu.memory_space<vmem>>, vector<1x1x1x16x8xf32>
    %28 = vector.shape_cast %27 : vector<1x1x1x16x8xf32> to vector<16x8xf32>
    %29 = vector.shape_cast %0 : vector<16x8xf32> to vector<1x1x1x16x8xf32>
    tpu.vector_store %arg10[%c1_39, %c0_40, %c0_41, %c0_42, %c0_43], %29 {strides = array<i32>} : memref<2x2x10x16x8xf32, #tpu.memory_space<vmem>>, vector<1x1x1x16x8xf32>,
    %c1_44 = arith.constant 1 : index
    %c0_45 = arith.constant 0 : index
    %c9_46 = arith.constant 9 : index
    %c0_47 = arith.constant 0 : index
    %c0_48 = arith.constant 0 : index
    %30 = vector.load %arg10[%c1_44, %c0_45, %c9_46, %c0_47, %c0_48] : memref<2x2x10x16x8xf32, #tpu.memory_space<vmem>>, vector<1x1x1x16x8xf32>
    %31 = vector.shape_cast %30 : vector<1x1x1x16x8xf32> to vector<16x8xf32>
    %32 = vector.shape_cast %0 : vector<16x8xf32> to vector<1x1x1x16x8xf32>
    tpu.vector_store %arg10[%c1_44, %c0_45, %c9_46, %c0_47, %c0_48], %32 {strides = array<i32>} : memref<2x2x10x16x8xf32, #tpu.memory_space<vmem>>, vector<1x1x1x16x8xf32>,
    %c1_49 = arith.constant 1 : index
    %c0_50 = arith.constant 0 : index
    %c0_51 = arith.constant 0 : index
    %c0_52 = arith.constant 0 : index
    %c0_53 = arith.constant 0 : index
    %33 = vector.load %arg10[%c1_49, %c0_50, %c0_51, %c0_52, %c0_53] : memref<2x2x10x16x8xf32, #tpu.memory_space<vmem>>, vector<1x1x10x1x8xf32>
    %34 = vector.shape_cast %33 : vector<1x1x10x1x8xf32> to vector<10x1x8xf32>
    %35 = vector.shape_cast %1 : vector<10x1x8xf32> to vector<1x1x10x1x8xf32>
    tpu.vector_store %arg10[%c1_49, %c0_50, %c0_51, %c0_52, %c0_53], %35 {strides = array<i32>} : memref<2x2x10x16x8xf32, #tpu.memory_space<vmem>>, vector<1x1x10x1x8xf32>,
    %c1_54 = arith.constant 1 : index
    %c0_55 = arith.constant 0 : index
    %c0_56 = arith.constant 0 : index
    %c9_57 = arith.constant 9 : index
    %c0_58 = arith.constant 0 : index
    %36 = vector.load %arg10[%c1_54, %c0_55, %c0_56, %c9_57, %c0_58] : memref<2x2x10x16x8xf32, #tpu.memory_space<vmem>>, vector<1x1x10x7x8xf32>
    %37 = vector.shape_cast %36 : vector<1x1x10x7x8xf32> to vector<10x7x8xf32>
    %38 = vector.shape_cast %2 : vector<10x7x8xf32> to vector<1x1x10x7x8xf32>
    tpu.vector_store %arg10[%c1_54, %c0_55, %c0_56, %c9_57, %c0_58], %38 {strides = array<i32>} : memref<2x2x10x16x8xf32, #tpu.memory_space<vmem>>, vector<1x1x10x7x8xf32>,
    %c1_59 = arith.constant 1 : index
    %c1_60 = arith.constant 1 : index
    %c0_61 = arith.constant 0 : index
    %c0_62 = arith.constant 0 : index
    %c0_63 = arith.constant 0 : index
    %39 = vector.load %arg10[%c1_59, %c1_60, %c0_61, %c0_62, %c0_63] : memref<2x2x10x16x8xf32, #tpu.memory_space<vmem>>, vector<1x1x1x16x8xf32>
    %40 = vector.shape_cast %39 : vector<1x1x1x16x8xf32> to vector<16x8xf32>
    %41 = vector.shape_cast %0 : vector<16x8xf32> to vector<1x1x1x16x8xf32>
    tpu.vector_store %arg10[%c1_59, %c1_60, %c0_61, %c0_62, %c0_63], %41 {strides = array<i32>} : memref<2x2x10x16x8xf32, #tpu.memory_space<vmem>>, vector<1x1x1x16x8xf32>,
    %c1_64 = arith.constant 1 : index
    %c1_65 = arith.constant 1 : index
    %c9_66 = arith.constant 9 : index
    %c0_67 = arith.constant 0 : index
    %c0_68 = arith.constant 0 : index
    %42 = vector.load %arg10[%c1_64, %c1_65, %c9_66, %c0_67, %c0_68] : memref<2x2x10x16x8xf32, #tpu.memory_space<vmem>>, vector<1x1x1x16x8xf32>
    %43 = vector.shape_cast %42 : vector<1x1x1x16x8xf32> to vector<16x8xf32>
    %44 = vector.shape_cast %0 : vector<16x8xf32> to vector<1x1x1x16x8xf32>
    tpu.vector_store %arg10[%c1_64, %c1_65, %c9_66, %c0_67, %c0_68], %44 {strides = array<i32>} : memref<2x2x10x16x8xf32, #tpu.memory_space<vmem>>, vector<1x1x1x16x8xf32>,
    %c1_69 = arith.constant 1 : index
    %c1_70 = arith.constant 1 : index
    %c0_71 = arith.constant 0 : index
    %c0_72 = arith.constant 0 : index
    %c0_73 = arith.constant 0 : index
    %45 = vector.load %arg10[%c1_69, %c1_70, %c0_71, %c0_72, %c0_73] : memref<2x2x10x16x8xf32, #tpu.memory_space<vmem>>, vector<1x1x10x1x8xf32>
    %46 = vector.shape_cast %45 : vector<1x1x10x1x8xf32> to vector<10x1x8xf32>
    %47 = vector.shape_cast %1 : vector<10x1x8xf32> to vector<1x1x10x1x8xf32>
    tpu.vector_store %arg10[%c1_69, %c1_70, %c0_71, %c0_72, %c0_73], %47 {strides = array<i32>} : memref<2x2x10x16x8xf32, #tpu.memory_space<vmem>>, vector<1x1x10x1x8xf32>,
    %c1_74 = arith.constant 1 : index
    %c1_75 = arith.constant 1 : index
    %c0_76 = arith.constant 0 : index
    %c9_77 = arith.constant 9 : index
    %c0_78 = arith.constant 0 : index
    %48 = vector.load %arg10[%c1_74, %c1_75, %c0_76, %c9_77, %c0_78] : memref<2x2x10x16x8xf32, #tpu.memory_space<vmem>>, vector<1x1x10x7x8xf32>
    %49 = vector.shape_cast %48 : vector<1x1x10x7x8xf32> to vector<10x7x8xf32>
    %50 = vector.shape_cast %2 : vector<10x7x8xf32> to vector<1x1x10x7x8xf32>
    tpu.vector_store %arg10[%c1_74, %c1_75, %c0_76, %c9_77, %c0_78], %50 {strides = array<i32>} : memref<2x2x10x16x8xf32, #tpu.memory_space<vmem>>, vector<1x1x10x7x8xf32>,
    %c0_79 = arith.constant 0 : index
    %c0_80 = arith.constant 0 : index
    %c0_81 = arith.constant 0 : index
    %c0_82 = arith.constant 0 : index
    %c0_83 = arith.constant 0 : index
    %51 = vector.load %arg11[%c0_79, %c0_80, %c0_81, %c0_82, %c0_83] : memref<2x2x10x16x8xf32, #tpu.memory_space<vmem>>, vector<1x1x1x16x8xf32>
    %52 = vector.shape_cast %51 : vector<1x1x1x16x8xf32> to vector<16x8xf32>
    %53 = vector.shape_cast %0 : vector<16x8xf32> to vector<1x1x1x16x8xf32>
    tpu.vector_store %arg11[%c0_79, %c0_80, %c0_81, %c0_82, %c0_83], %53 {strides = array<i32>} : memref<2x2x10x16x8xf32, #tpu.memory_space<vmem>>, vector<1x1x1x16x8xf32>,
    %c0_84 = arith.constant 0 : index
    %c0_85 = arith.constant 0 : index
    %c9_86 = arith.constant 9 : index
    %c0_87 = arith.constant 0 : index
    %c0_88 = arith.constant 0 : index
    %54 = vector.load %arg11[%c0_84, %c0_85, %c9_86, %c0_87, %c0_88] : memref<2x2x10x16x8xf32, #tpu.memory_space<vmem>>, vector<1x1x1x16x8xf32>
    %55 = vector.shape_cast %54 : vector<1x1x1x16x8xf32> to vector<16x8xf32>
    %56 = vector.shape_cast %0 : vector<16x8xf32> to vector<1x1x1x16x8xf32>
    tpu.vector_store %arg11[%c0_84, %c0_85, %c9_86, %c0_87, %c0_88], %56 {strides = array<i32>} : memref<2x2x10x16x8xf32, #tpu.memory_space<vmem>>, vector<1x1x1x16x8xf32>,
    %c0_89 = arith.constant 0 : index
    %c0_90 = arith.constant 0 : index
    %c0_91 = arith.constant 0 : index
    %c0_92 = arith.constant 0 : index
    %c0_93 = arith.constant 0 : index
    %57 = vector.load %arg11[%c0_89, %c0_90, %c0_91, %c0_92, %c0_93] : memref<2x2x10x16x8xf32, #tpu.memory_space<vmem>>, vector<1x1x10x1x8xf32>
    %58 = vector.shape_cast %57 : vector<1x1x10x1x8xf32> to vector<10x1x8xf32>
    %59 = vector.shape_cast %1 : vector<10x1x8xf32> to vector<1x1x10x1x8xf32>
    tpu.vector_store %arg11[%c0_89, %c0_90, %c0_91, %c0_92, %c0_93], %59 {strides = array<i32>} : memref<2x2x10x16x8xf32, #tpu.memory_space<vmem>>, vector<1x1x10x1x8xf32>,
    %c0_94 = arith.constant 0 : index
    %c0_95 = arith.constant 0 : index
    %c0_96 = arith.constant 0 : index
    %c9_97 = arith.constant 9 : index
    %c0_98 = arith.constant 0 : index
    %60 = vector.load %arg11[%c0_94, %c0_95, %c0_96, %c9_97, %c0_98] : memref<2x2x10x16x8xf32, #tpu.memory_space<vmem>>, vector<1x1x10x7x8xf32>
    %61 = vector.shape_cast %60 : vector<1x1x10x7x8xf32> to vector<10x7x8xf32>
    %62 = vector.shape_cast %2 : vector<10x7x8xf32> to vector<1x1x10x7x8xf32>
    tpu.vector_store %arg11[%c0_94, %c0_95, %c0_96, %c9_97, %c0_98], %62 {strides = array<i32>} : memref<2x2x10x16x8xf32, #tpu.memory_space<vmem>>, vector<1x1x10x7x8xf32>,
    %c0_99 = arith.constant 0 : index
    %c1_100 = arith.constant 1 : index
    %c0_101 = arith.constant 0 : index
    %c0_102 = arith.constant 0 : index
    %c0_103 = arith.constant 0 : index
    %63 = vector.load %arg11[%c0_99, %c1_100, %c0_101, %c0_102, %c0_103] : memref<2x2x10x16x8xf32, #tpu.memory_space<vmem>>, vector<1x1x1x16x8xf32>
    %64 = vector.shape_cast %63 : vector<1x1x1x16x8xf32> to vector<16x8xf32>
    %65 = vector.shape_cast %0 : vector<16x8xf32> to vector<1x1x1x16x8xf32>
    tpu.vector_store %arg11[%c0_99, %c1_100, %c0_101, %c0_102, %c0_103], %65 {strides = array<i32>} : memref<2x2x10x16x8xf32, #tpu.memory_space<vmem>>, vector<1x1x1x16x8xf32>,
    %c0_104 = arith.constant 0 : index
    %c1_105 = arith.constant 1 : index
    %c9_106 = arith.constant 9 : index
    %c0_107 = arith.constant 0 : index
    %c0_108 = arith.constant 0 : index
    %66 = vector.load %arg11[%c0_104, %c1_105, %c9_106, %c0_107, %c0_108] : memref<2x2x10x16x8xf32, #tpu.memory_space<vmem>>, vector<1x1x1x16x8xf32>
    %67 = vector.shape_cast %66 : vector<1x1x1x16x8xf32> to vector<16x8xf32>
    %68 = vector.shape_cast %0 : vector<16x8xf32> to vector<1x1x1x16x8xf32>
    tpu.vector_store %arg11[%c0_104, %c1_105, %c9_106, %c0_107, %c0_108], %68 {strides = array<i32>} : memref<2x2x10x16x8xf32, #tpu.memory_space<vmem>>, vector<1x1x1x16x8xf32>,
    %c0_109 = arith.constant 0 : index
    %c1_110 = arith.constant 1 : index
    %c0_111 = arith.constant 0 : index
    %c0_112 = arith.constant 0 : index
    %c0_113 = arith.constant 0 : index
    %69 = vector.load %arg11[%c0_109, %c1_110, %c0_111, %c0_112, %c0_113] : memref<2x2x10x16x8xf32, #tpu.memory_space<vmem>>, vector<1x1x10x1x8xf32>
    %70 = vector.shape_cast %69 : vector<1x1x10x1x8xf32> to vector<10x1x8xf32>
    %71 = vector.shape_cast %1 : vector<10x1x8xf32> to vector<1x1x10x1x8xf32>
    tpu.vector_store %arg11[%c0_109, %c1_110, %c0_111, %c0_112, %c0_113], %71 {strides = array<i32>} : memref<2x2x10x16x8xf32, #tpu.memory_space<vmem>>, vector<1x1x10x1x8xf32>,
    %c0_114 = arith.constant 0 : index
    %c1_115 = arith.constant 1 : index
    %c0_116 = arith.constant 0 : index
    %c9_117 = arith.constant 9 : index
    %c0_118 = arith.constant 0 : index
    %72 = vector.load %arg11[%c0_114, %c1_115, %c0_116, %c9_117, %c0_118] : memref<2x2x10x16x8xf32, #tpu.memory_space<vmem>>, vector<1x1x10x7x8xf32>
    %73 = vector.shape_cast %72 : vector<1x1x10x7x8xf32> to vector<10x7x8xf32>
    %74 = vector.shape_cast %2 : vector<10x7x8xf32> to vector<1x1x10x7x8xf32>
    tpu.vector_store %arg11[%c0_114, %c1_115, %c0_116, %c9_117, %c0_118], %74 {strides = array<i32>} : memref<2x2x10x16x8xf32, #tpu.memory_space<vmem>>, vector<1x1x10x7x8xf32>,
    %c1_119 = arith.constant 1 : index
    %c0_120 = arith.constant 0 : index
    %c0_121 = arith.constant 0 : index
    %c0_122 = arith.constant 0 : index
    %c0_123 = arith.constant 0 : index
    %75 = vector.load %arg11[%c1_119, %c0_120, %c0_121, %c0_122, %c0_123] : memref<2x2x10x16x8xf32, #tpu.memory_space<vmem>>, vector<1x1x1x16x8xf32>
    %76 = vector.shape_cast %75 : vector<1x1x1x16x8xf32> to vector<16x8xf32>
    %77 = vector.shape_cast %0 : vector<16x8xf32> to vector<1x1x1x16x8xf32>
    tpu.vector_store %arg11[%c1_119, %c0_120, %c0_121, %c0_122, %c0_123], %77 {strides = array<i32>} : memref<2x2x10x16x8xf32, #tpu.memory_space<vmem>>, vector<1x1x1x16x8xf32>,
    %c1_124 = arith.constant 1 : index
    %c0_125 = arith.constant 0 : index
    %c9_126 = arith.constant 9 : index
    %c0_127 = arith.constant 0 : index
    %c0_128 = arith.constant 0 : index
    %78 = vector.load %arg11[%c1_124, %c0_125, %c9_126, %c0_127, %c0_128] : memref<2x2x10x16x8xf32, #tpu.memory_space<vmem>>, vector<1x1x1x16x8xf32>
    %79 = vector.shape_cast %78 : vector<1x1x1x16x8xf32> to vector<16x8xf32>
    %80 = vector.shape_cast %0 : vector<16x8xf32> to vector<1x1x1x16x8xf32>
    tpu.vector_store %arg11[%c1_124, %c0_125, %c9_126, %c0_127, %c0_128], %80 {strides = array<i32>} : memref<2x2x10x16x8xf32, #tpu.memory_space<vmem>>, vector<1x1x1x16x8xf32>,
    %c1_129 = arith.constant 1 : index
    %c0_130 = arith.constant 0 : index
    %c0_131 = arith.constant 0 : index
    %c0_132 = arith.constant 0 : index
    %c0_133 = arith.constant 0 : index
    %81 = vector.load %arg11[%c1_129, %c0_130, %c0_131, %c0_132, %c0_133] : memref<2x2x10x16x8xf32, #tpu.memory_space<vmem>>, vector<1x1x10x1x8xf32>
    %82 = vector.shape_cast %81 : vector<1x1x10x1x8xf32> to vector<10x1x8xf32>
    %83 = vector.shape_cast %1 : vector<10x1x8xf32> to vector<1x1x10x1x8xf32>
    tpu.vector_store %arg11[%c1_129, %c0_130, %c0_131, %c0_132, %c0_133], %83 {strides = array<i32>} : memref<2x2x10x16x8xf32, #tpu.memory_space<vmem>>, vector<1x1x10x1x8xf32>,
    %c1_134 = arith.constant 1 : index
    %c0_135 = arith.constant 0 : index
    %c0_136 = arith.constant 0 : index
    %c9_137 = arith.constant 9 : index
    %c0_138 = arith.constant 0 : index
    %84 = vector.load %arg11[%c1_134, %c0_135, %c0_136, %c9_137, %c0_138] : memref<2x2x10x16x8xf32, #tpu.memory_space<vmem>>, vector<1x1x10x7x8xf32>
    %85 = vector.shape_cast %84 : vector<1x1x10x7x8xf32> to vector<10x7x8xf32>
    %86 = vector.shape_cast %2 : vector<10x7x8xf32> to vector<1x1x10x7x8xf32>
    tpu.vector_store %arg11[%c1_134, %c0_135, %c0_136, %c9_137, %c0_138], %86 {strides = array<i32>} : memref<2x2x10x16x8xf32, #tpu.memory_space<vmem>>, vector<1x1x10x7x8xf32>,
    %c1_139 = arith.constant 1 : index
    %c1_140 = arith.constant 1 : index
    %c0_141 = arith.constant 0 : index
    %c0_142 = arith.constant 0 : index
    %c0_143 = arith.constant 0 : index
    %87 = vector.load %arg11[%c1_139, %c1_140, %c0_141, %c0_142, %c0_143] : memref<2x2x10x16x8xf32, #tpu.memory_space<vmem>>, vector<1x1x1x16x8xf32>
    %88 = vector.shape_cast %87 : vector<1x1x1x16x8xf32> to vector<16x8xf32>
    %89 = vector.shape_cast %0 : vector<16x8xf32> to vector<1x1x1x16x8xf32>
    tpu.vector_store %arg11[%c1_139, %c1_140, %c0_141, %c0_142, %c0_143], %89 {strides = array<i32>} : memref<2x2x10x16x8xf32, #tpu.memory_space<vmem>>, vector<1x1x1x16x8xf32>,
    %c1_144 = arith.constant 1 : index
    %c1_145 = arith.constant 1 : index
    %c9_146 = arith.constant 9 : index
    %c0_147 = arith.constant 0 : index
    %c0_148 = arith.constant 0 : index
    %90 = vector.load %arg11[%c1_144, %c1_145, %c9_146, %c0_147, %c0_148] : memref<2x2x10x16x8xf32, #tpu.memory_space<vmem>>, vector<1x1x1x16x8xf32>
    %91 = vector.shape_cast %90 : vector<1x1x1x16x8xf32> to vector<16x8xf32>
    %92 = vector.shape_cast %0 : vector<16x8xf32> to vector<1x1x1x16x8xf32>
    tpu.vector_store %arg11[%c1_144, %c1_145, %c9_146, %c0_147, %c0_148], %92 {strides = array<i32>} : memref<2x2x10x16x8xf32, #tpu.memory_space<vmem>>, vector<1x1x1x16x8xf32>,
    %c1_149 = arith.constant 1 : index
    %c1_150 = arith.constant 1 : index
    %c0_151 = arith.constant 0 : index
    %c0_152 = arith.constant 0 : index
    %c0_153 = arith.constant 0 : index
    %93 = vector.load %arg11[%c1_149, %c1_150, %c0_151, %c0_152, %c0_153] : memref<2x2x10x16x8xf32, #tpu.memory_space<vmem>>, vector<1x1x10x1x8xf32>
    %94 = vector.shape_cast %93 : vector<1x1x10x1x8xf32> to vector<10x1x8xf32>
    %95 = vector.shape_cast %1 : vector<10x1x8xf32> to vector<1x1x10x1x8xf32>
    tpu.vector_store %arg11[%c1_149, %c1_150, %c0_151, %c0_152, %c0_153], %95 {strides = array<i32>} : memref<2x2x10x16x8xf32, #tpu.memory_space<vmem>>, vector<1x1x10x1x8xf32>,
    %c1_154 = arith.constant 1 : index
    %c1_155 = arith.constant 1 : index
    %c0_156 = arith.constant 0 : index
    %c9_157 = arith.constant 9 : index
    %c0_158 = arith.constant 0 : index
    %96 = vector.load %arg11[%c1_154, %c1_155, %c0_156, %c9_157, %c0_158] : memref<2x2x10x16x8xf32, #tpu.memory_space<vmem>>, vector<1x1x10x7x8xf32>
    %97 = vector.shape_cast %96 : vector<1x1x10x7x8xf32> to vector<10x7x8xf32>
    %98 = vector.shape_cast %2 : vector<10x7x8xf32> to vector<1x1x10x7x8xf32>
    tpu.vector_store %arg11[%c1_154, %c1_155, %c0_156, %c9_157, %c0_158], %98 {strides = array<i32>} : memref<2x2x10x16x8xf32, #tpu.memory_space<vmem>>, vector<1x1x10x7x8xf32>,
    %c0_159 = arith.constant 0 : index
    %c0_160 = arith.constant 0 : index
    %c0_161 = arith.constant 0 : index
    %c0_162 = arith.constant 0 : index
    %99 = vector.load %arg1[%c0_159, %c0_160, %c0_161, %c0_162] : memref<1x8x8x8xbf16, #tpu.memory_space<vmem>>, vector<1x8x8x8xbf16>
    %100 = vector.shape_cast %99 : vector<1x8x8x8xbf16> to vector<8x8x8xbf16>
    %101 = arith.extf %100 : vector<8x8x8xbf16> to vector<8x8x8xf32>
    %c0_163 = arith.constant 0 : index
    %c0_164 = arith.constant 0 : index
    %c0_165 = arith.constant 0 : index
    %c0_166 = arith.constant 0 : index
    %102 = vector.load %arg2[%c0_163, %c0_164, %c0_165, %c0_166] : memref<1x8x8x8xi32, #tpu.memory_space<vmem>>, vector<1x8x8x8xi32>
    %103 = vector.shape_cast %102 : vector<1x8x8x8xi32> to vector<8x8x8xi32>
    %c0_i32 = arith.constant 0 : i32
    %104 = vector.broadcast %c0_i32 : i32 to vector<8x8x8xi32>
    %105 = arith.cmpi eq, %103, %104 : vector<8x8x8xi32>
    %cst_167 = arith.constant 0.000000e+00 : f32
    %106 = vector.broadcast %cst_167 : f32 to vector<8x8x8xf32>
    %107 = arith.select %105, %101, %106 : vector<8x8x8xi1>, vector<8x8x8xf32>
    %c0_168 = arith.constant 0 : index
    %c0_169 = arith.constant 0 : index
    %c1_170 = arith.constant 1 : index
    %c1_171 = arith.constant 1 : index
    %c0_172 = arith.constant 0 : index
    %108 = vector.load %arg10[%c0_168, %c0_169, %c1_170, %c1_171, %c0_172] : memref<2x2x10x16x8xf32, #tpu.memory_space<vmem>>, vector<1x1x8x8x8xf32>
    %109 = vector.shape_cast %108 : vector<1x1x8x8x8xf32> to vector<8x8x8xf32>
    %110 = vector.shape_cast %107 : vector<8x8x8xf32> to vector<1x1x8x8x8xf32>
    tpu.vector_store %arg10[%c0_168, %c0_169, %c1_170, %c1_171, %c0_172], %110 {strides = array<i32>} : memref<2x2x10x16x8xf32, #tpu.memory_space<vmem>>, vector<1x1x8x8x8xf32>,
    %c1_i32 = arith.constant 1 : i32
    %111 = vector.broadcast %c1_i32 : i32 to vector<8x8x8xi32>
    %112 = arith.cmpi eq, %103, %111 : vector<8x8x8xi32>
    %cst_173 = arith.constant 0.000000e+00 : f32
    %113 = vector.broadcast %cst_173 : f32 to vector<8x8x8xf32>
    %114 = arith.select %112, %101, %113 : vector<8x8x8xi1>, vector<8x8x8xf32>
    %c0_174 = arith.constant 0 : index
    %c1_175 = arith.constant 1 : index
    %c1_176 = arith.constant 1 : index
    %c1_177 = arith.constant 1 : index
    %c0_178 = arith.constant 0 : index
    %115 = vector.load %arg10[%c0_174, %c1_175, %c1_176, %c1_177, %c0_178] : memref<2x2x10x16x8xf32, #tpu.memory_space<vmem>>, vector<1x1x8x8x8xf32>
    %116 = vector.shape_cast %115 : vector<1x1x8x8x8xf32> to vector<8x8x8xf32>
    %117 = vector.shape_cast %114 : vector<8x8x8xf32> to vector<1x1x8x8x8xf32>
    tpu.vector_store %arg10[%c0_174, %c1_175, %c1_176, %c1_177, %c0_178], %117 {strides = array<i32>} : memref<2x2x10x16x8xf32, #tpu.memory_space<vmem>>, vector<1x1x8x8x8xf32>,
    %c2_i32 = arith.constant 2 : i32
    %118 = vector.broadcast %c2_i32 : i32 to vector<8x8x8xi32>
    %119 = arith.cmpi eq, %103, %118 : vector<8x8x8xi32>
    %cst_179 = arith.constant 0.000000e+00 : f32
    %120 = vector.broadcast %cst_179 : f32 to vector<8x8x8xf32>
    %121 = arith.select %119, %101, %120 : vector<8x8x8xi1>, vector<8x8x8xf32>
    %c1_180 = arith.constant 1 : index
    %c0_181 = arith.constant 0 : index
    %c1_182 = arith.constant 1 : index
    %c1_183 = arith.constant 1 : index
    %c0_184 = arith.constant 0 : index
    %122 = vector.load %arg10[%c1_180, %c0_181, %c1_182, %c1_183, %c0_184] : memref<2x2x10x16x8xf32, #tpu.memory_space<vmem>>, vector<1x1x8x8x8xf32>
    %123 = vector.shape_cast %122 : vector<1x1x8x8x8xf32> to vector<8x8x8xf32>
    %124 = vector.shape_cast %121 : vector<8x8x8xf32> to vector<1x1x8x8x8xf32>
    tpu.vector_store %arg10[%c1_180, %c0_181, %c1_182, %c1_183, %c0_184], %124 {strides = array<i32>} : memref<2x2x10x16x8xf32, #tpu.memory_space<vmem>>, vector<1x1x8x8x8xf32>,
    %c3_i32 = arith.constant 3 : i32
    %125 = vector.broadcast %c3_i32 : i32 to vector<8x8x8xi32>
    %126 = arith.cmpi eq, %103, %125 : vector<8x8x8xi32>
    %cst_185 = arith.constant 0.000000e+00 : f32
    %127 = vector.broadcast %cst_185 : f32 to vector<8x8x8xf32>
    %128 = arith.select %126, %101, %127 : vector<8x8x8xi1>, vector<8x8x8xf32>
    %c1_186 = arith.constant 1 : index
    %c1_187 = arith.constant 1 : index
    %c1_188 = arith.constant 1 : index
    %c1_189 = arith.constant 1 : index
    %c0_190 = arith.constant 0 : index
    %129 = vector.load %arg10[%c1_186, %c1_187, %c1_188, %c1_189, %c0_190] : memref<2x2x10x16x8xf32, #tpu.memory_space<vmem>>, vector<1x1x8x8x8xf32>
    %130 = vector.shape_cast %129 : vector<1x1x8x8x8xf32> to vector<8x8x8xf32>
    %131 = vector.shape_cast %128 : vector<8x8x8xf32> to vector<1x1x8x8x8xf32>
    tpu.vector_store %arg10[%c1_186, %c1_187, %c1_188, %c1_189, %c0_190], %131 {strides = array<i32>} : memref<2x2x10x16x8xf32, #tpu.memory_space<vmem>>, vector<1x1x8x8x8xf32>,
    %c0_191 = arith.constant 0 : index
    %c0_192 = arith.constant 0 : index
    %132 = vector.load %arg4[%c0_191, %c0_192] : memref<1x8xf32, #tpu.memory_space<vmem>>, vector<1x8xf32>
    %c0_193 = arith.constant 0 : index
    %c0_194 = arith.constant 0 : index
    %133 = vector.load %arg5[%c0_193, %c0_194] : memref<1x8xf32, #tpu.memory_space<vmem>>, vector<1x8xf32>
    %c1_195 = arith.constant 1 : index
    %c1_196 = arith.constant 1 : index
    %c0_197 = arith.constant 0 : index
    %c0_198 = arith.constant 0 : index
    %c0_199 = arith.constant 0 : index
    %134 = vector.load %arg10[%c1_195, %c1_196, %c0_197, %c0_198, %c0_199] : memref<2x2x10x16x8xf32, #tpu.memory_space<vmem>>, vector<1x1x8x8x8xf32>
    %135 = vector.shape_cast %134 : vector<1x1x8x8x8xf32> to vector<8x8x8xf32>
    %136 = vector.shape_cast %135 : vector<8x8x8xf32> to vector<64x8xf32>
    %c1_200 = arith.constant 1 : index
    %c0_201 = arith.constant 0 : index
    %c0_202 = arith.constant 0 : index
    %c1_203 = arith.constant 1 : index
    %c0_204 = arith.constant 0 : index
    %137 = vector.load %arg10[%c1_200, %c0_201, %c0_202, %c1_203, %c0_204] : memref<2x2x10x16x8xf32, #tpu.memory_space<vmem>>, vector<1x1x8x8x8xf32>
    %138 = vector.shape_cast %137 : vector<1x1x8x8x8xf32> to vector<8x8x8xf32>
    %139 = vector.shape_cast %138 : vector<8x8x8xf32> to vector<64x8xf32>
    %c1_205 = arith.constant 1 : index
    %c1_206 = arith.constant 1 : index
    %c0_207 = arith.constant 0 : index
    %c1_208 = arith.constant 1 : index
    %c0_209 = arith.constant 0 : index
    %140 = vector.load %arg10[%c1_205, %c1_206, %c0_207, %c1_208, %c0_209] : memref<2x2x10x16x8xf32, #tpu.memory_space<vmem>>, vector<1x1x8x8x8xf32>
    %141 = vector.shape_cast %140 : vector<1x1x8x8x8xf32> to vector<8x8x8xf32>
    %142 = vector.shape_cast %141 : vector<8x8x8xf32> to vector<64x8xf32>
    %c0_210 = arith.constant 0 : index
    %c1_211 = arith.constant 1 : index
    %c1_212 = arith.constant 1 : index
    %c0_213 = arith.constant 0 : index
    %c0_214 = arith.constant 0 : index
    %143 = vector.load %arg10[%c0_210, %c1_211, %c1_212, %c0_213, %c0_214] : memref<2x2x10x16x8xf32, #tpu.memory_space<vmem>>, vector<1x1x8x8x8xf32>
    %144 = vector.shape_cast %143 : vector<1x1x8x8x8xf32> to vector<8x8x8xf32>
    %145 = vector.shape_cast %144 : vector<8x8x8xf32> to vector<64x8xf32>
    %c0_215 = arith.constant 0 : index
    %c0_216 = arith.constant 0 : index
    %c1_217 = arith.constant 1 : index
    %c1_218 = arith.constant 1 : index
    %c0_219 = arith.constant 0 : index
    %146 = vector.load %arg10[%c0_215, %c0_216, %c1_217, %c1_218, %c0_219] : memref<2x2x10x16x8xf32, #tpu.memory_space<vmem>>, vector<1x1x8x8x8xf32>
    %147 = vector.shape_cast %146 : vector<1x1x8x8x8xf32> to vector<8x8x8xf32>
    %148 = vector.shape_cast %147 : vector<8x8x8xf32> to vector<64x8xf32>
    %c0_220 = arith.constant 0 : index
    %c1_221 = arith.constant 1 : index
    %c1_222 = arith.constant 1 : index
    %c1_223 = arith.constant 1 : index
    %c0_224 = arith.constant 0 : index
    %149 = vector.load %arg10[%c0_220, %c1_221, %c1_222, %c1_223, %c0_224] : memref<2x2x10x16x8xf32, #tpu.memory_space<vmem>>, vector<1x1x8x8x8xf32>
    %150 = vector.shape_cast %149 : vector<1x1x8x8x8xf32> to vector<8x8x8xf32>
    %151 = vector.shape_cast %150 : vector<8x8x8xf32> to vector<64x8xf32>
    %c1_225 = arith.constant 1 : index
    %c1_226 = arith.constant 1 : index
    %c1_227 = arith.constant 1 : index
    %c0_228 = arith.constant 0 : index
    %c0_229 = arith.constant 0 : index
    %152 = vector.load %arg10[%c1_225, %c1_226, %c1_227, %c0_228, %c0_229] : memref<2x2x10x16x8xf32, #tpu.memory_space<vmem>>, vector<1x1x8x8x8xf32>
    %153 = vector.shape_cast %152 : vector<1x1x8x8x8xf32> to vector<8x8x8xf32>
    %154 = vector.shape_cast %153 : vector<8x8x8xf32> to vector<64x8xf32>
    %c1_230 = arith.constant 1 : index
    %c0_231 = arith.constant 0 : index
    %c1_232 = arith.constant 1 : index
    %c1_233 = arith.constant 1 : index
    %c0_234 = arith.constant 0 : index
    %155 = vector.load %arg10[%c1_230, %c0_231, %c1_232, %c1_233, %c0_234] : memref<2x2x10x16x8xf32, #tpu.memory_space<vmem>>, vector<1x1x8x8x8xf32>
    %156 = vector.shape_cast %155 : vector<1x1x8x8x8xf32> to vector<8x8x8xf32>
    %157 = vector.shape_cast %156 : vector<8x8x8xf32> to vector<64x8xf32>
    %c1_235 = arith.constant 1 : index
    %c1_236 = arith.constant 1 : index
    %c1_237 = arith.constant 1 : index
    %c1_238 = arith.constant 1 : index
    %c0_239 = arith.constant 0 : index
    %158 = vector.load %arg10[%c1_235, %c1_236, %c1_237, %c1_238, %c0_239] : memref<2x2x10x16x8xf32, #tpu.memory_space<vmem>>, vector<1x1x8x8x8xf32>
    %159 = vector.shape_cast %158 : vector<1x1x8x8x8xf32> to vector<8x8x8xf32>
    %160 = vector.shape_cast %159 : vector<8x8x8xf32> to vector<64x8xf32>
    %161 = tpu.concatenate %136, %139, %142, %145, %148, %151, %154, %157, %160 in 1 : vector<64x8xf32>, vector<64x8xf32>, vector<64x8xf32>, vector<64x8xf32>, vector<64x8xf32>, vector<64x8xf32>, vector<64x8xf32>, vector<64x8xf32>, vector<64x8xf32> -> vector<64x72xf32>
    %162 = arith.truncf %161 : vector<64x72xf32> to vector<64x72xbf16>
    %c0_240 = arith.constant 0 : index
    %c0_241 = arith.constant 0 : index
    %163 = vector.load %arg3[%c0_240, %c0_241] : memref<72x8xbf16, #tpu.memory_space<vmem>>, vector<72x8xbf16>
    %cst_242 = arith.constant dense<0.000000e+00> : vector<64x8xf32>
    %164 = tpu.matmul %162, %163, %cst_242 {dimension_numbers = #tpu.dot_dimension_numbers<[1], [0], [0], [1], [0, 0, 1, 1], [], []>} : vector<64x72xbf16>, vector<72x8xbf16>, vector<64x8xf32> -> vector<64x8xf32>
    %165 = vector.broadcast %132 : vector<1x8xf32> to vector<64x8xf32>
    %166 = arith.mulf %164, %165 : vector<64x8xf32>
    %167 = vector.broadcast %133 : vector<1x8xf32> to vector<64x8xf32>
    %168 = arith.addf %166, %167 : vector<64x8xf32>
    %cst_243 = arith.constant 0.000000e+00 : f32
    %169 = vector.broadcast %cst_243 : f32 to vector<64x8xf32>
    %170 = arith.maximumf %168, %169 : vector<64x8xf32>
    %171 = vector.shape_cast %170 : vector<64x8xf32> to vector<8x8x8xf32>
    %c0_244 = arith.constant 0 : index
    %c0_245 = arith.constant 0 : index
    %c1_246 = arith.constant 1 : index
    %c1_247 = arith.constant 1 : index
    %c0_248 = arith.constant 0 : index
    %172 = vector.load %arg11[%c0_244, %c0_245, %c1_246, %c1_247, %c0_248] : memref<2x2x10x16x8xf32, #tpu.memory_space<vmem>>, vector<1x1x8x8x8xf32>
    %173 = vector.shape_cast %172 : vector<1x1x8x8x8xf32> to vector<8x8x8xf32>
    %174 = vector.shape_cast %171 : vector<8x8x8xf32> to vector<1x1x8x8x8xf32>
    tpu.vector_store %arg11[%c0_244, %c0_245, %c1_246, %c1_247, %c0_248], %174 {strides = array<i32>} : memref<2x2x10x16x8xf32, #tpu.memory_space<vmem>>, vector<1x1x8x8x8xf32>,
    %c1_249 = arith.constant 1 : index
    %c0_250 = arith.constant 0 : index
    %c0_251 = arith.constant 0 : index
    %c1_252 = arith.constant 1 : index
    %c0_253 = arith.constant 0 : index
    %175 = vector.load %arg10[%c1_249, %c0_250, %c0_251, %c1_252, %c0_253] : memref<2x2x10x16x8xf32, #tpu.memory_space<vmem>>, vector<1x1x8x8x8xf32>
    %176 = vector.shape_cast %175 : vector<1x1x8x8x8xf32> to vector<8x8x8xf32>
    %177 = vector.shape_cast %176 : vector<8x8x8xf32> to vector<64x8xf32>
    %c1_254 = arith.constant 1 : index
    %c1_255 = arith.constant 1 : index
    %c0_256 = arith.constant 0 : index
    %c1_257 = arith.constant 1 : index
    %c0_258 = arith.constant 0 : index
    %178 = vector.load %arg10[%c1_254, %c1_255, %c0_256, %c1_257, %c0_258] : memref<2x2x10x16x8xf32, #tpu.memory_space<vmem>>, vector<1x1x8x8x8xf32>
    %179 = vector.shape_cast %178 : vector<1x1x8x8x8xf32> to vector<8x8x8xf32>
    %180 = vector.shape_cast %179 : vector<8x8x8xf32> to vector<64x8xf32>
    %c1_259 = arith.constant 1 : index
    %c0_260 = arith.constant 0 : index
    %c0_261 = arith.constant 0 : index
    %c2 = arith.constant 2 : index
    %c0_262 = arith.constant 0 : index
    %181 = vector.load %arg10[%c1_259, %c0_260, %c0_261, %c2, %c0_262] : memref<2x2x10x16x8xf32, #tpu.memory_space<vmem>>, vector<1x1x8x8x8xf32>
    %182 = vector.shape_cast %181 : vector<1x1x8x8x8xf32> to vector<8x8x8xf32>
    %183 = vector.shape_cast %182 : vector<8x8x8xf32> to vector<64x8xf32>
    %c0_263 = arith.constant 0 : index
    %c0_264 = arith.constant 0 : index
    %c1_265 = arith.constant 1 : index
    %c1_266 = arith.constant 1 : index
    %c0_267 = arith.constant 0 : index
    %184 = vector.load %arg10[%c0_263, %c0_264, %c1_265, %c1_266, %c0_267] : memref<2x2x10x16x8xf32, #tpu.memory_space<vmem>>, vector<1x1x8x8x8xf32>
    %185 = vector.shape_cast %184 : vector<1x1x8x8x8xf32> to vector<8x8x8xf32>
    %186 = vector.shape_cast %185 : vector<8x8x8xf32> to vector<64x8xf32>
    %c0_268 = arith.constant 0 : index
    %c1_269 = arith.constant 1 : index
    %c1_270 = arith.constant 1 : index
    %c1_271 = arith.constant 1 : index
    %c0_272 = arith.constant 0 : index
    %187 = vector.load %arg10[%c0_268, %c1_269, %c1_270, %c1_271, %c0_272] : memref<2x2x10x16x8xf32, #tpu.memory_space<vmem>>, vector<1x1x8x8x8xf32>
    %188 = vector.shape_cast %187 : vector<1x1x8x8x8xf32> to vector<8x8x8xf32>
    %189 = vector.shape_cast %188 : vector<8x8x8xf32> to vector<64x8xf32>
    %c0_273 = arith.constant 0 : index
    %c0_274 = arith.constant 0 : index
    %c1_275 = arith.constant 1 : index
    %c2_276 = arith.constant 2 : index
    %c0_277 = arith.constant 0 : index
    %190 = vector.load %arg10[%c0_273, %c0_274, %c1_275, %c2_276, %c0_277] : memref<2x2x10x16x8xf32, #tpu.memory_space<vmem>>, vector<1x1x8x8x8xf32>
    %191 = vector.shape_cast %190 : vector<1x1x8x8x8xf32> to vector<8x8x8xf32>
    %192 = vector.shape_cast %191 : vector<8x8x8xf32> to vector<64x8xf32>
    %c1_278 = arith.constant 1 : index
    %c0_279 = arith.constant 0 : index
    %c1_280 = arith.constant 1 : index
    %c1_281 = arith.constant 1 : index
    %c0_282 = arith.constant 0 : index
    %193 = vector.load %arg10[%c1_278, %c0_279, %c1_280, %c1_281, %c0_282] : memref<2x2x10x16x8xf32, #tpu.memory_space<vmem>>, vector<1x1x8x8x8xf32>
    %194 = vector.shape_cast %193 : vector<1x1x8x8x8xf32> to vector<8x8x8xf32>
    %195 = vector.shape_cast %194 : vector<8x8x8xf32> to vector<64x8xf32>
    %c1_283 = arith.constant 1 : index
    %c1_284 = arith.constant 1 : index
    %c1_285 = arith.constant 1 : index
    %c1_286 = arith.constant 1 : index
    %c0_287 = arith.constant 0 : index
    %196 = vector.load %arg10[%c1_283, %c1_284, %c1_285, %c1_286, %c0_287] : memref<2x2x10x16x8xf32, #tpu.memory_space<vmem>>, vector<1x1x8x8x8xf32>
    %197 = vector.shape_cast %196 : vector<1x1x8x8x8xf32> to vector<8x8x8xf32>
    %198 = vector.shape_cast %197 : vector<8x8x8xf32> to vector<64x8xf32>
    %c1_288 = arith.constant 1 : index
    %c0_289 = arith.constant 0 : index
    %c1_290 = arith.constant 1 : index
    %c2_291 = arith.constant 2 : index
    %c0_292 = arith.constant 0 : index
    %199 = vector.load %arg10[%c1_288, %c0_289, %c1_290, %c2_291, %c0_292] : memref<2x2x10x16x8xf32, #tpu.memory_space<vmem>>, vector<1x1x8x8x8xf32>
    %200 = vector.shape_cast %199 : vector<1x1x8x8x8xf32> to vector<8x8x8xf32>
    %201 = vector.shape_cast %200 : vector<8x8x8xf32> to vector<64x8xf32>
    %202 = tpu.concatenate %177, %180, %183, %186, %189, %192, %195, %198, %201 in 1 : vector<64x8xf32>, vector<64x8xf32>, vector<64x8xf32>, vector<64x8xf32>, vector<64x8xf32>, vector<64x8xf32>, vector<64x8xf32>, vector<64x8xf32>, vector<64x8xf32> -> vector<64x72xf32>
    %203 = arith.truncf %202 : vector<64x72xf32> to vector<64x72xbf16>
    %c0_293 = arith.constant 0 : index
    %c0_294 = arith.constant 0 : index
    %204 = vector.load %arg3[%c0_293, %c0_294] : memref<72x8xbf16, #tpu.memory_space<vmem>>, vector<72x8xbf16>
    %cst_295 = arith.constant dense<0.000000e+00> : vector<64x8xf32>
    %205 = tpu.matmul %203, %204, %cst_295 {dimension_numbers = #tpu.dot_dimension_numbers<[1], [0], [0], [1], [0, 0, 1, 1], [], []>} : vector<64x72xbf16>, vector<72x8xbf16>, vector<64x8xf32> -> vector<64x8xf32>
    %206 = vector.broadcast %132 : vector<1x8xf32> to vector<64x8xf32>
    %207 = arith.mulf %205, %206 : vector<64x8xf32>
    %208 = vector.broadcast %133 : vector<1x8xf32> to vector<64x8xf32>
    %209 = arith.addf %207, %208 : vector<64x8xf32>
    %cst_296 = arith.constant 0.000000e+00 : f32
    %210 = vector.broadcast %cst_296 : f32 to vector<64x8xf32>
    %211 = arith.maximumf %209, %210 : vector<64x8xf32>
    %212 = vector.shape_cast %211 : vector<64x8xf32> to vector<8x8x8xf32>
    %c0_297 = arith.constant 0 : index
    %c1_298 = arith.constant 1 : index
    %c1_299 = arith.constant 1 : index
    %c1_300 = arith.constant 1 : index
    %c0_301 = arith.constant 0 : index
    %213 = vector.load %arg11[%c0_297, %c1_298, %c1_299, %c1_300, %c0_301] : memref<2x2x10x16x8xf32, #tpu.memory_space<vmem>>, vector<1x1x8x8x8xf32>
    %214 = vector.shape_cast %213 : vector<1x1x8x8x8xf32> to vector<8x8x8xf32>
    %215 = vector.shape_cast %212 : vector<8x8x8xf32> to vector<1x1x8x8x8xf32>
    tpu.vector_store %arg11[%c0_297, %c1_298, %c1_299, %c1_300, %c0_301], %215 {strides = array<i32>} : memref<2x2x10x16x8xf32, #tpu.memory_space<vmem>>, vector<1x1x8x8x8xf32>,
    %c0_302 = arith.constant 0 : index
    %c1_303 = arith.constant 1 : index
    %c1_304 = arith.constant 1 : index
    %c0_305 = arith.constant 0 : index
    %c0_306 = arith.constant 0 : index
    %216 = vector.load %arg10[%c0_302, %c1_303, %c1_304, %c0_305, %c0_306] : memref<2x2x10x16x8xf32, #tpu.memory_space<vmem>>, vector<1x1x8x8x8xf32>
    %217 = vector.shape_cast %216 : vector<1x1x8x8x8xf32> to vector<8x8x8xf32>
    %218 = vector.shape_cast %217 : vector<8x8x8xf32> to vector<64x8xf32>
    %c0_307 = arith.constant 0 : index
    %c0_308 = arith.constant 0 : index
    %c1_309 = arith.constant 1 : index
    %c1_310 = arith.constant 1 : index
    %c0_311 = arith.constant 0 : index
    %219 = vector.load %arg10[%c0_307, %c0_308, %c1_309, %c1_310, %c0_311] : memref<2x2x10x16x8xf32, #tpu.memory_space<vmem>>, vector<1x1x8x8x8xf32>
    %220 = vector.shape_cast %219 : vector<1x1x8x8x8xf32> to vector<8x8x8xf32>
    %221 = vector.shape_cast %220 : vector<8x8x8xf32> to vector<64x8xf32>
    %c0_312 = arith.constant 0 : index
    %c1_313 = arith.constant 1 : index
    %c1_314 = arith.constant 1 : index
    %c1_315 = arith.constant 1 : index
    %c0_316 = arith.constant 0 : index
    %222 = vector.load %arg10[%c0_312, %c1_313, %c1_314, %c1_315, %c0_316] : memref<2x2x10x16x8xf32, #tpu.memory_space<vmem>>, vector<1x1x8x8x8xf32>
    %223 = vector.shape_cast %222 : vector<1x1x8x8x8xf32> to vector<8x8x8xf32>
    %224 = vector.shape_cast %223 : vector<8x8x8xf32> to vector<64x8xf32>
    %c1_317 = arith.constant 1 : index
    %c1_318 = arith.constant 1 : index
    %c1_319 = arith.constant 1 : index
    %c0_320 = arith.constant 0 : index
    %c0_321 = arith.constant 0 : index
    %225 = vector.load %arg10[%c1_317, %c1_318, %c1_319, %c0_320, %c0_321] : memref<2x2x10x16x8xf32, #tpu.memory_space<vmem>>, vector<1x1x8x8x8xf32>
    %226 = vector.shape_cast %225 : vector<1x1x8x8x8xf32> to vector<8x8x8xf32>
    %227 = vector.shape_cast %226 : vector<8x8x8xf32> to vector<64x8xf32>
    %c1_322 = arith.constant 1 : index
    %c0_323 = arith.constant 0 : index
    %c1_324 = arith.constant 1 : index
    %c1_325 = arith.constant 1 : index
    %c0_326 = arith.constant 0 : index
    %228 = vector.load %arg10[%c1_322, %c0_323, %c1_324, %c1_325, %c0_326] : memref<2x2x10x16x8xf32, #tpu.memory_space<vmem>>, vector<1x1x8x8x8xf32>
    %229 = vector.shape_cast %228 : vector<1x1x8x8x8xf32> to vector<8x8x8xf32>
    %230 = vector.shape_cast %229 : vector<8x8x8xf32> to vector<64x8xf32>
    %c1_327 = arith.constant 1 : index
    %c1_328 = arith.constant 1 : index
    %c1_329 = arith.constant 1 : index
    %c1_330 = arith.constant 1 : index
    %c0_331 = arith.constant 0 : index
    %231 = vector.load %arg10[%c1_327, %c1_328, %c1_329, %c1_330, %c0_331] : memref<2x2x10x16x8xf32, #tpu.memory_space<vmem>>, vector<1x1x8x8x8xf32>
    %232 = vector.shape_cast %231 : vector<1x1x8x8x8xf32> to vector<8x8x8xf32>
    %233 = vector.shape_cast %232 : vector<8x8x8xf32> to vector<64x8xf32>
    %c0_332 = arith.constant 0 : index
    %c1_333 = arith.constant 1 : index
    %c2_334 = arith.constant 2 : index
    %c0_335 = arith.constant 0 : index
    %c0_336 = arith.constant 0 : index
    %234 = vector.load %arg10[%c0_332, %c1_333, %c2_334, %c0_335, %c0_336] : memref<2x2x10x16x8xf32, #tpu.memory_space<vmem>>, vector<1x1x8x8x8xf32>
    %235 = vector.shape_cast %234 : vector<1x1x8x8x8xf32> to vector<8x8x8xf32>
    %236 = vector.shape_cast %235 : vector<8x8x8xf32> to vector<64x8xf32>
    %c0_337 = arith.constant 0 : index
    %c0_338 = arith.constant 0 : index
    %c2_339 = arith.constant 2 : index
    %c1_340 = arith.constant 1 : index
    %c0_341 = arith.constant 0 : index
    %237 = vector.load %arg10[%c0_337, %c0_338, %c2_339, %c1_340, %c0_341] : memref<2x2x10x16x8xf32, #tpu.memory_space<vmem>>, vector<1x1x8x8x8xf32>
    %238 = vector.shape_cast %237 : vector<1x1x8x8x8xf32> to vector<8x8x8xf32>
    %239 = vector.shape_cast %238 : vector<8x8x8xf32> to vector<64x8xf32>
    %c0_342 = arith.constant 0 : index
    %c1_343 = arith.constant 1 : index
    %c2_344 = arith.constant 2 : index
    %c1_345 = arith.constant 1 : index
    %c0_346 = arith.constant 0 : index
    %240 = vector.load %arg10[%c0_342, %c1_343, %c2_344, %c1_345, %c0_346] : memref<2x2x10x16x8xf32, #tpu.memory_space<vmem>>, vector<1x1x8x8x8xf32>
    %241 = vector.shape_cast %240 : vector<1x1x8x8x8xf32> to vector<8x8x8xf32>
    %242 = vector.shape_cast %241 : vector<8x8x8xf32> to vector<64x8xf32>
    %243 = tpu.concatenate %218, %221, %224, %227, %230, %233, %236, %239, %242 in 1 : vector<64x8xf32>, vector<64x8xf32>, vector<64x8xf32>, vector<64x8xf32>, vector<64x8xf32>, vector<64x8xf32>, vector<64x8xf32>, vector<64x8xf32>, vector<64x8xf32> -> vector<64x72xf32>
    %244 = arith.truncf %243 : vector<64x72xf32> to vector<64x72xbf16>
    %c0_347 = arith.constant 0 : index
    %c0_348 = arith.constant 0 : index
    %245 = vector.load %arg3[%c0_347, %c0_348] : memref<72x8xbf16, #tpu.memory_space<vmem>>, vector<72x8xbf16>
    %cst_349 = arith.constant dense<0.000000e+00> : vector<64x8xf32>
    %246 = tpu.matmul %244, %245, %cst_349 {dimension_numbers = #tpu.dot_dimension_numbers<[1], [0], [0], [1], [0, 0, 1, 1], [], []>} : vector<64x72xbf16>, vector<72x8xbf16>, vector<64x8xf32> -> vector<64x8xf32>
    %247 = vector.broadcast %132 : vector<1x8xf32> to vector<64x8xf32>
    %248 = arith.mulf %246, %247 : vector<64x8xf32>
    %249 = vector.broadcast %133 : vector<1x8xf32> to vector<64x8xf32>
    %250 = arith.addf %248, %249 : vector<64x8xf32>
    %cst_350 = arith.constant 0.000000e+00 : f32
    %251 = vector.broadcast %cst_350 : f32 to vector<64x8xf32>
    %252 = arith.maximumf %250, %251 : vector<64x8xf32>
    %253 = vector.shape_cast %252 : vector<64x8xf32> to vector<8x8x8xf32>
    %c1_351 = arith.constant 1 : index
    %c0_352 = arith.constant 0 : index
    %c1_353 = arith.constant 1 : index
    %c1_354 = arith.constant 1 : index
    %c0_355 = arith.constant 0 : index
    %254 = vector.load %arg11[%c1_351, %c0_352, %c1_353, %c1_354, %c0_355] : memref<2x2x10x16x8xf32, #tpu.memory_space<vmem>>, vector<1x1x8x8x8xf32>
    %255 = vector.shape_cast %254 : vector<1x1x8x8x8xf32> to vector<8x8x8xf32>
    %256 = vector.shape_cast %253 : vector<8x8x8xf32> to vector<1x1x8x8x8xf32>
    tpu.vector_store %arg11[%c1_351, %c0_352, %c1_353, %c1_354, %c0_355], %256 {strides = array<i32>} : memref<2x2x10x16x8xf32, #tpu.memory_space<vmem>>, vector<1x1x8x8x8xf32>,
    %c0_356 = arith.constant 0 : index
    %c0_357 = arith.constant 0 : index
    %c1_358 = arith.constant 1 : index
    %c1_359 = arith.constant 1 : index
    %c0_360 = arith.constant 0 : index
    %257 = vector.load %arg10[%c0_356, %c0_357, %c1_358, %c1_359, %c0_360] : memref<2x2x10x16x8xf32, #tpu.memory_space<vmem>>, vector<1x1x8x8x8xf32>
    %258 = vector.shape_cast %257 : vector<1x1x8x8x8xf32> to vector<8x8x8xf32>
    %259 = vector.shape_cast %258 : vector<8x8x8xf32> to vector<64x8xf32>
    %c0_361 = arith.constant 0 : index
    %c1_362 = arith.constant 1 : index
    %c1_363 = arith.constant 1 : index
    %c1_364 = arith.constant 1 : index
    %c0_365 = arith.constant 0 : index
    %260 = vector.load %arg10[%c0_361, %c1_362, %c1_363, %c1_364, %c0_365] : memref<2x2x10x16x8xf32, #tpu.memory_space<vmem>>, vector<1x1x8x8x8xf32>
    %261 = vector.shape_cast %260 : vector<1x1x8x8x8xf32> to vector<8x8x8xf32>
    %262 = vector.shape_cast %261 : vector<8x8x8xf32> to vector<64x8xf32>
    %c0_366 = arith.constant 0 : index
    %c0_367 = arith.constant 0 : index
    %c1_368 = arith.constant 1 : index
    %c2_369 = arith.constant 2 : index
    %c0_370 = arith.constant 0 : index
    %263 = vector.load %arg10[%c0_366, %c0_367, %c1_368, %c2_369, %c0_370] : memref<2x2x10x16x8xf32, #tpu.memory_space<vmem>>, vector<1x1x8x8x8xf32>
    %264 = vector.shape_cast %263 : vector<1x1x8x8x8xf32> to vector<8x8x8xf32>
    %265 = vector.shape_cast %264 : vector<8x8x8xf32> to vector<64x8xf32>
    %c1_371 = arith.constant 1 : index
    %c0_372 = arith.constant 0 : index
    %c1_373 = arith.constant 1 : index
    %c1_374 = arith.constant 1 : index
    %c0_375 = arith.constant 0 : index
    %266 = vector.load %arg10[%c1_371, %c0_372, %c1_373, %c1_374, %c0_375] : memref<2x2x10x16x8xf32, #tpu.memory_space<vmem>>, vector<1x1x8x8x8xf32>
    %267 = vector.shape_cast %266 : vector<1x1x8x8x8xf32> to vector<8x8x8xf32>
    %268 = vector.shape_cast %267 : vector<8x8x8xf32> to vector<64x8xf32>
    %c1_376 = arith.constant 1 : index
    %c1_377 = arith.constant 1 : index
    %c1_378 = arith.constant 1 : index
    %c1_379 = arith.constant 1 : index
    %c0_380 = arith.constant 0 : index
    %269 = vector.load %arg10[%c1_376, %c1_377, %c1_378, %c1_379, %c0_380] : memref<2x2x10x16x8xf32, #tpu.memory_space<vmem>>, vector<1x1x8x8x8xf32>
    %270 = vector.shape_cast %269 : vector<1x1x8x8x8xf32> to vector<8x8x8xf32>
    %271 = vector.shape_cast %270 : vector<8x8x8xf32> to vector<64x8xf32>
    %c1_381 = arith.constant 1 : index
    %c0_382 = arith.constant 0 : index
    %c1_383 = arith.constant 1 : index
    %c2_384 = arith.constant 2 : index
    %c0_385 = arith.constant 0 : index
    %272 = vector.load %arg10[%c1_381, %c0_382, %c1_383, %c2_384, %c0_385] : memref<2x2x10x16x8xf32, #tpu.memory_space<vmem>>, vector<1x1x8x8x8xf32>
    %273 = vector.shape_cast %272 : vector<1x1x8x8x8xf32> to vector<8x8x8xf32>
    %274 = vector.shape_cast %273 : vector<8x8x8xf32> to vector<64x8xf32>
    %c0_386 = arith.constant 0 : index
    %c0_387 = arith.constant 0 : index
    %c2_388 = arith.constant 2 : index
    %c1_389 = arith.constant 1 : index
    %c0_390 = arith.constant 0 : index
    %275 = vector.load %arg10[%c0_386, %c0_387, %c2_388, %c1_389, %c0_390] : memref<2x2x10x16x8xf32, #tpu.memory_space<vmem>>, vector<1x1x8x8x8xf32>
    %276 = vector.shape_cast %275 : vector<1x1x8x8x8xf32> to vector<8x8x8xf32>
    %277 = vector.shape_cast %276 : vector<8x8x8xf32> to vector<64x8xf32>
    %c0_391 = arith.constant 0 : index
    %c1_392 = arith.constant 1 : index
    %c2_393 = arith.constant 2 : index
    %c1_394 = arith.constant 1 : index
    %c0_395 = arith.constant 0 : index
    %278 = vector.load %arg10[%c0_391, %c1_392, %c2_393, %c1_394, %c0_395] : memref<2x2x10x16x8xf32, #tpu.memory_space<vmem>>, vector<1x1x8x8x8xf32>
    %279 = vector.shape_cast %278 : vector<1x1x8x8x8xf32> to vector<8x8x8xf32>
    %280 = vector.shape_cast %279 : vector<8x8x8xf32> to vector<64x8xf32>
    %c0_396 = arith.constant 0 : index
    %c0_397 = arith.constant 0 : index
    %c2_398 = arith.constant 2 : index
    %c2_399 = arith.constant 2 : index
    %c0_400 = arith.constant 0 : index
    %281 = vector.load %arg10[%c0_396, %c0_397, %c2_398, %c2_399, %c0_400] : memref<2x2x10x16x8xf32, #tpu.memory_space<vmem>>, vector<1x1x8x8x8xf32>
    %282 = vector.shape_cast %281 : vector<1x1x8x8x8xf32> to vector<8x8x8xf32>
    %283 = vector.shape_cast %282 : vector<8x8x8xf32> to vector<64x8xf32>
    %284 = tpu.concatenate %259, %262, %265, %268, %271, %274, %277, %280, %283 in 1 : vector<64x8xf32>, vector<64x8xf32>, vector<64x8xf32>, vector<64x8xf32>, vector<64x8xf32>, vector<64x8xf32>, vector<64x8xf32>, vector<64x8xf32>, vector<64x8xf32> -> vector<64x72xf32>
    %285 = arith.truncf %284 : vector<64x72xf32> to vector<64x72xbf16>
    %c0_401 = arith.constant 0 : index
    %c0_402 = arith.constant 0 : index
    %286 = vector.load %arg3[%c0_401, %c0_402] : memref<72x8xbf16, #tpu.memory_space<vmem>>, vector<72x8xbf16>
    %cst_403 = arith.constant dense<0.000000e+00> : vector<64x8xf32>
    %287 = tpu.matmul %285, %286, %cst_403 {dimension_numbers = #tpu.dot_dimension_numbers<[1], [0], [0], [1], [0, 0, 1, 1], [], []>} : vector<64x72xbf16>, vector<72x8xbf16>, vector<64x8xf32> -> vector<64x8xf32>
    %288 = vector.broadcast %132 : vector<1x8xf32> to vector<64x8xf32>
    %289 = arith.mulf %287, %288 : vector<64x8xf32>
    %290 = vector.broadcast %133 : vector<1x8xf32> to vector<64x8xf32>
    %291 = arith.addf %289, %290 : vector<64x8xf32>
    %cst_404 = arith.constant 0.000000e+00 : f32
    %292 = vector.broadcast %cst_404 : f32 to vector<64x8xf32>
    %293 = arith.maximumf %291, %292 : vector<64x8xf32>
    %294 = vector.shape_cast %293 : vector<64x8xf32> to vector<8x8x8xf32>
    %c1_405 = arith.constant 1 : index
    %c1_406 = arith.constant 1 : index
    %c1_407 = arith.constant 1 : index
    %c1_408 = arith.constant 1 : index
    %c0_409 = arith.constant 0 : index
    %295 = vector.load %arg11[%c1_405, %c1_406, %c1_407, %c1_408, %c0_409] : memref<2x2x10x16x8xf32, #tpu.memory_space<vmem>>, vector<1x1x8x8x8xf32>
    %296 = vector.shape_cast %295 : vector<1x1x8x8x8xf32> to vector<8x8x8xf32>
    %297 = vector.shape_cast %294 : vector<8x8x8xf32> to vector<1x1x8x8x8xf32>
    tpu.vector_store %arg11[%c1_405, %c1_406, %c1_407, %c1_408, %c0_409], %297 {strides = array<i32>} : memref<2x2x10x16x8xf32, #tpu.memory_space<vmem>>, vector<1x1x8x8x8xf32>,
    %c0_410 = arith.constant 0 : index
    %c0_411 = arith.constant 0 : index
    %298 = vector.load %arg7[%c0_410, %c0_411] : memref<1x4xf32, #tpu.memory_space<vmem>>, vector<1x4xf32>
    %c0_412 = arith.constant 0 : index
    %c0_413 = arith.constant 0 : index
    %299 = vector.load %arg8[%c0_412, %c0_413] : memref<1x4xf32, #tpu.memory_space<vmem>>, vector<1x4xf32>
    %c1_414 = arith.constant 1 : index
    %c1_415 = arith.constant 1 : index
    %c0_416 = arith.constant 0 : index
    %c0_417 = arith.constant 0 : index
    %c0_418 = arith.constant 0 : index
    %300 = vector.load %arg11[%c1_414, %c1_415, %c0_416, %c0_417, %c0_418] : memref<2x2x10x16x8xf32, #tpu.memory_space<vmem>>, vector<1x1x8x8x8xf32>
    %301 = vector.shape_cast %300 : vector<1x1x8x8x8xf32> to vector<8x8x8xf32>
    %302 = vector.shape_cast %301 : vector<8x8x8xf32> to vector<64x8xf32>
    %c1_419 = arith.constant 1 : index
    %c0_420 = arith.constant 0 : index
    %c0_421 = arith.constant 0 : index
    %c1_422 = arith.constant 1 : index
    %c0_423 = arith.constant 0 : index
    %303 = vector.load %arg11[%c1_419, %c0_420, %c0_421, %c1_422, %c0_423] : memref<2x2x10x16x8xf32, #tpu.memory_space<vmem>>, vector<1x1x8x8x8xf32>
    %304 = vector.shape_cast %303 : vector<1x1x8x8x8xf32> to vector<8x8x8xf32>
    %305 = vector.shape_cast %304 : vector<8x8x8xf32> to vector<64x8xf32>
    %c1_424 = arith.constant 1 : index
    %c1_425 = arith.constant 1 : index
    %c0_426 = arith.constant 0 : index
    %c1_427 = arith.constant 1 : index
    %c0_428 = arith.constant 0 : index
    %306 = vector.load %arg11[%c1_424, %c1_425, %c0_426, %c1_427, %c0_428] : memref<2x2x10x16x8xf32, #tpu.memory_space<vmem>>, vector<1x1x8x8x8xf32>
    %307 = vector.shape_cast %306 : vector<1x1x8x8x8xf32> to vector<8x8x8xf32>
    %308 = vector.shape_cast %307 : vector<8x8x8xf32> to vector<64x8xf32>
    %c0_429 = arith.constant 0 : index
    %c1_430 = arith.constant 1 : index
    %c1_431 = arith.constant 1 : index
    %c0_432 = arith.constant 0 : index
    %c0_433 = arith.constant 0 : index
    %309 = vector.load %arg11[%c0_429, %c1_430, %c1_431, %c0_432, %c0_433] : memref<2x2x10x16x8xf32, #tpu.memory_space<vmem>>, vector<1x1x8x8x8xf32>
    %310 = vector.shape_cast %309 : vector<1x1x8x8x8xf32> to vector<8x8x8xf32>
    %311 = vector.shape_cast %310 : vector<8x8x8xf32> to vector<64x8xf32>
    %c0_434 = arith.constant 0 : index
    %c0_435 = arith.constant 0 : index
    %c1_436 = arith.constant 1 : index
    %c1_437 = arith.constant 1 : index
    %c0_438 = arith.constant 0 : index
    %312 = vector.load %arg11[%c0_434, %c0_435, %c1_436, %c1_437, %c0_438] : memref<2x2x10x16x8xf32, #tpu.memory_space<vmem>>, vector<1x1x8x8x8xf32>
    %313 = vector.shape_cast %312 : vector<1x1x8x8x8xf32> to vector<8x8x8xf32>
    %314 = vector.shape_cast %313 : vector<8x8x8xf32> to vector<64x8xf32>
    %c0_439 = arith.constant 0 : index
    %c1_440 = arith.constant 1 : index
    %c1_441 = arith.constant 1 : index
    %c1_442 = arith.constant 1 : index
    %c0_443 = arith.constant 0 : index
    %315 = vector.load %arg11[%c0_439, %c1_440, %c1_441, %c1_442, %c0_443] : memref<2x2x10x16x8xf32, #tpu.memory_space<vmem>>, vector<1x1x8x8x8xf32>
    %316 = vector.shape_cast %315 : vector<1x1x8x8x8xf32> to vector<8x8x8xf32>
    %317 = vector.shape_cast %316 : vector<8x8x8xf32> to vector<64x8xf32>
    %c1_444 = arith.constant 1 : index
    %c1_445 = arith.constant 1 : index
    %c1_446 = arith.constant 1 : index
    %c0_447 = arith.constant 0 : index
    %c0_448 = arith.constant 0 : index
    %318 = vector.load %arg11[%c1_444, %c1_445, %c1_446, %c0_447, %c0_448] : memref<2x2x10x16x8xf32, #tpu.memory_space<vmem>>, vector<1x1x8x8x8xf32>
    %319 = vector.shape_cast %318 : vector<1x1x8x8x8xf32> to vector<8x8x8xf32>
    %320 = vector.shape_cast %319 : vector<8x8x8xf32> to vector<64x8xf32>
    %c1_449 = arith.constant 1 : index
    %c0_450 = arith.constant 0 : index
    %c1_451 = arith.constant 1 : index
    %c1_452 = arith.constant 1 : index
    %c0_453 = arith.constant 0 : index
    %321 = vector.load %arg11[%c1_449, %c0_450, %c1_451, %c1_452, %c0_453] : memref<2x2x10x16x8xf32, #tpu.memory_space<vmem>>, vector<1x1x8x8x8xf32>
    %322 = vector.shape_cast %321 : vector<1x1x8x8x8xf32> to vector<8x8x8xf32>
    %323 = vector.shape_cast %322 : vector<8x8x8xf32> to vector<64x8xf32>
    %c1_454 = arith.constant 1 : index
    %c1_455 = arith.constant 1 : index
    %c1_456 = arith.constant 1 : index
    %c1_457 = arith.constant 1 : index
    %c0_458 = arith.constant 0 : index
    %324 = vector.load %arg11[%c1_454, %c1_455, %c1_456, %c1_457, %c0_458] : memref<2x2x10x16x8xf32, #tpu.memory_space<vmem>>, vector<1x1x8x8x8xf32>
    %325 = vector.shape_cast %324 : vector<1x1x8x8x8xf32> to vector<8x8x8xf32>
    %326 = vector.shape_cast %325 : vector<8x8x8xf32> to vector<64x8xf32>
    %327 = tpu.concatenate %302, %305, %308, %311, %314, %317, %320, %323, %326 in 1 : vector<64x8xf32>, vector<64x8xf32>, vector<64x8xf32>, vector<64x8xf32>, vector<64x8xf32>, vector<64x8xf32>, vector<64x8xf32>, vector<64x8xf32>, vector<64x8xf32> -> vector<64x72xf32>
    %328 = arith.truncf %327 : vector<64x72xf32> to vector<64x72xbf16>
    %c0_459 = arith.constant 0 : index
    %c0_460 = arith.constant 0 : index
    %329 = vector.load %arg6[%c0_459, %c0_460] : memref<72x4xbf16, #tpu.memory_space<vmem>>, vector<72x4xbf16>
    %cst_461 = arith.constant dense<0.000000e+00> : vector<64x4xf32>
    %330 = tpu.matmul %328, %329, %cst_461 {dimension_numbers = #tpu.dot_dimension_numbers<[1], [0], [0], [1], [0, 0, 1, 1], [], []>} : vector<64x72xbf16>, vector<72x4xbf16>, vector<64x4xf32> -> vector<64x4xf32>
    %331 = vector.broadcast %298 : vector<1x4xf32> to vector<64x4xf32>
    %332 = arith.mulf %330, %331 : vector<64x4xf32>
    %333 = vector.broadcast %299 : vector<1x4xf32> to vector<64x4xf32>
    %334 = arith.addf %332, %333 : vector<64x4xf32>
    %cst_462 = arith.constant 0.000000e+00 : f32
    %335 = vector.broadcast %cst_462 : f32 to vector<64x4xf32>
    %336 = arith.maximumf %334, %335 : vector<64x4xf32>
    %c1_463 = arith.constant 1 : index
    %c0_464 = arith.constant 0 : index
    %c0_465 = arith.constant 0 : index
    %c1_466 = arith.constant 1 : index
    %c0_467 = arith.constant 0 : index
    %337 = vector.load %arg11[%c1_463, %c0_464, %c0_465, %c1_466, %c0_467] : memref<2x2x10x16x8xf32, #tpu.memory_space<vmem>>, vector<1x1x8x8x8xf32>
    %338 = vector.shape_cast %337 : vector<1x1x8x8x8xf32> to vector<8x8x8xf32>
    %339 = vector.shape_cast %338 : vector<8x8x8xf32> to vector<64x8xf32>
    %c1_468 = arith.constant 1 : index
    %c1_469 = arith.constant 1 : index
    %c0_470 = arith.constant 0 : index
    %c1_471 = arith.constant 1 : index
    %c0_472 = arith.constant 0 : index
    %340 = vector.load %arg11[%c1_468, %c1_469, %c0_470, %c1_471, %c0_472] : memref<2x2x10x16x8xf32, #tpu.memory_space<vmem>>, vector<1x1x8x8x8xf32>
    %341 = vector.shape_cast %340 : vector<1x1x8x8x8xf32> to vector<8x8x8xf32>
    %342 = vector.shape_cast %341 : vector<8x8x8xf32> to vector<64x8xf32>
    %c1_473 = arith.constant 1 : index
    %c0_474 = arith.constant 0 : index
    %c0_475 = arith.constant 0 : index
    %c2_476 = arith.constant 2 : index
    %c0_477 = arith.constant 0 : index
    %343 = vector.load %arg11[%c1_473, %c0_474, %c0_475, %c2_476, %c0_477] : memref<2x2x10x16x8xf32, #tpu.memory_space<vmem>>, vector<1x1x8x8x8xf32>
    %344 = vector.shape_cast %343 : vector<1x1x8x8x8xf32> to vector<8x8x8xf32>
    %345 = vector.shape_cast %344 : vector<8x8x8xf32> to vector<64x8xf32>
    %c0_478 = arith.constant 0 : index
    %c0_479 = arith.constant 0 : index
    %c1_480 = arith.constant 1 : index
    %c1_481 = arith.constant 1 : index
    %c0_482 = arith.constant 0 : index
    %346 = vector.load %arg11[%c0_478, %c0_479, %c1_480, %c1_481, %c0_482] : memref<2x2x10x16x8xf32, #tpu.memory_space<vmem>>, vector<1x1x8x8x8xf32>
    %347 = vector.shape_cast %346 : vector<1x1x8x8x8xf32> to vector<8x8x8xf32>
    %348 = vector.shape_cast %347 : vector<8x8x8xf32> to vector<64x8xf32>
    %c0_483 = arith.constant 0 : index
    %c1_484 = arith.constant 1 : index
    %c1_485 = arith.constant 1 : index
    %c1_486 = arith.constant 1 : index
    %c0_487 = arith.constant 0 : index
    %349 = vector.load %arg11[%c0_483, %c1_484, %c1_485, %c1_486, %c0_487] : memref<2x2x10x16x8xf32, #tpu.memory_space<vmem>>, vector<1x1x8x8x8xf32>
    %350 = vector.shape_cast %349 : vector<1x1x8x8x8xf32> to vector<8x8x8xf32>
    %351 = vector.shape_cast %350 : vector<8x8x8xf32> to vector<64x8xf32>
    %c0_488 = arith.constant 0 : index
    %c0_489 = arith.constant 0 : index
    %c1_490 = arith.constant 1 : index
    %c2_491 = arith.constant 2 : index
    %c0_492 = arith.constant 0 : index
    %352 = vector.load %arg11[%c0_488, %c0_489, %c1_490, %c2_491, %c0_492] : memref<2x2x10x16x8xf32, #tpu.memory_space<vmem>>, vector<1x1x8x8x8xf32>
    %353 = vector.shape_cast %352 : vector<1x1x8x8x8xf32> to vector<8x8x8xf32>
    %354 = vector.shape_cast %353 : vector<8x8x8xf32> to vector<64x8xf32>
    %c1_493 = arith.constant 1 : index
    %c0_494 = arith.constant 0 : index
    %c1_495 = arith.constant 1 : index
    %c1_496 = arith.constant 1 : index
    %c0_497 = arith.constant 0 : index
    %355 = vector.load %arg11[%c1_493, %c0_494, %c1_495, %c1_496, %c0_497] : memref<2x2x10x16x8xf32, #tpu.memory_space<vmem>>, vector<1x1x8x8x8xf32>
    %356 = vector.shape_cast %355 : vector<1x1x8x8x8xf32> to vector<8x8x8xf32>
    %357 = vector.shape_cast %356 : vector<8x8x8xf32> to vector<64x8xf32>
    %c1_498 = arith.constant 1 : index
    %c1_499 = arith.constant 1 : index
    %c1_500 = arith.constant 1 : index
    %c1_501 = arith.constant 1 : index
    %c0_502 = arith.constant 0 : index
    %358 = vector.load %arg11[%c1_498, %c1_499, %c1_500, %c1_501, %c0_502] : memref<2x2x10x16x8xf32, #tpu.memory_space<vmem>>, vector<1x1x8x8x8xf32>
    %359 = vector.shape_cast %358 : vector<1x1x8x8x8xf32> to vector<8x8x8xf32>
    %360 = vector.shape_cast %359 : vector<8x8x8xf32> to vector<64x8xf32>
    %c1_503 = arith.constant 1 : index
    %c0_504 = arith.constant 0 : index
    %c1_505 = arith.constant 1 : index
    %c2_506 = arith.constant 2 : index
    %c0_507 = arith.constant 0 : index
    %361 = vector.load %arg11[%c1_503, %c0_504, %c1_505, %c2_506, %c0_507] : memref<2x2x10x16x8xf32, #tpu.memory_space<vmem>>, vector<1x1x8x8x8xf32>
    %362 = vector.shape_cast %361 : vector<1x1x8x8x8xf32> to vector<8x8x8xf32>
    %363 = vector.shape_cast %362 : vector<8x8x8xf32> to vector<64x8xf32>
    %364 = tpu.concatenate %339, %342, %345, %348, %351, %354, %357, %360, %363 in 1 : vector<64x8xf32>, vector<64x8xf32>, vector<64x8xf32>, vector<64x8xf32>, vector<64x8xf32>, vector<64x8xf32>, vector<64x8xf32>, vector<64x8xf32>, vector<64x8xf32> -> vector<64x72xf32>
    %365 = arith.truncf %364 : vector<64x72xf32> to vector<64x72xbf16>
    %c0_508 = arith.constant 0 : index
    %c0_509 = arith.constant 0 : index
    %366 = vector.load %arg6[%c0_508, %c0_509] : memref<72x4xbf16, #tpu.memory_space<vmem>>, vector<72x4xbf16>
    %cst_510 = arith.constant dense<0.000000e+00> : vector<64x4xf32>
    %367 = tpu.matmul %365, %366, %cst_510 {dimension_numbers = #tpu.dot_dimension_numbers<[1], [0], [0], [1], [0, 0, 1, 1], [], []>} : vector<64x72xbf16>, vector<72x4xbf16>, vector<64x4xf32> -> vector<64x4xf32>
    %368 = vector.broadcast %298 : vector<1x4xf32> to vector<64x4xf32>
    %369 = arith.mulf %367, %368 : vector<64x4xf32>
    %370 = vector.broadcast %299 : vector<1x4xf32> to vector<64x4xf32>
    %371 = arith.addf %369, %370 : vector<64x4xf32>
    %cst_511 = arith.constant 0.000000e+00 : f32
    %372 = vector.broadcast %cst_511 : f32 to vector<64x4xf32>
    %373 = arith.maximumf %371, %372 : vector<64x4xf32>
    %374 = tpu.concatenate %336, %373 in 1 : vector<64x4xf32>, vector<64x4xf32> -> vector<64x8xf32>
    %c0_512 = arith.constant 0 : index
    %c0_513 = arith.constant 0 : index
    %c0_514 = arith.constant 0 : index
    %c0_515 = arith.constant 0 : index
    %375 = vector.load %arg9[%c0_512, %c0_513, %c0_514, %c0_515] : memref<1x2x64x8xf32, #tpu.memory_space<vmem>>, vector<1x1x64x8xf32>
    %376 = vector.shape_cast %375 : vector<1x1x64x8xf32> to vector<64x8xf32>
    %377 = vector.shape_cast %374 : vector<64x8xf32> to vector<1x1x64x8xf32>
    tpu.vector_store %arg9[%c0_512, %c0_513, %c0_514, %c0_515], %377 {strides = array<i32>} : memref<1x2x64x8xf32, #tpu.memory_space<vmem>>, vector<1x1x64x8xf32>,
    %c0_516 = arith.constant 0 : index
    %c1_517 = arith.constant 1 : index
    %c1_518 = arith.constant 1 : index
    %c0_519 = arith.constant 0 : index
    %c0_520 = arith.constant 0 : index
    %378 = vector.load %arg11[%c0_516, %c1_517, %c1_518, %c0_519, %c0_520] : memref<2x2x10x16x8xf32, #tpu.memory_space<vmem>>, vector<1x1x8x8x8xf32>
    %379 = vector.shape_cast %378 : vector<1x1x8x8x8xf32> to vector<8x8x8xf32>
    %380 = vector.shape_cast %379 : vector<8x8x8xf32> to vector<64x8xf32>
    %c0_521 = arith.constant 0 : index
    %c0_522 = arith.constant 0 : index
    %c1_523 = arith.constant 1 : index
    %c1_524 = arith.constant 1 : index
    %c0_525 = arith.constant 0 : index
    %381 = vector.load %arg11[%c0_521, %c0_522, %c1_523, %c1_524, %c0_525] : memref<2x2x10x16x8xf32, #tpu.memory_space<vmem>>, vector<1x1x8x8x8xf32>
    %382 = vector.shape_cast %381 : vector<1x1x8x8x8xf32> to vector<8x8x8xf32>
    %383 = vector.shape_cast %382 : vector<8x8x8xf32> to vector<64x8xf32>
    %c0_526 = arith.constant 0 : index
    %c1_527 = arith.constant 1 : index
    %c1_528 = arith.constant 1 : index
    %c1_529 = arith.constant 1 : index
    %c0_530 = arith.constant 0 : index
    %384 = vector.load %arg11[%c0_526, %c1_527, %c1_528, %c1_529, %c0_530] : memref<2x2x10x16x8xf32, #tpu.memory_space<vmem>>, vector<1x1x8x8x8xf32>
    %385 = vector.shape_cast %384 : vector<1x1x8x8x8xf32> to vector<8x8x8xf32>
    %386 = vector.shape_cast %385 : vector<8x8x8xf32> to vector<64x8xf32>
    %c1_531 = arith.constant 1 : index
    %c1_532 = arith.constant 1 : index
    %c1_533 = arith.constant 1 : index
    %c0_534 = arith.constant 0 : index
    %c0_535 = arith.constant 0 : index
    %387 = vector.load %arg11[%c1_531, %c1_532, %c1_533, %c0_534, %c0_535] : memref<2x2x10x16x8xf32, #tpu.memory_space<vmem>>, vector<1x1x8x8x8xf32>
    %388 = vector.shape_cast %387 : vector<1x1x8x8x8xf32> to vector<8x8x8xf32>
    %389 = vector.shape_cast %388 : vector<8x8x8xf32> to vector<64x8xf32>
    %c1_536 = arith.constant 1 : index
    %c0_537 = arith.constant 0 : index
    %c1_538 = arith.constant 1 : index
    %c1_539 = arith.constant 1 : index
    %c0_540 = arith.constant 0 : index
    %390 = vector.load %arg11[%c1_536, %c0_537, %c1_538, %c1_539, %c0_540] : memref<2x2x10x16x8xf32, #tpu.memory_space<vmem>>, vector<1x1x8x8x8xf32>
    %391 = vector.shape_cast %390 : vector<1x1x8x8x8xf32> to vector<8x8x8xf32>
    %392 = vector.shape_cast %391 : vector<8x8x8xf32> to vector<64x8xf32>
    %c1_541 = arith.constant 1 : index
    %c1_542 = arith.constant 1 : index
    %c1_543 = arith.constant 1 : index
    %c1_544 = arith.constant 1 : index
    %c0_545 = arith.constant 0 : index
    %393 = vector.load %arg11[%c1_541, %c1_542, %c1_543, %c1_544, %c0_545] : memref<2x2x10x16x8xf32, #tpu.memory_space<vmem>>, vector<1x1x8x8x8xf32>
    %394 = vector.shape_cast %393 : vector<1x1x8x8x8xf32> to vector<8x8x8xf32>
    %395 = vector.shape_cast %394 : vector<8x8x8xf32> to vector<64x8xf32>
    %c0_546 = arith.constant 0 : index
    %c1_547 = arith.constant 1 : index
    %c2_548 = arith.constant 2 : index
    %c0_549 = arith.constant 0 : index
    %c0_550 = arith.constant 0 : index
    %396 = vector.load %arg11[%c0_546, %c1_547, %c2_548, %c0_549, %c0_550] : memref<2x2x10x16x8xf32, #tpu.memory_space<vmem>>, vector<1x1x8x8x8xf32>
    %397 = vector.shape_cast %396 : vector<1x1x8x8x8xf32> to vector<8x8x8xf32>
    %398 = vector.shape_cast %397 : vector<8x8x8xf32> to vector<64x8xf32>
    %c0_551 = arith.constant 0 : index
    %c0_552 = arith.constant 0 : index
    %c2_553 = arith.constant 2 : index
    %c1_554 = arith.constant 1 : index
    %c0_555 = arith.constant 0 : index
    %399 = vector.load %arg11[%c0_551, %c0_552, %c2_553, %c1_554, %c0_555] : memref<2x2x10x16x8xf32, #tpu.memory_space<vmem>>, vector<1x1x8x8x8xf32>
    %400 = vector.shape_cast %399 : vector<1x1x8x8x8xf32> to vector<8x8x8xf32>
    %401 = vector.shape_cast %400 : vector<8x8x8xf32> to vector<64x8xf32>
    %c0_556 = arith.constant 0 : index
    %c1_557 = arith.constant 1 : index
    %c2_558 = arith.constant 2 : index
    %c1_559 = arith.constant 1 : index
    %c0_560 = arith.constant 0 : index
    %402 = vector.load %arg11[%c0_556, %c1_557, %c2_558, %c1_559, %c0_560] : memref<2x2x10x16x8xf32, #tpu.memory_space<vmem>>, vector<1x1x8x8x8xf32>
    %403 = vector.shape_cast %402 : vector<1x1x8x8x8xf32> to vector<8x8x8xf32>
    %404 = vector.shape_cast %403 : vector<8x8x8xf32> to vector<64x8xf32>
    %405 = tpu.concatenate %380, %383, %386, %389, %392, %395, %398, %401, %404 in 1 : vector<64x8xf32>, vector<64x8xf32>, vector<64x8xf32>, vector<64x8xf32>, vector<64x8xf32>, vector<64x8xf32>, vector<64x8xf32>, vector<64x8xf32>, vector<64x8xf32> -> vector<64x72xf32>
    %406 = arith.truncf %405 : vector<64x72xf32> to vector<64x72xbf16>
    %c0_561 = arith.constant 0 : index
    %c0_562 = arith.constant 0 : index
    %407 = vector.load %arg6[%c0_561, %c0_562] : memref<72x4xbf16, #tpu.memory_space<vmem>>, vector<72x4xbf16>
    %cst_563 = arith.constant dense<0.000000e+00> : vector<64x4xf32>
    %408 = tpu.matmul %406, %407, %cst_563 {dimension_numbers = #tpu.dot_dimension_numbers<[1], [0], [0], [1], [0, 0, 1, 1], [], []>} : vector<64x72xbf16>, vector<72x4xbf16>, vector<64x4xf32> -> vector<64x4xf32>
    %409 = vector.broadcast %298 : vector<1x4xf32> to vector<64x4xf32>
    %410 = arith.mulf %408, %409 : vector<64x4xf32>
    %411 = vector.broadcast %299 : vector<1x4xf32> to vector<64x4xf32>
    %412 = arith.addf %410, %411 : vector<64x4xf32>
    %cst_564 = arith.constant 0.000000e+00 : f32
    %413 = vector.broadcast %cst_564 : f32 to vector<64x4xf32>
    %414 = arith.maximumf %412, %413 : vector<64x4xf32>
    %c0_565 = arith.constant 0 : index
    %c0_566 = arith.constant 0 : index
    %c1_567 = arith.constant 1 : index
    %c1_568 = arith.constant 1 : index
    %c0_569 = arith.constant 0 : index
    %415 = vector.load %arg11[%c0_565, %c0_566, %c1_567, %c1_568, %c0_569] : memref<2x2x10x16x8xf32, #tpu.memory_space<vmem>>, vector<1x1x8x8x8xf32>
    %416 = vector.shape_cast %415 : vector<1x1x8x8x8xf32> to vector<8x8x8xf32>
    %417 = vector.shape_cast %416 : vector<8x8x8xf32> to vector<64x8xf32>
    %c0_570 = arith.constant 0 : index
    %c1_571 = arith.constant 1 : index
    %c1_572 = arith.constant 1 : index
    %c1_573 = arith.constant 1 : index
    %c0_574 = arith.constant 0 : index
    %418 = vector.load %arg11[%c0_570, %c1_571, %c1_572, %c1_573, %c0_574] : memref<2x2x10x16x8xf32, #tpu.memory_space<vmem>>, vector<1x1x8x8x8xf32>
    %419 = vector.shape_cast %418 : vector<1x1x8x8x8xf32> to vector<8x8x8xf32>
    %420 = vector.shape_cast %419 : vector<8x8x8xf32> to vector<64x8xf32>
    %c0_575 = arith.constant 0 : index
    %c0_576 = arith.constant 0 : index
    %c1_577 = arith.constant 1 : index
    %c2_578 = arith.constant 2 : index
    %c0_579 = arith.constant 0 : index
    %421 = vector.load %arg11[%c0_575, %c0_576, %c1_577, %c2_578, %c0_579] : memref<2x2x10x16x8xf32, #tpu.memory_space<vmem>>, vector<1x1x8x8x8xf32>
    %422 = vector.shape_cast %421 : vector<1x1x8x8x8xf32> to vector<8x8x8xf32>
    %423 = vector.shape_cast %422 : vector<8x8x8xf32> to vector<64x8xf32>
    %c1_580 = arith.constant 1 : index
    %c0_581 = arith.constant 0 : index
    %c1_582 = arith.constant 1 : index
    %c1_583 = arith.constant 1 : index
    %c0_584 = arith.constant 0 : index
    %424 = vector.load %arg11[%c1_580, %c0_581, %c1_582, %c1_583, %c0_584] : memref<2x2x10x16x8xf32, #tpu.memory_space<vmem>>, vector<1x1x8x8x8xf32>
    %425 = vector.shape_cast %424 : vector<1x1x8x8x8xf32> to vector<8x8x8xf32>
    %426 = vector.shape_cast %425 : vector<8x8x8xf32> to vector<64x8xf32>
    %c1_585 = arith.constant 1 : index
    %c1_586 = arith.constant 1 : index
    %c1_587 = arith.constant 1 : index
    %c1_588 = arith.constant 1 : index
    %c0_589 = arith.constant 0 : index
    %427 = vector.load %arg11[%c1_585, %c1_586, %c1_587, %c1_588, %c0_589] : memref<2x2x10x16x8xf32, #tpu.memory_space<vmem>>, vector<1x1x8x8x8xf32>
    %428 = vector.shape_cast %427 : vector<1x1x8x8x8xf32> to vector<8x8x8xf32>
    %429 = vector.shape_cast %428 : vector<8x8x8xf32> to vector<64x8xf32>
    %c1_590 = arith.constant 1 : index
    %c0_591 = arith.constant 0 : index
    %c1_592 = arith.constant 1 : index
    %c2_593 = arith.constant 2 : index
    %c0_594 = arith.constant 0 : index
    %430 = vector.load %arg11[%c1_590, %c0_591, %c1_592, %c2_593, %c0_594] : memref<2x2x10x16x8xf32, #tpu.memory_space<vmem>>, vector<1x1x8x8x8xf32>
    %431 = vector.shape_cast %430 : vector<1x1x8x8x8xf32> to vector<8x8x8xf32>
    %432 = vector.shape_cast %431 : vector<8x8x8xf32> to vector<64x8xf32>
    %c0_595 = arith.constant 0 : index
    %c0_596 = arith.constant 0 : index
    %c2_597 = arith.constant 2 : index
    %c1_598 = arith.constant 1 : index
    %c0_599 = arith.constant 0 : index
    %433 = vector.load %arg11[%c0_595, %c0_596, %c2_597, %c1_598, %c0_599] : memref<2x2x10x16x8xf32, #tpu.memory_space<vmem>>, vector<1x1x8x8x8xf32>
    %434 = vector.shape_cast %433 : vector<1x1x8x8x8xf32> to vector<8x8x8xf32>
    %435 = vector.shape_cast %434 : vector<8x8x8xf32> to vector<64x8xf32>
    %c0_600 = arith.constant 0 : index
    %c1_601 = arith.constant 1 : index
    %c2_602 = arith.constant 2 : index
    %c1_603 = arith.constant 1 : index
    %c0_604 = arith.constant 0 : index
    %436 = vector.load %arg11[%c0_600, %c1_601, %c2_602, %c1_603, %c0_604] : memref<2x2x10x16x8xf32, #tpu.memory_space<vmem>>, vector<1x1x8x8x8xf32>
    %437 = vector.shape_cast %436 : vector<1x1x8x8x8xf32> to vector<8x8x8xf32>
    %438 = vector.shape_cast %437 : vector<8x8x8xf32> to vector<64x8xf32>
    %c0_605 = arith.constant 0 : index
    %c0_606 = arith.constant 0 : index
    %c2_607 = arith.constant 2 : index
    %c2_608 = arith.constant 2 : index
    %c0_609 = arith.constant 0 : index
    %439 = vector.load %arg11[%c0_605, %c0_606, %c2_607, %c2_608, %c0_609] : memref<2x2x10x16x8xf32, #tpu.memory_space<vmem>>, vector<1x1x8x8x8xf32>
    %440 = vector.shape_cast %439 : vector<1x1x8x8x8xf32> to vector<8x8x8xf32>
    %441 = vector.shape_cast %440 : vector<8x8x8xf32> to vector<64x8xf32>
    %442 = tpu.concatenate %417, %420, %423, %426, %429, %432, %435, %438, %441 in 1 : vector<64x8xf32>, vector<64x8xf32>, vector<64x8xf32>, vector<64x8xf32>, vector<64x8xf32>, vector<64x8xf32>, vector<64x8xf32>, vector<64x8xf32>, vector<64x8xf32> -> vector<64x72xf32>
    %443 = arith.truncf %442 : vector<64x72xf32> to vector<64x72xbf16>
    %c0_610 = arith.constant 0 : index
    %c0_611 = arith.constant 0 : index
    %444 = vector.load %arg6[%c0_610, %c0_611] : memref<72x4xbf16, #tpu.memory_space<vmem>>, vector<72x4xbf16>
    %cst_612 = arith.constant dense<0.000000e+00> : vector<64x4xf32>
    %445 = tpu.matmul %443, %444, %cst_612 {dimension_numbers = #tpu.dot_dimension_numbers<[1], [0], [0], [1], [0, 0, 1, 1], [], []>} : vector<64x72xbf16>, vector<72x4xbf16>, vector<64x4xf32> -> vector<64x4xf32>
    %446 = vector.broadcast %298 : vector<1x4xf32> to vector<64x4xf32>
    %447 = arith.mulf %445, %446 : vector<64x4xf32>
    %448 = vector.broadcast %299 : vector<1x4xf32> to vector<64x4xf32>
    %449 = arith.addf %447, %448 : vector<64x4xf32>
    %cst_613 = arith.constant 0.000000e+00 : f32
    %450 = vector.broadcast %cst_613 : f32 to vector<64x4xf32>
    %451 = arith.maximumf %449, %450 : vector<64x4xf32>
    %452 = tpu.concatenate %414, %451 in 1 : vector<64x4xf32>, vector<64x4xf32> -> vector<64x8xf32>
    %c0_614 = arith.constant 0 : index
    %c1_615 = arith.constant 1 : index
    %c0_616 = arith.constant 0 : index
    %c0_617 = arith.constant 0 : index
    %453 = vector.load %arg9[%c0_614, %c1_615, %c0_616, %c0_617] : memref<1x2x64x8xf32, #tpu.memory_space<vmem>>, vector<1x1x64x8xf32>
    %454 = vector.shape_cast %453 : vector<1x1x64x8xf32> to vector<64x8xf32>
    %455 = vector.shape_cast %452 : vector<64x8xf32> to vector<1x1x64x8xf32>
    tpu.vector_store %arg9[%c0_614, %c1_615, %c0_616, %c0_617], %455 {strides = array<i32>} : memref<1x2x64x8xf32, #tpu.memory_space<vmem>>, vector<1x1x64x8xf32>,
    return
  }
  func.func @transform_0(%arg0: i32) -> (i32, i32, i32, i32) {
    %c0_i32 = arith.constant 0 : i32
    %c0_i32_0 = arith.constant 0 : i32
    %c0_i32_1 = arith.constant 0 : i32
    %c0_i32_2 = arith.constant 0 : i32
    return %arg0, %c0_i32, %c0_i32_0, %c0_i32_1 : i32, i32, i32, i32
  }
  func.func @transform_1(%arg0: i32) -> (i32, i32, i32, i32) {
    %c0_i32 = arith.constant 0 : i32
    %c0_i32_0 = arith.constant 0 : i32
    %c0_i32_1 = arith.constant 0 : i32
    %c0_i32_2 = arith.constant 0 : i32
    return %arg0, %c0_i32, %c0_i32_0, %c0_i32_1 : i32, i32, i32, i32
  }
  func.func @transform_2(%arg0: i32) -> (i32, i32) {
    %c0_i32 = arith.constant 0 : i32
    %c0_i32_0 = arith.constant 0 : i32
    %c0_i32_1 = arith.constant 0 : i32
    return %c0_i32, %c0_i32_0 : i32, i32
  }
  func.func @transform_3(%arg0: i32) -> (i32, i32) {
    %c0_i32 = arith.constant 0 : i32
    %c0_i32_0 = arith.constant 0 : i32
    %c0_i32_1 = arith.constant 0 : i32
    return %c0_i32, %c0_i32_0 : i32, i32
  }
  func.func @transform_4(%arg0: i32) -> (i32, i32) {
    %c0_i32 = arith.constant 0 : i32
    %c0_i32_0 = arith.constant 0 : i32
    %c0_i32_1 = arith.constant 0 : i32
    return %c0_i32, %c0_i32_0 : i32, i32
  }
  func.func @transform_5(%arg0: i32) -> (i32, i32) {
    %c0_i32 = arith.constant 0 : i32
    %c0_i32_0 = arith.constant 0 : i32
    %c0_i32_1 = arith.constant 0 : i32
    return %c0_i32, %c0_i32_0 : i32, i32
  }
  func.func @transform_6(%arg0: i32) -> (i32, i32) {
    %c0_i32 = arith.constant 0 : i32
    %c0_i32_0 = arith.constant 0 : i32
    %c0_i32_1 = arith.constant 0 : i32
    return %c0_i32, %c0_i32_0 : i32, i32
  }
  func.func @transform_7(%arg0: i32) -> (i32, i32) {
    %c0_i32 = arith.constant 0 : i32
    %c0_i32_0 = arith.constant 0 : i32
    %c0_i32_1 = arith.constant 0 : i32
    return %c0_i32, %c0_i32_0 : i32, i32
  }
  func.func @transform_8(%arg0: i32) -> (i32, i32, i32, i32) {
    %c0_i32 = arith.constant 0 : i32
    %c0_i32_0 = arith.constant 0 : i32
    %c0_i32_1 = arith.constant 0 : i32
    %c0_i32_2 = arith.constant 0 : i32
    return %arg0, %c0_i32, %c0_i32_0, %c0_i32_1 : i32, i32, i32, i32
  }
}

</mosaic_0001>

<bundles_post_ra>
// kernel: segnet_up2_forward.1
= control target key start
LH: loop header
LB: loop body
LE: loop exit
PB: predicated region body
PF: predicated region fallthrough
CT: control target
= control target key end

     0   :  { %s6675_s27 = smov 0   ;;  %s9656_s0 = inlined_call_operand.vmem [shape: bf16[2,8,8,8], index: 0, kind: input, shape index: {}]   ;;  %s9657_s1 = inlined_call_operand.vmem [shape: s32[2,8,8,8], index: 1, kind: input, shape index: {}]   ;;  %s9658_s2 = inlined_call_operand.vmem [shape: bf16[72,8], index: 2, kind: input, shape index: {}]   ;;  %s9659_s3 = inlined_call_operand.vmem [shape: f32[1,8], index: 3, kind: input, shape index: {}]   ;;  %s9660_s4 = inlined_call_operand.vmem [shape: f32[1,8], index: 4, kind: input, shape index: {}]   ;;  %s9661_s5 = inlined_call_operand.vmem [shape: bf16[72,4], index: 5, kind: input, shape index: {}]   ;;  %s9662_s6 = inlined_call_operand.vmem [shape: f32[1,4], index: 6, kind: input, shape index: {}]   ;;  %s9663_s7 = inlined_call_operand.vmem [shape: f32[1,4], index: 7, kind: input, shape index: {}]   ;;  %s9664_s8 = inlined_call_operand.vmem [shape: f32[2,2,64,8], index: 8, kind: output, shape index: {}]  }
   0x1 LB: > { %s4936_s28 = sadd.s32 4294967295, %s6618_s27   ;;  %p4940_p0 = scmp.ge.s32.totalorder %s6618_s27, 1  ;;  %s6618_s27 = sphi %s6675_s27, %s18_s27  }
   0x2   : > { %p272_p1 = scmp.lt.s32.totalorder %s6618_s27, 3 }
   0x4   : > { %p273_p2 = pnand %p4940_p0, %p272_p1 }
   0x6   : > { %276 = sbr.rel (%p273_p2) target bundleno = 1236 (0x4d4), region = 52 }
   0xd   : > { %p6685_p3 = scmp.lt.s32.totalorder %s4936_s28, 1  ;;  %vm327_vm0 = vcmask 64512   ;;  %vm333_vm1 = vcmask 57344   ;;  %vm344_vm2 = vcmask 63488   ;;  %v6620_v0 = vmov 0.0   ;;  %s6621_s16 = smov 8  }
   0xe   : > { %382 = vst.msk [vmem:[#allocation2 + $0x140] sm:$0xff] %vm327_vm0, %v6620_v0  ;;  %383 = vst.msk [vmem:[#allocation2 + $0x148] sm:$0xff] %vm327_vm0, %v6620_v0  ;;  %s6622_s17 = smov 16   ;;  %s6623_s18 = smov 24  }
   0xf   : > { %331 = vst.msk [vmem:[#allocation2 + $0x90] sm:$0xff] %vm327_vm0, %v6620_v0  ;;  %332 = vst.msk [vmem:[#allocation2 + $0x98] sm:$0xff] %vm327_vm0, %v6620_v0  ;;  %s9848_s28 = smov (!%p6685_p3, %s4936_s28), 1  ;;  %s6624_s19 = smov 32  }
  0x10   : > { %359 = vst.msk [vmem:[#allocation2 + $0x130] sm:$0xff] %vm327_vm0, %v6620_v0  ;;  %360 = vst.msk [vmem:[#allocation2 + $0x138] sm:$0xff] %vm327_vm0, %v6620_v0  ;;  %s5023_s30 = sshll.u32 %s9848_s28, 5  ;;  %s5024_s9 = sshll.u32 %s9848_s28, 6 }
  0x11   : > { %362 = vst.msk [vmem:[#allocation2 + $0xb0] sm:$0x1] %vm333_vm1, %v6620_v0  ;;  %363 = vst.msk [vmem:[#allocation2 + $0xc0] sm:$0x1] %vm333_vm1, %v6620_v0  ;;  %s315_s12 = scalar_lea.vmem %s9656_s0, %s5023_s30  ;;  %s6879_s15 = scalar_lea.vmem %s9657_s1, %s5024_s9 }
  0x12   : > { %364 = vst.msk [vmem:[#allocation2 + $0xd0] sm:$0x1] %vm333_vm1, %v6620_v0  ;;  %365 = vst.msk [vmem:[#allocation2 + $0xe0] sm:$0x1] %vm333_vm1, %v6620_v0  ;;  %v5042_v1 = vld [vmem:[%s315_s12 + $0x8] sm:$0xff]   ;;  %v5043_v2 = vld [vmem:[%s315_s12 + $0x10] sm:$0xff]  }
  0x13   : > { %366 = vst.msk [vmem:[#allocation2 + $0xf0] sm:$0x1] %vm333_vm1, %v6620_v0  ;;  %367 = vst.msk [vmem:[#allocation2 + $0x100] sm:$0x1] %vm333_vm1, %v6620_v0  ;;  %v6882_v3 = vld [vmem:[%s6879_s15 + $0x18] sm:$0xff]  ;;  %v6884_v4 = vunpack.c.h.bf16 %v5042_v1  ;;  %v6886_v5 = vunpack.c.l.bf16 %v5043_v2  ;;  %v6888_v6 = vunpack.c.h.bf16 %v5043_v2  ;;  %v6891_v7 = vld [vmem:[%s6879_s15 + $0x20] sm:$0xff]  ;;  %v6898_v10 = vunpack.c.l.bf16 %v5042_v1 }
  0x14   : > { %368 = vst.msk [vmem:[#allocation2 + $0x110] sm:$0x1] %vm333_vm1, %v6620_v0  ;;  %369 = vst.msk [vmem:[#allocation2 + $0x120] sm:$0x1] %vm333_vm1, %v6620_v0  ;;  %vm613_vm3 = vcmp.eq.s32.totalorder %v6882_v3, 2  ;;  %v5027_v8 = vld [vmem:[%s315_s12] sm:$0xff]  }
  0x15   : > { %408 = vst.msk [vmem:[#allocation2 + $0x1e0] sm:$0xff] %vm327_vm0, %v6620_v0  ;;  %409 = vst.msk [vmem:[#allocation2 + $0x1e8] sm:$0xff] %vm327_vm0, %v6620_v0  ;;  %v6895_v9 = vld [vmem:[%s6879_s15] sm:$0xff]  ;;  %vm614_vm4 = vcmp.eq.s32.totalorder %v6891_v7, 2  ;;  %v6900_v11 = vunpack.c.l.bf16 %v5027_v8  ;;  %v6902_v12 = vunpack.c.h.bf16 %v5027_v8  ;;  %v5044_v13 = vld [vmem:[%s315_s12 + $0x18] sm:$0xff]   ;;  %v621_v15 = vsel %vm613_vm3, %v6884_v4, 0.0 }
  0x16   : > { %414 = vst.msk [vmem:[#allocation2 + $0x1f0] sm:$0x1] %vm333_vm1, %v6620_v0  ;;  %415 = vst.msk [vmem:[#allocation2 + $0x200] sm:$0x1] %vm333_vm1, %v6620_v0  ;;  %v6905_v14 = vld [vmem:[%s6879_s15 + $0x28] sm:$0xff]  ;;  %v622_v16 = vsel %vm614_vm4, %v6886_v5, 0.0  ;;  %v6910_v17 = vunpack.c.l.bf16 %v5044_v13  ;;  %v6974_v41 = vunpack.c.h.bf16 %v5044_v13 }
  0x17   : > { %416 = vst.msk [vmem:[#allocation2 + $0x210] sm:$0x1] %vm333_vm1, %v6620_v0  ;;  %417 = vst.msk [vmem:[#allocation2 + $0x220] sm:$0x1] %vm333_vm1, %v6620_v0  ;;  %vm610_vm5 = vcmp.eq.s32.totalorder %v6895_v9, 2  ;;  %v6913_v18 = vld [vmem:[%s6879_s15 + $0x30] sm:$0xff] }
  0x18   : > { %418 = vst.msk [vmem:[#allocation2 + $0x230] sm:$0x1] %vm333_vm1, %v6620_v0  ;;  %419 = vst.msk [vmem:[#allocation2 + $0x240] sm:$0x1] %vm333_vm1, %v6620_v0  ;;  %v6916_v19 = vld [vmem:[%s6879_s15 + $0x8] sm:$0xff]  ;;  %v6919_v20 = vld [vmem:[%s6879_s15 + $0x10] sm:$0xff] }
  0x19   : > { %420 = vst.msk [vmem:[#allocation2 + $0x250] sm:$0x1] %vm333_vm1, %v6620_v0  ;;  %421 = vst.msk [vmem:[#allocation2 + $0x260] sm:$0x1] %vm333_vm1, %v6620_v0  ;;  %v618_v21 = vsel %vm610_vm5, %v6900_v11, 0.0  ;;  %vm615_vm6 = vcmp.eq.s32.totalorder %v6905_v14, 2 }
  0x1a   : > { %436 = vst.msk [vmem:[#allocation3 + $0x90] sm:$0xff] %vm327_vm0, %v6620_v0  ;;  %437 = vst.msk [vmem:[#allocation3 + $0x98] sm:$0xff] %vm327_vm0, %v6620_v0  ;;  %vm616_vm7 = vcmp.eq.s32.totalorder %v6913_v18, 2  ;;  %vm611_vm8 = vcmp.eq.s32.totalorder %v6916_v19, 2  ;;  %v623_v22 = vsel %vm615_vm6, %v6888_v6, 0.0  ;;  %vm612_vm9 = vcmp.eq.s32.totalorder %v6919_v20, 2 }
  0x1b   : > { %462 = vst.msk [vmem:[#allocation3 + $0x130] sm:$0xff] %vm327_vm0, %v6620_v0  ;;  %463 = vst.msk [vmem:[#allocation3 + $0x138] sm:$0xff] %vm327_vm0, %v6620_v0  ;;  %v624_v23 = vsel %vm616_vm7, %v6910_v17, 0.0  ;;  %v619_v24 = vsel %vm611_vm8, %v6902_v12, 0.0  ;;  %v620_v25 = vsel %vm612_vm9, %v6898_v10, 0.0  ;;  %vm636_vm10 = vcmp.eq.s32.totalorder %v6916_v19, 3 }
  0x1c   : > { %465 = vst.msk [vmem:[#allocation3 + $0xb0] sm:$0x1] %vm333_vm1, %v6620_v0  ;;  %466 = vst.msk [vmem:[#allocation3 + $0xc0] sm:$0x1] %vm333_vm1, %v6620_v0  ;;  %vm637_vm11 = vcmp.eq.s32.totalorder %v6919_v20, 3  ;;  %vm635_vm12 = vcmp.eq.s32.totalorder %v6895_v9, 3 }
  0x1d   : > { %467 = vst.msk [vmem:[#allocation3 + $0xd0] sm:$0x1] %vm333_vm1, %v6620_v0  ;;  %468 = vst.msk [vmem:[#allocation3 + $0xe0] sm:$0x1] %vm333_vm1, %v6620_v0  ;;  %v644_v26 = vsel %vm636_vm10, %v6902_v12, 0.0  ;;  %v645_v27 = vsel %vm637_vm11, %v6898_v10, 0.0 }
  0x1e   : > { %469 = vst.msk [vmem:[#allocation3 + $0xf0] sm:$0x1] %vm333_vm1, %v6620_v0  ;;  %470 = vst.msk [vmem:[#allocation3 + $0x100] sm:$0x1] %vm333_vm1, %v6620_v0  ;;  %v643_v28 = vsel %vm635_vm12, %v6900_v11, 0.0  ;;  %vm640_vm13 = vcmp.eq.s32.totalorder %v6905_v14, 3 }
  0x1f   : > { %471 = vst.msk [vmem:[#allocation3 + $0x110] sm:$0x1] %vm333_vm1, %v6620_v0  ;;  %472 = vst.msk [vmem:[#allocation3 + $0x120] sm:$0x1] %vm333_vm1, %v6620_v0  ;;  %v6945_v29 = vld [vmem:[%s6879_s15 + $0x38] sm:$0xff]  ;;  %v670_v30 = vld [vmem:[#allocation2 + $0x141] sm:$0xff] }
  0x20   : > { %485 = vst.msk [vmem:[#allocation3 + $0x140] sm:$0xff] %vm327_vm0, %v6620_v0  ;;  %486 = vst.msk [vmem:[#allocation3 + $0x148] sm:$0xff] %vm327_vm0, %v6620_v0  ;;  %vm641_vm14 = vcmp.eq.s32.totalorder %v6913_v18, 3  ;;  %v648_v31 = vsel %vm640_vm13, %v6888_v6, 0.0  ;;  %vm638_vm15 = vcmp.eq.s32.totalorder %v6882_v3, 3  ;;  %vm588_vm3 = vcmp.eq.s32.totalorder %v6882_v3, 1 }
  0x21   : > { %511 = vst.msk [vmem:[#allocation3 + $0x1e0] sm:$0xff] %vm327_vm0, %v6620_v0  ;;  %512 = vst.msk [vmem:[#allocation3 + $0x1e8] sm:$0xff] %vm327_vm0, %v6620_v0  ;;  %v649_v32 = vsel %vm641_vm14, %v6910_v17, 0.0  ;;  %v646_v33 = vsel %vm638_vm15, %v6884_v4, 0.0  ;;  %vm585_vm4 = vcmp.eq.s32.totalorder %v6895_v9, 1  ;;  %vm586_vm5 = vcmp.eq.s32.totalorder %v6916_v19, 1 }
  0x22   : > { %517 = vst.msk [vmem:[#allocation3 + $0x1f0] sm:$0x1] %vm333_vm1, %v6620_v0  ;;  %518 = vst.msk [vmem:[#allocation3 + $0x200] sm:$0x1] %vm333_vm1, %v6620_v0  ;;  %v596_v38 = vsel %vm588_vm3, %v6884_v4, 0.0  ;;  %v593_v39 = vsel %vm585_vm4, %v6900_v11, 0.0 }
  0x23   : > { %519 = vst.msk [vmem:[#allocation3 + $0x210] sm:$0x1] %vm333_vm1, %v6620_v0  ;;  %520 = vst.msk [vmem:[#allocation3 + $0x220] sm:$0x1] %vm333_vm1, %v6620_v0  ;;  %v594_v40 = vsel %vm586_vm5, %v6902_v12, 0.0  ;;  %vm591_vm6 = vcmp.eq.s32.totalorder %v6913_v18, 1 }
  0x24   : > { %521 = vst.msk [vmem:[#allocation3 + $0x230] sm:$0x1] %vm333_vm1, %v6620_v0  ;;  %522 = vst.msk [vmem:[#allocation3 + $0x240] sm:$0x1] %vm333_vm1, %v6620_v0  ;;  %vm592_vm7 = vcmp.eq.s32.totalorder %v6945_v29, 1  ;;  %vm589_vm8 = vcmp.eq.s32.totalorder %v6891_v7, 1 }
  0x25   : > { %523 = vst.msk [vmem:[#allocation3 + $0x250] sm:$0x1] %vm333_vm1, %v6620_v0  ;;  %524 = vst.msk [vmem:[#allocation3 + $0x260] sm:$0x1] %vm333_vm1, %v6620_v0  ;;  %v599_v48 = vsel %vm591_vm6, %v6910_v17, 0.0  ;;  %v600_v49 = vsel %vm592_vm7, %v6974_v41, 0.0 }
  0x26   : > { %346 = vst.msk [vmem:[#allocation2 + $0x19] sm:$0x7f] %vm344_vm2, %v6620_v0  ;;  %347 = vst.msk [vmem:[#allocation2 + $0x29] sm:$0x7f] %vm344_vm2, %v6620_v0  ;;  %vm590_vm9 = vcmp.eq.s32.totalorder %v6905_v14, 1  ;;  %v597_v52 = vsel %vm589_vm8, %v6886_v5, 0.0 }
  0x27   : > { %348 = vst.msk [vmem:[#allocation2 + $0x39] sm:$0x7f] %vm344_vm2, %v6620_v0  ;;  %349 = vst.msk [vmem:[#allocation2 + $0x49] sm:$0x7f] %vm344_vm2, %v6620_v0  ;;  %v598_v53 = vsel %vm590_vm9, %v6888_v6, 0.0  ;;  %vm562_vm10 = vcmp.eq.s32.totalorder %v6919_v20, 0 }
  0x28   : > { %350 = vst.msk [vmem:[#allocation2 + $0x59] sm:$0x7f] %vm344_vm2, %v6620_v0  ;;  %351 = vst.msk [vmem:[#allocation2 + $0x69] sm:$0x7f] %vm344_vm2, %v6620_v0  ;;  %vm563_vm11 = vcmp.eq.s32.totalorder %v6882_v3, 0  ;;  %v570_v57 = vsel %vm562_vm10, %v6898_v10, 0.0 }
  0x29   : > { %352 = vst.msk [vmem:[#allocation2 + $0x79] sm:$0x7f] %vm344_vm2, %v6620_v0  ;;  %353 = vst.msk [vmem:[#allocation2 + $0x89] sm:$0x7f] %vm344_vm2, %v6620_v0  ;;  %vm560_vm12 = vcmp.eq.s32.totalorder %v6895_v9, 0  ;;  %v678_v58 = vld [vmem:[#allocation2 + $0x1e1] sm:$0xff] }
  0x2a   : > { %398 = vst.msk [vmem:[#allocation2 + $0x159] sm:$0x7f] %vm344_vm2, %v6620_v0  ;;  %399 = vst.msk [vmem:[#allocation2 + $0x169] sm:$0x7f] %vm344_vm2, %v6620_v0  ;;  %v571_v60 = vsel %vm563_vm11, %v6884_v4, 0.0  ;;  %vm561_vm13 = vcmp.eq.s32.totalorder %v6916_v19, 0 }
  0x2b   : > { %400 = vst.msk [vmem:[#allocation2 + $0x179] sm:$0x7f] %vm344_vm2, %v6620_v0  ;;  %401 = vst.msk [vmem:[#allocation2 + $0x189] sm:$0x7f] %vm344_vm2, %v6620_v0  ;;  %v568_v61 = vsel %vm560_vm12, %v6900_v11, 0.0  ;;  %v569_v62 = vsel %vm561_vm13, %v6902_v12, 0.0 }
  0x2c   : > { %402 = vst.msk [vmem:[#allocation2 + $0x199] sm:$0x7f] %vm344_vm2, %v6620_v0  ;;  %403 = vst.msk [vmem:[#allocation2 + $0x1a9] sm:$0x7f] %vm344_vm2, %v6620_v0  ;;  %vm566_vm14 = vcmp.eq.s32.totalorder %v6913_v18, 0  ;;  %vm567_vm15 = vcmp.eq.s32.totalorder %v6945_v29, 0 }
  0x2d   : > { %404 = vst.msk [vmem:[#allocation2 + $0x1b9] sm:$0x7f] %vm344_vm2, %v6620_v0  ;;  %405 = vst.msk [vmem:[#allocation2 + $0x1c9] sm:$0x7f] %vm344_vm2, %v6620_v0  ;;  %v575_v4 = vsel %vm567_vm15, %v6974_v41, 0.0  ;;  %vm642_vm3 = vcmp.eq.s32.totalorder %v6945_v29, 3 }
  0x2e   : > { %449 = vst.msk [vmem:[#allocation3 + $0x19] sm:$0x7f] %vm344_vm2, %v6620_v0  ;;  %450 = vst.msk [vmem:[#allocation3 + $0x29] sm:$0x7f] %vm344_vm2, %v6620_v0  ;;  %v650_v12 = vsel %vm642_vm3, %v6974_v41, 0.0  ;;  %vm617_vm4 = vcmp.eq.s32.totalorder %v6945_v29, 2 }
  0x2f   : > { %451 = vst.msk [vmem:[#allocation3 + $0x39] sm:$0x7f] %vm344_vm2, %v6620_v0  ;;  %452 = vst.msk [vmem:[#allocation3 + $0x49] sm:$0x7f] %vm344_vm2, %v6620_v0  ;;  %s6625_s22 = smov 40   ;;  %s6626_s29 = smov 48  }
  0x30   : > { %453 = vst.msk [vmem:[#allocation3 + $0x59] sm:$0x7f] %vm344_vm2, %v6620_v0  ;;  %454 = vst.msk [vmem:[#allocation3 + $0x69] sm:$0x7f] %vm344_vm2, %v6620_v0  ;;  %vm1114_vm5 = vcmask 1043456   ;;  %s6627_s12 = smov 56  }
  0x31   : > { %455 = vst.msk [vmem:[#allocation3 + $0x79] sm:$0x7f] %vm344_vm2, %v6620_v0  ;;  %456 = vst.msk [vmem:[#allocation3 + $0x89] sm:$0x7f] %vm344_vm2, %v6620_v0  ;;  %s6628_s13 = smov 64   ;;  %vm998_vm6 = vcmask 130048  }
  0x32   : > { %501 = vst.msk [vmem:[#allocation3 + $0x159] sm:$0x7f] %vm344_vm2, %v6620_v0  ;;  %502 = vst.msk [vmem:[#allocation3 + $0x169] sm:$0x7f] %vm344_vm2, %v6620_v0  ;;  %vm1007_vm7 = vcmask 195584   ;;  %vm1016_vm8 = vcmask 261120  }
  0x33   : > { %503 = vst.msk [vmem:[#allocation3 + $0x179] sm:$0x7f] %vm344_vm2, %v6620_v0  ;;  %504 = vst.msk [vmem:[#allocation3 + $0x189] sm:$0x7f] %vm344_vm2, %v6620_v0  ;;  %vm1025_vm9 = vcmask 326656   ;;  %vm1034_vm10 = vcmask 392192  }
  0x34   : > { %505 = vst.msk [vmem:[#allocation3 + $0x199] sm:$0x7f] %vm344_vm2, %v6620_v0  ;;  %506 = vst.msk [vmem:[#allocation3 + $0x1a9] sm:$0x7f] %vm344_vm2, %v6620_v0  ;;  %vm1043_vm11 = vcmask 457728   ;;  %vm1052_vm12 = vcmask 523264  }
  0x35   : > { %507 = vst.msk [vmem:[#allocation3 + $0x1b9] sm:$0x7f] %vm344_vm2, %v6620_v0  ;;  %508 = vst.msk [vmem:[#allocation3 + $0x1c9] sm:$0x7f] %vm344_vm2, %v6620_v0  ;;  %vm1101_vm13 = vcmask 588800  }
  0x36   : > { %370 = vst.msk [vmem:[#allocation2 + $0x130] sm:$0x1] %vm333_vm1, %v6620_v0  ;;  %413 = vst.msk [vmem:[#allocation2 + $0x1e0] sm:$0x1] %vm333_vm1, %v6620_v0 }
  0x37   : > { %473 = vst.msk [vmem:[#allocation3 + $0x130] sm:$0x1] %vm333_vm1, %v6620_v0  ;;  %516 = vst.msk [vmem:[#allocation3 + $0x1e0] sm:$0x1] %vm333_vm1, %v6620_v0  ;;  %vm639_vm1 = vcmp.eq.s32.totalorder %v6891_v7, 3 }
  0x38   : > { %354 = vst.msk [vmem:[#allocation2 + $0x99] sm:$0x7f] %vm344_vm2, %v6620_v0  ;;  %397 = vst.msk [vmem:[#allocation2 + $0x149] sm:$0x7f] %vm344_vm2, %v6620_v0  ;;  %v647_v34 = vsel %vm639_vm1, %v6886_v5, 0.0  ;;  %vm564_vm1 = vcmp.eq.s32.totalorder %v6891_v7, 0 }
  0x39   : > { %457 = vst.msk [vmem:[#allocation3 + $0x99] sm:$0x7f] %vm344_vm2, %v6620_v0  ;;  %500 = vst.msk [vmem:[#allocation3 + $0x149] sm:$0x7f] %vm344_vm2, %v6620_v0  ;;  %vm587_vm2 = vcmp.eq.s32.totalorder %v6919_v20, 1  ;;  %v574_v0 = vsel %vm566_vm14, %v6910_v17, 0.0 }
  0x3a   : > { %630 = vst.msk [vmem:[#allocation2 + $0x181] sm:$0xff] %vm327_vm0, %v621_v15  ;;  %631 = vst.msk [vmem:[#allocation2 + $0x191] sm:$0xff] %vm327_vm0, %v622_v16  ;;  %v595_v35 = vsel %vm587_vm2, %v6898_v10, 0.0  ;;  %vm565_vm2 = vcmp.eq.s32.totalorder %v6905_v14, 0  ;;  %v572_v10 = vsel %vm564_vm1, %v6886_v5, 0.0  ;;  %v625_v14 = vsel %vm617_vm4, %v6974_v41, 0.0 }
  0x3b   : > { %627 = vst.msk [vmem:[#allocation2 + $0x151] sm:$0xff] %vm327_vm0, %v618_v21  ;;  %632 = vst.msk [vmem:[#allocation2 + $0x1a1] sm:$0xff] %vm327_vm0, %v623_v22  ;;  %v573_v11 = vsel %vm565_vm2, %v6888_v6, 0.0  ;;  %vm3856_vm14 = vcmask 31744  }
  0x3c   : > { %633 = vst.msk [vmem:[#allocation2 + $0x1b1] sm:$0xff] %vm327_vm0, %v624_v23  ;;  %628 = vst.msk [vmem:[#allocation2 + $0x161] sm:$0xff] %vm327_vm0, %v619_v24 }
  0x3d   : > { %629 = vst.msk [vmem:[#allocation2 + $0x171] sm:$0xff] %vm327_vm0, %v620_v25  ;;  %653 = vst.msk [vmem:[#allocation2 + $0x201] sm:$0xff] %vm327_vm0, %v644_v26 }
  0x3e   : > { %654 = vst.msk [vmem:[#allocation2 + $0x211] sm:$0xff] %vm327_vm0, %v645_v27  ;;  %652 = vst.msk [vmem:[#allocation2 + $0x1f1] sm:$0xff] %vm327_vm0, %v643_v28 }
  0x3f   : > { %657 = vst.msk [vmem:[#allocation2 + $0x241] sm:$0xff] %vm327_vm0, %v648_v31  ;;  %658 = vst.msk [vmem:[#allocation2 + $0x251] sm:$0xff] %vm327_vm0, %v649_v32 }
  0x40   : > { %655 = vst.msk [vmem:[#allocation2 + $0x221] sm:$0xff] %vm327_vm0, %v646_v33  ;;  %656 = vst.msk [vmem:[#allocation2 + $0x231] sm:$0xff] %vm327_vm0, %v647_v34 }
  0x41   : > { %v6966_v36 = vld [vmem:[#allocation2 + $0x181] sm:$0xff]  ;;  %v6968_v37 = vld [vmem:[#allocation2 + $0x191] sm:$0xff]  ;;  %604 = vst.msk [vmem:[#allocation2 + $0xd1] sm:$0xff] %vm327_vm0, %v595_v35  ;;  %605 = vst.msk [vmem:[#allocation2 + $0xe1] sm:$0xff] %vm327_vm0, %v596_v38 }
  0x42   : > { %v5297_v42 = vpack.i.bf16 %v6968_v37, %v6966_v36  ;;  %v6978_v43 = vld [vmem:[#allocation2 + $0x151] sm:$0xff]  ;;  %602 = vst.msk [vmem:[#allocation2 + $0xb1] sm:$0xff] %vm327_vm0, %v593_v39  ;;  %603 = vst.msk [vmem:[#allocation2 + $0xc1] sm:$0xff] %vm327_vm0, %v594_v40  ;;  %v6987_v45 = vld [vmem:[#allocation2 + $0x1a1] sm:$0xff] }
  0x43   : > { %v5287_v44 = vpack.i.bf16 %v6978_v43, %v670_v30  ;;  %v6989_v46 = vld [vmem:[#allocation2 + $0x1b1] sm:$0xff]  ;;  %v6991_v47 = vld [vmem:[#allocation2 + $0x161] sm:$0xff]  ;;  %608 = vst.msk [vmem:[#allocation2 + $0x111] sm:$0xff] %vm327_vm0, %v599_v48  ;;  %609 = vst.msk [vmem:[#allocation2 + $0x121] sm:$0xff] %vm327_vm0, %v600_v49 }
  0x44   : > { %5298 = vrot.lane.b32.xlu1 %v5297_v42, %s6621_s16  ;;  %v5302_v50 = vpack.i.bf16 %v6989_v46, %v6987_v45  ;;  %v6999_v51 = vld [vmem:[#allocation2 + $0x171] sm:$0xff]  ;;  %v7009_v55 = vld [vmem:[#allocation2 + $0x201] sm:$0xff]  ;;  %606 = vst.msk [vmem:[#allocation2 + $0xf1] sm:$0xff] %vm327_vm0, %v597_v52  ;;  %607 = vst.msk [vmem:[#allocation2 + $0x101] sm:$0xff] %vm327_vm0, %v598_v53 }
  0x45   : > { %5288 = vrot.lane.b32.xlu0 %v5287_v44, %s6621_s16  ;;  %v5292_v54 = vpack.i.bf16 %v6999_v51, %v6991_v47  ;;  %v7011_v56 = vld [vmem:[#allocation2 + $0x211] sm:$0xff]  ;;  %579 = vst.msk [vmem:[#allocation2 + $0x31] sm:$0xff] %vm327_vm0, %v570_v57  ;;  %580 = vst.msk [vmem:[#allocation2 + $0x41] sm:$0xff] %vm327_vm0, %v571_v60 }
  0x46   : > { %v7018_v59 = vld [vmem:[#allocation2 + $0x1f1] sm:$0xff]  ;;  %v7030_v63 = vpack.i.bf16 %v7011_v56, %v7009_v55  ;;  %577 = vst.msk [vmem:[#allocation2 + $0x11] sm:$0xff] %vm327_vm0, %v568_v61  ;;  %578 = vst.msk [vmem:[#allocation2 + $0x21] sm:$0xff] %vm327_vm0, %v569_v62  ;;  %v7040_v2 = vld [vmem:[#allocation2 + $0x241] sm:$0xff] }
  0x47   : > { %v7038_v1 = vpack.i.bf16 %v7018_v59, %v678_v58  ;;  %v7042_v3 = vld [vmem:[#allocation2 + $0x251] sm:$0xff]  ;;  %583 = vst.msk [vmem:[#allocation2 + $0x71] sm:$0xff] %vm327_vm0, %v574_v0  ;;  %v7048_v8 = vld [vmem:[#allocation2 + $0x221] sm:$0xff]  ;;  %584 = vst.msk [vmem:[#allocation2 + $0x81] sm:$0xff] %vm327_vm0, %v575_v4 }
  0x48   : > { %5303 = vrot.lane.b32.xlu1 %v5302_v50, %s6621_s16  ;;  %v7050_v9 = vld [vmem:[#allocation2 + $0x231] sm:$0xff]  ;;  %581 = vst.msk [vmem:[#allocation2 + $0x51] sm:$0xff] %vm327_vm0, %v572_v10  ;;  %582 = vst.msk [vmem:[#allocation2 + $0x61] sm:$0xff] %vm327_vm0, %v573_v11  ;;  %v7062_v7 = vpack.i.bf16 %v7042_v3, %v7040_v2  ;;  %v689_v13 = vld [vmem:[#allocation2 + $0xe0] sm:$0xff] }
  0x49   : > { %5293 = vrot.lane.b32.xlu0 %v5292_v54, %s6621_s16  ;;  %v7070_v5 = vpack.i.bf16 %v7050_v9, %v7048_v8  ;;  %v688_v6 = vld [vmem:[#allocation2 + $0xd0] sm:$0xff]  ;;  %659 = vst.msk [vmem:[#allocation2 + $0x261] sm:$0xff] %vm327_vm0, %v650_v12  ;;  %v687_v16 = vld [vmem:[#allocation2 + $0xc0] sm:$0xff]  ;;  %634 = vst.msk [vmem:[#allocation2 + $0x1c1] sm:$0xff] %vm327_vm0, %v625_v14 }
  0x4a   : > { %v686_v15 = vld [vmem:[#allocation2 + $0xb0] sm:$0xff]  ;;  %v5332_v17 = vpack.i.bf16 %v689_v13, %v688_v6  ;;  %v693_v20 = vld [vmem:[#allocation2 + $0x120] sm:$0xff]  ;;  %v6568_v61 = vld [vmem:[%s9658_s2 + $0x8] sm:$0xff]  }
  0x4b   : > { %v5327_v18 = vpack.i.bf16 %v687_v16, %v686_v15  ;;  %v692_v19 = vld [vmem:[#allocation2 + $0x110] sm:$0xff]  ;;  %v691_v22 = vld [vmem:[#allocation2 + $0x100] sm:$0xff] }
  0x4c   : > { %5313 = vrot.lane.b32.xlu1 %v7030_v63, %s6622_s17  ;;  %v7079_v21 = vld [vmem:[#allocation2 + $0xf0] sm:$0xff]  ;;  %v5342_v23 = vpack.i.bf16 %v693_v20, %v692_v19  ;;  %v697_v26 = vld [vmem:[#allocation2 + $0x41] sm:$0xff]  ;;  %v5412_v19 = vpack.i.bf16 %v6966_v36, %v6999_v51  ;;  %v6571_v20 = vld [vmem:[%s9658_s2 + $0x20] ss:$0 sps:$4 sm:$0xff]  }
  0x4d   : > { %5308 = vrot.lane.b32.xlu0 %v7038_v1, %s6622_s17  ;;  %v5337_v24 = vpack.i.bf16 %v691_v22, %v7079_v21  ;;  %v696_v25 = vld [vmem:[#allocation2 + $0x31] sm:$0xff]  ;;  %v695_v28 = vld [vmem:[#allocation2 + $0x21] sm:$0xff]  ;;  %v7177_v22 = vpack.i.bf16 %v6991_v47, %v6978_v43  ;;  %v5417_v43 = vpack.i.bf16 %v6987_v45, %v6968_v37  ;;  %v7196_v47 = vpack.i.bf16 %v7048_v8, %v7011_v56 }
  0x4e   : > { %v694_v27 = vld [vmem:[#allocation2 + $0x11] sm:$0xff]  ;;  %v701_v30 = vld [vmem:[#allocation2 + $0x81] sm:$0xff]  ;;  %v7085_v31 = vpack.i.bf16 %v697_v26, %v696_v25  ;;  %v7201_v25 = vpack.i.bf16 %v7009_v55, %v7018_v59  ;;  %v7215_v56 = vpack.i.bf16 %v7040_v2, %v7050_v9 }
  0x4f   : > { %v700_v29 = vld [vmem:[#allocation2 + $0x71] sm:$0xff]  ;;  %v7088_v32 = vpack.i.bf16 %v695_v28, %v694_v27  ;;  %v699_v34 = vld [vmem:[#allocation2 + $0x61] sm:$0xff] }
  0x50   : > { %5323 = vrot.lane.b32.xlu1 %v7062_v7, %s6622_s17  ;;  %v7090_v33 = vld [vmem:[#allocation2 + $0x51] sm:$0xff]  ;;  %v705_v38 = vld [vmem:[#allocation2 + $0xe1] sm:$0xff]  ;;  %v7094_v39 = vpack.i.bf16 %v701_v30, %v700_v29 }
  0x51   : > { %5318 = vrot.lane.b32.xlu0 %v7070_v5, %s6622_s17  ;;  %v704_v35 = vld [vmem:[#allocation2 + $0xd1] sm:$0xff]  ;;  %v7099_v40 = vpack.i.bf16 %v699_v34, %v7090_v33  ;;  %v703_v42 = vld [vmem:[#allocation2 + $0xc1] sm:$0xff] }
  0x52   : > { %v702_v41 = vld [vmem:[#allocation2 + $0xb1] sm:$0xff]  ;;  %v709_v48 = vld [vmem:[#allocation2 + $0x121] sm:$0xff]  ;;  %v7103_v49 = vpack.i.bf16 %v705_v38, %v704_v35 }
  0x53   : > { %v708_v44 = vld [vmem:[#allocation2 + $0x111] sm:$0xff]  ;;  %v6567_v50 = vld [vmem:[%s9658_s2] sm:$0xff]   ;;  %v7110_v52 = vpack.i.bf16 %v703_v42, %v702_v41 }
  0x54   : > { %5333 = vrot.lane.b32.xlu1 %v5332_v17, %s6623_s18  ;;  %v706_v53 = vld [vmem:[#allocation2 + $0xf1] sm:$0xff]  ;;  %v707_v54 = vld [vmem:[#allocation2 + $0x101] sm:$0xff]  ;;  %5117 = vmatprep.subr.bf16.mxu0 %v6567_v50  ;;  %v7118_v60 = vpack.i.bf16 %v709_v48, %v708_v44 }
  0x55   : > { %5328 = vrot.lane.b32.xlu0 %v5327_v18, %s6623_s18  ;;  %v7112_v57 = vld [vmem:[#allocation2 + $0x210] sm:$0xff]  ;;  %v7114_v58 = vld [vmem:[#allocation2 + $0x220] sm:$0xff]  ;;  %5118 = vmatpush3.bf16.msra.mxu0 %v6567_v50  ;;  %v7125_v62 = vpack.i.bf16 %v707_v54, %v706_v53  ;;  %v6570_v17 = vld [vmem:[%s9658_s2 + $0x18] sm:$0xff]  }
  0x56   : > { %v7127_v0 = vld [vmem:[#allocation2 + $0x1f0] sm:$0xff]  ;;  %v7129_v4 = vld [vmem:[#allocation2 + $0x200] sm:$0xff]  ;;  %5119 = vmatprep.subr.bf16.mxu0 %v6568_v61  ;;  %v7135_v10 = vpack.i.bf16 %v7114_v58, %v7112_v57 }
  0x57   : > { %v6569_v11 = vld [vmem:[%s9658_s2 + $0x10] sm:$0xff]   ;;  %v7144_v12 = vpack.i.bf16 %v7129_v4, %v7127_v0  ;;  %v717_v13 = vld [vmem:[#allocation2 + $0x260] sm:$0xff] }
  0x58   : > { %5343 = vrot.lane.b32.xlu1 %v5342_v23, %s6623_s18  ;;  %v7146_v6 = vld [vmem:[#allocation2 + $0x250] sm:$0xff]  ;;  %v7150_v15 = vld [vmem:[#allocation2 + $0x240] sm:$0xff] }
  0x59   : > { %5338 = vrot.lane.b32.xlu0 %v5337_v24, %s6623_s18  ;;  %5120 = vmatpush3.bf16.msra.mxu0 %v6568_v61  ;;  %v7148_v14 = vld [vmem:[#allocation2 + $0x230] sm:$0xff]  ;;  %v7155_v16 = vpack.i.bf16 %v717_v13, %v7146_v6  ;;  %v7179_v23 = vld [vmem:[#allocation2 + $0x1c1] sm:$0xff]  ;;  %v1116_v24 = vsel %vm1114_vm5, %v6571_v20, 0 }
  0x5a   : > { %5121 = vmatprep.subr.bf16.mxu0 %v6569_v11  ;;  %v7164_v18 = vpack.i.bf16 %v7150_v15, %v7148_v14  ;;  %v7186_v36 = vpack.i.bf16 %v7179_v23, %v6989_v46  ;;  %v7203_v46 = vld [vmem:[#allocation2 + $0x261] sm:$0xff]  ;;  %v7227_v59 = vld [vmem:[#allocation2 + $0x172] sm:$0xff] }
  0x5b   : > { %v7209_v37 = vpack.i.bf16 %v7203_v46, %v7042_v3  ;;  %v7225_v55 = vld [vmem:[#allocation2 + $0x162] sm:$0xff]  ;;  %v7229_v26 = vld [vmem:[#allocation2 + $0x152] sm:$0xff] }
  0x5c   : > { %5353 = vrot.lane.b32.xlu1 %v7085_v31, %s6624_s19  ;;  %v1244_v3 = vld [vmem:[#allocation2 + $0x142] sm:$0xff]  ;;  %v5472_v2 = vpack.i.bf16 %v7227_v59, %v7225_v55  ;;  %v7244_v28 = vld [vmem:[#allocation2 + $0x192] sm:$0xff] }
  0x5d   : > { %5348 = vrot.lane.b32.xlu0 %v7088_v32, %s6624_s19  ;;  %5122 = vmatpush3.bf16.msra.mxu0 %v6569_v11  ;;  %v7238_v9 = vld [vmem:[#allocation2 + $0x1a2] sm:$0xff]  ;;  %v1270_v29 = vld [vmem:[#allocation2 + $0x32] sm:$0xff] }
  0x5e   : > { %5123 = vmatprep.subr.bf16.mxu0 %v6570_v17  ;;  %v7242_v27 = vld [vmem:[#allocation2 + $0x182] sm:$0xff]  ;;  %v1268_v34 = vld [vmem:[#allocation2 + $0x12] sm:$0xff] }
  0x5f   : > { %v1271_v30 = vld [vmem:[#allocation2 + $0x42] sm:$0xff]  ;;  %v1274_v44 = vld [vmem:[#allocation2 + $0x72] sm:$0xff] }
  0x60   : > { %5363 = vrot.lane.b32.xlu1 %v7094_v39, %s6624_s19  ;;  %v1269_v35 = vld [vmem:[#allocation2 + $0x22] sm:$0xff]  ;;  %v7268_v38 = vpack.i.bf16 %v1271_v30, %v1270_v29  ;;  %v1272_v50 = vld [vmem:[#allocation2 + $0x52] sm:$0xff] }
  0x61   : > { %5358 = vrot.lane.b32.xlu0 %v7099_v40, %s6624_s19  ;;  %5124 = vmatpush3.bf16.msra.mxu0 %v6570_v17  ;;  %v6572_v41 = vld [vmem:[%s9658_s2] sm:$0xff]   ;;  %v7275_v42 = vpack.i.bf16 %v1269_v35, %v1268_v34  ;;  %v6573_v61 = vld [vmem:[%s9658_s2 + $0x8] sm:$0xff]   ;;  %v7384_v35 = vld [vmem:[#allocation2 + $0x251] sm:$0xff] }
  0x62   : > { %5261 = vmatprep.subr.msk.bf16.mxu0 %vm1114_vm5, %v6571_v20  ;;  %9712 = vst [vmem:[#allocation4_spill] sm:$0xff] %v7268_v38  ;;  %v1275_v48 = vld [vmem:[#allocation2 + $0x82] sm:$0xff]  ;;  %5135 = vmatprep.subr.bf16.mxu1 %v6572_v41  ;;  %v7293_v20 = vld [vmem:[#allocation2 + $0x191] sm:$0xff] }
  0x63   : > { %9713 = vst [vmem:[#allocation5_spill] sm:$0xff] %v7275_v42  ;;  %v1273_v53 = vld [vmem:[#allocation2 + $0x62] sm:$0xff]  ;;  %5136 = vmatpush3.bf16.msra.mxu1 %v6572_v41  ;;  %v5542_v54 = vpack.i.bf16 %v1275_v48, %v1274_v44  ;;  %v1817_v41 = vld [vmem:[#allocation2 + $0x231] sm:$0xff] }
  0x64   : > { %5373 = vrot.lane.b32.xlu1 %v7103_v49, %s6625_s22  ;;  %v5537_v11 = vpack.i.bf16 %v1273_v53, %v1272_v50  ;;  %v7284_v13 = vld [vmem:[#allocation2 + $0x181] sm:$0xff]  ;;  %5137 = vmatprep.subr.bf16.mxu1 %v6573_v61 }
  0x65   : > { %5368 = vrot.lane.b32.xlu0 %v7110_v52, %s6625_s22  ;;  %5126 = vmatpush3.bf16.msra.mxu0 %v1116_v24  ;;  %9714 = vst [vmem:[#allocation6_spill] sm:$0xff] %v7284_v13  ;;  %v5552_v17 = vpack.i.bf16 %v7284_v13, %v6999_v51  ;;  %v6575_v24 = vld [vmem:[%s9658_s2 + $0x18] sm:$0xff]   ;;  %v5557_v51 = vpack.i.bf16 %v6987_v45, %v7293_v20  ;;  %v7374_v29 = vld [vmem:[#allocation2 + $0x161] sm:$0xff] }
  0x66   : > { %9717 = vst [vmem:[#allocation9_spill] sm:$0xff] %v7374_v29  ;;  %v7378_v30 = vld [vmem:[#allocation2 + $0x1a1] sm:$0xff] }
  0x67   : > { %5138 = vmatpush3.bf16.msra.mxu1 %v6573_v61  ;;  %v1814_v34 = vld [vmem:[#allocation2 + $0x201] sm:$0xff]  ;;  %v7398_v61 = vld [vmem:[#allocation2 + $0x130] sm:$0xff] }
  0x68   : > { %5383 = vrot.lane.b32.xlu1 %v7118_v60, %s6625_s22  ;;  %v1818_v44 = vld [vmem:[#allocation2 + $0x241] sm:$0xff] }
  0x69   : > { %5378 = vrot.lane.b32.xlu0 %v7125_v62, %s6625_s22  ;;  %v7388_v48 = vld [vmem:[#allocation2 + $0xe0] sm:$0xff] }
  0x6a   : > { %v7390_v50 = vld [vmem:[#allocation2 + $0xc0] sm:$0xff] }
  0x6b   : > { %9718 = vst [vmem:[#allocation10_spill] sm:$0xff] %v7390_v50 }
  0x6c   : > { %5393 = vrot.lane.b32.xlu1 %v7135_v10, %s6626_s29 }
  0x6d   : > { %5388 = vrot.lane.b32.xlu0 %v7144_v12, %s6626_s29 }
  0x70   : > { %5403 = vrot.lane.b32.xlu1 %v7155_v16, %s6626_s29 }
  0x71   : > { %5398 = vrot.lane.b32.xlu0 %v7164_v18, %s6626_s29 }
  0x74   : > { %5413 = vrot.lane.b32.xlu1 %v5412_v19, %s6627_s12  ;;  %v6574_v19 = vld [vmem:[%s9658_s2 + $0x10] sm:$0xff]  }
  0x75   : > { %5408 = vrot.lane.b32.xlu0 %v7177_v22, %s6627_s12  ;;  %5139 = vmatprep.subr.bf16.mxu1 %v6574_v19 }
  0x76   : > { %5140 = vmatpush3.bf16.msra.mxu1 %v6574_v19  ;;  %v7404_v19 = vld [vmem:[#allocation2 + $0x110] sm:$0xff] }
  0x77   : > { %5141 = vmatprep.subr.bf16.mxu1 %v6575_v24 }
  0x78   : > { %5423 = vrot.lane.b32.xlu1 %v7186_v36, %s6627_s12 }
  0x79   : > { %5418 = vrot.lane.b32.xlu0 %v5417_v43, %s6627_s12  ;;  %v6576_v43 = vld [vmem:[%s9658_s2 + $0x20] ss:$0 sps:$4 sm:$0xff]  }
  0x7a   : > { %5142 = vmatpush3.bf16.msra.mxu1 %v6575_v24 }
  0x7b   : > { %5262 = vmatprep.subr.msk.bf16.mxu1 %vm1114_vm5, %v6576_v43 }
  0x7c   : > { %5433 = vrot.lane.b32.xlu1 %v7196_v47, %s6628_s13 }
  0x7d   : > { %5428 = vrot.lane.b32.xlu0 %v7201_v25, %s6628_s13 }
  0x80   : > { %5443 = vrot.lane.b32.xlu1 %v7209_v37, %s6628_s13 }
  0x81   : > { %5438 = vrot.lane.b32.xlu0 %v7215_v56, %s6628_s13 }
  0x84   : > { %5453 = vrot.lane.b32.xlu1 %v7030_v63, %s6621_s16  ;;  %v5467_v63 = vpack.i.bf16 %v7229_v26, %v1244_v3  ;;  %v1673_v3 = vsel %vm1114_vm5, %v6576_v43, 0  ;;  %v1838_v43 = vld [vmem:[#allocation2 + $0x91] sm:$0xff] }
  0x85   : > { %5448 = vrot.lane.b32.xlu0 %v7038_v1, %s6621_s16  ;;  %v7240_v1 = vld [vmem:[#allocation2 + $0x1b2] sm:$0xff]  ;;  %5144 = vmatpush3.bf16.msra.mxu1 %v1673_v3 }
  0x88   : > { %5463 = vrot.lane.b32.xlu1 %v7062_v7, %s6621_s16  ;;  %v5482_v7 = vpack.i.bf16 %v7240_v1, %v7238_v9 }
  0x89   : > { %5458 = vrot.lane.b32.xlu0 %v7070_v5, %s6621_s16  ;;  %v5477_v5 = vpack.i.bf16 %v7244_v28, %v7242_v27 }
  0x8c   : > { %5473 = vrot.lane.b32.xlu1 %v5472_v2, %s6622_s17  ;;  %v5587_v2 = vpack.i.bf16 %v7225_v55, %v7229_v26 }
  0x8d   : > { %5468 = vrot.lane.b32.xlu0 %v5467_v63, %s6622_s17 }
  0x90   : > { %5483 = vrot.lane.b32.xlu1 %v5482_v7, %s6622_s17 }
  0x91   : > { %5478 = vrot.lane.b32.xlu0 %v5477_v5, %s6622_s17  ;;  %v7370_v5 = vld [vmem:[#allocation2 + $0x171] sm:$0xff] }
  0x92   : > { %9715 = vst [vmem:[#allocation7_spill] sm:$0xff] %v7370_v5  ;;  %v7412_v24 = vpack.i.bf16 %v7284_v13, %v7370_v5  ;;  %v7430_v13 = vpack.i.bf16 %v1818_v44, %v1817_v41 }
  0x94   : > { %5493 = vrot.lane.b32.xlu1 %v7085_v31, %s6623_s18 }
  0x95   : > { %5488 = vrot.lane.b32.xlu0 %v7088_v32, %s6623_s18 }
  0x98   : > { %5503 = vrot.lane.b32.xlu1 %v7094_v39, %s6623_s18 }
  0x99   : > { %5498 = vrot.lane.b32.xlu0 %v7099_v40, %s6623_s18 }
  0x9c   : > { %5513 = vrot.lane.b32.xlu1 %v7103_v49, %s6624_s19 }
  0x9d   : > { %5508 = vrot.lane.b32.xlu0 %v7110_v52, %s6624_s19 }
  0xa0   : > { %5523 = vrot.lane.b32.xlu1 %v7118_v60, %s6624_s19 }
  0xa1   : > { %5518 = vrot.lane.b32.xlu0 %v7125_v62, %s6624_s19 }
  0xa4   : > { %5533 = vrot.lane.b32.xlu1 %v7268_v38, %s6625_s22 }
  0xa5   : > { %5528 = vrot.lane.b32.xlu0 %v7275_v42, %s6625_s22 }
  0xa8   : > { %5543 = vrot.lane.b32.xlu1 %v5542_v54, %s6625_s22  ;;  %v7394_v54 = vld [vmem:[#allocation2 + $0xd0] sm:$0xff] }
  0xa9   : > { %5538 = vrot.lane.b32.xlu0 %v5537_v11, %s6625_s22 }
  0xac   : > { %5553 = vrot.lane.b32.xlu1 %v5552_v17, %s6626_s29  ;;  %v7402_v17 = vld [vmem:[#allocation2 + $0x100] sm:$0xff] }
  0xad   : > { %5548 = vrot.lane.b32.xlu0 %v7177_v22, %s6626_s29 }
  0xb0   : > { %5563 = vrot.lane.b32.xlu1 %v7186_v36, %s6626_s29  ;;  %v5592_v36 = vpack.i.bf16 %v7242_v27, %v7227_v59 }
  0xb1   : > { %5558 = vrot.lane.b32.xlu0 %v5557_v51, %s6626_s29 }
  0xb4   : > { %5573 = vrot.lane.b32.xlu1 %v7196_v47, %s6627_s12  ;;  %v1299_v47 = vld [vmem:[#allocation2 + $0x1c2] sm:$0xff] }
  0xb5   : > { %5568 = vrot.lane.b32.xlu0 %v7201_v25, %s6627_s12  ;;  %v5602_v7 = vpack.i.bf16 %v1299_v47, %v7240_v1  ;;  %v1837_v47 = vld [vmem:[#allocation2 + $0x81] sm:$0xff] }
  0xb6   : > { %v7315_v45 = vpop.permute.xlu1 %5298  ;;  %v7454_v38 = vpack.i.bf16 %v1838_v43, %v1837_v47 }
  0xb7   : > { %v7317_v22 = vpop.permute.xlu0 %5288  ;;  %v5301_v3 = vunpack.i.h.bf16 %v7315_v45  ;;  %v5300_v5 = vunpack.i.l.bf16 %v7315_v45 }
  0xb8   : > { %5583 = vrot.lane.b32.xlu1 %v7209_v37, %s6627_s12  ;;  %v5597_v37 = vpack.i.bf16 %v7238_v9, %v7244_v28  ;;  %v5290_v41 = vunpack.i.l.bf16 %v7317_v22 }
  0xb9   : > { %5578 = vrot.lane.b32.xlu0 %v7215_v56, %s6627_s12  ;;  %v994_v43 = vsel %vm327_vm0, %v7114_v58, %v5300_v5 }
  0xba   : > { %v7327_v63 = vpop.permute.xlu1 %5303 }
  0xbb   : > { %v7329_v25 = vpop.permute.xlu0 %5293  ;;  %v5306_v50 = vunpack.i.h.bf16 %v7327_v63 }
  0xbc   : > { %5593 = vrot.lane.b32.xlu1 %v5592_v36, %s6628_s13  ;;  %v1831_v36 = vld [vmem:[#allocation2 + $0x21] sm:$0xff]  ;;  %v5295_v45 = vunpack.i.l.bf16 %v7329_v25 }
  0xbd   : > { %5588 = vrot.lane.b32.xlu0 %v5587_v2, %s6628_s13  ;;  %v1832_v2 = vld [vmem:[#allocation2 + $0x31] sm:$0xff] }
  0xbe   : > { %v7336_v59 = vpop.permute.xlu1 %5313 }
  0xbf   : > { %v7338_v56 = vpop.permute.xlu0 %5308 }
  0xc0   : > { %5603 = vrot.lane.b32.xlu1 %v5602_v7, %s6628_s13 }
  0xc1   : > { %5598 = vrot.lane.b32.xlu0 %v5597_v37, %s6628_s13  ;;  %v5305_v37 = vunpack.i.l.bf16 %v7327_v63 }
  0xc2   : > { %v7342_v55 = vpop.permute.xlu1 %5323 }
  0xc3   : > { %v7344_v26 = vpop.permute.xlu0 %5318  ;;  %v5326_v58 = vunpack.i.h.bf16 %v7342_v55  ;;  %v5325_v5 = vunpack.i.l.bf16 %v7342_v55 }
  0xc4   : > { %5613 = vrot.lane.b32.xlu1 %v7085_v31, %s6621_s16 }
  0xc5   : > { %5608 = vrot.lane.b32.xlu0 %v7088_v32, %s6621_s16 }
  0xc6   : > { %v7350_v1 = vpop.permute.xlu1 %5333 }
  0xc7   : > { %v7352_v9 = vpop.permute.xlu0 %5328 }
  0xc8   : > { %5623 = vrot.lane.b32.xlu1 %v7094_v39, %s6621_s16  ;;  %v7372_v39 = vld [vmem:[#allocation2 + $0x151] sm:$0xff] }
  0xc9   : > { %5618 = vrot.lane.b32.xlu0 %v7099_v40, %s6621_s16  ;;  %9716 = vst [vmem:[#allocation8_spill] sm:$0xff] %v7372_v39  ;;  %v7376_v40 = vld [vmem:[#allocation2 + $0x1b1] sm:$0xff]  ;;  %v7416_v51 = vpack.i.bf16 %v7374_v29, %v7372_v39  ;;  %v1835_v39 = vld [vmem:[#allocation2 + $0x61] sm:$0xff] }
  0xca   : > { %v7358_v27 = vpop.permute.xlu1 %5343  ;;  %v1836_v29 = vld [vmem:[#allocation2 + $0x71] sm:$0xff] }
  0xcb   : > { %v7360_v28 = vpop.permute.xlu0 %5338 }
  0xcc   : > { %5633 = vrot.lane.b32.xlu1 %v7103_v49, %s6622_s17  ;;  %v7382_v49 = vld [vmem:[#allocation2 + $0x211] sm:$0xff] }
  0xcd   : > { %5628 = vrot.lane.b32.xlu0 %v7110_v52, %s6622_s17  ;;  %v1813_v52 = vld [vmem:[#allocation2 + $0x1f1] sm:$0xff] }
  0xce   : > { %v7366_v31 = vpop.permute.xlu1 %5353  ;;  %v7426_v7 = vpack.i.bf16 %v1814_v34, %v1813_v52  ;;  %v5291_v34 = vunpack.i.h.bf16 %v7317_v22  ;;  %v7456_v22 = vpack.i.bf16 %v1836_v29, %v1835_v39  ;;  %v5316_v39 = vunpack.i.h.bf16 %v7336_v59 }
  0xcf   : > { %v7368_v32 = vpop.permute.xlu0 %5348  ;;  %v5315_v29 = vunpack.i.l.bf16 %v7336_v59  ;;  %v5321_v59 = vunpack.i.h.bf16 %v7344_v26 }
  0xd0   : > { %5643 = vrot.lane.b32.xlu1 %v7118_v60, %s6622_s17  ;;  %v7396_v60 = vld [vmem:[#allocation2 + $0x120] sm:$0xff]  ;;  %v991_v63 = vsel %vm327_vm0, %v7127_v0, %v5291_v34  ;;  %v997_v0 = vsel %vm327_vm0, %v7146_v6, %v5306_v50  ;;  %v5336_v34 = vunpack.i.h.bf16 %v7350_v1  ;;  %v5335_v6 = vunpack.i.l.bf16 %v7350_v1 }
  0xd1   : > { %5638 = vrot.lane.b32.xlu0 %v7125_v62, %s6622_s17  ;;  %9719 = vst [vmem:[#allocation11_spill] sm:$0xff] %v7396_v60  ;;  %v7406_v62 = vld [vmem:[#allocation2 + $0x41] sm:$0xff]  ;;  %v5296_v60 = vunpack.i.h.bf16 %v7329_v25 }
  0xd2   : > { %v7392_v53 = vpop.permute.xlu1 %5363  ;;  %v5732_v52 = vpack.i.bf16 %v7090_v33, %v7406_v62 }
  0xd3   : > { %v7400_v11 = vpop.permute.xlu0 %5358  ;;  %v993_v47 = vsel %vm327_vm0, %v7112_v57, %v5296_v60  ;;  %v5331_v60 = vunpack.i.h.bf16 %v7352_v9 }
  0xd4   : > { %5653 = vrot.lane.b32.xlu1 %v7135_v10, %s6623_s18  ;;  %v662_v10 = vld [vmem:[#allocation2 + $0x1e0] sm:$0xff] }
  0xd5   : > { %5648 = vrot.lane.b32.xlu0 %v7144_v12, %s6623_s18  ;;  %v7452_v12 = vpack.i.bf16 %v1832_v2, %v1831_v36  ;;  %v990_v25 = vsel %vm327_vm0, %v662_v10, %v5290_v41  ;;  %v5311_v2 = vunpack.i.h.bf16 %v7338_v56  ;;  %v992_v10 = vsel %vm327_vm0, %v7129_v4, %v5295_v45 }
  0xd6   : > { %v7434_v42 = vpop.permute.xlu1 %5373  ;;  %v1001_v55 = vsel %vm998_vm6, %v992_v10, %v5315_v29  ;;  %v5330_v4 = vunpack.i.l.bf16 %v7352_v9  ;;  %v1006_v41 = vsel %vm998_vm6, %v997_v0, %v5326_v58  ;;  %v9720_v29 = vpack.i.bf16 %v7179_v23, %v7376_v40  ;;  %v7518_v9 = vld [vmem:[%s9658_s2] sm:$0xff]  }
  0xd7   : > { %v7442_v44 = vpop.permute.xlu0 %5368  ;;  %v1000_v57 = vsel %vm998_vm6, %v991_v63, %v5311_v2  ;;  %v5346_v63 = vunpack.i.h.bf16 %v7358_v27  ;;  %v5341_v2 = vunpack.i.h.bf16 %v7360_v28  ;;  %v1010_v23 = vsel %vm1007_vm7, %v1001_v55, %v5335_v6  ;;  %5153 = vmatprep.subr.bf16.mxu0 %v7518_v9 }
  0xd8   : > { %5663 = vrot.lane.b32.xlu1 %v7155_v16, %s6623_s18  ;;  %v995_v16 = vsel %vm327_vm0, %v7148_v14, %v5301_v3  ;;  %v5320_v3 = vunpack.i.l.bf16 %v7344_v26  ;;  %v1002_v26 = vsel %vm998_vm6, %v993_v47, %v5316_v39  ;;  %v5356_v58 = vunpack.i.h.bf16 %v7366_v31 }
  0xd9   : > { %5658 = vrot.lane.b32.xlu0 %v7164_v18, %s6623_s18  ;;  %v5310_v18 = vunpack.i.l.bf16 %v7338_v56  ;;  %v996_v56 = vsel %vm327_vm0, %v7150_v15, %v5305_v37  ;;  %v1004_v39 = vsel %vm998_vm6, %v995_v16, %v5321_v59  ;;  %v5340_v16 = vunpack.i.l.bf16 %v7360_v28 }
  0xda   : > { %v7470_v36 = vpop.permute.xlu1 %5383  ;;  %v1005_v45 = vsel %vm998_vm6, %v996_v56, %v5325_v5  ;;  %v1003_v1 = vsel %vm998_vm6, %v994_v43, %v5320_v3  ;;  %v9721_v43 = vpack.i.bf16 %v7378_v30, %v7293_v20  ;;  %v5355_v5 = vunpack.i.l.bf16 %v7366_v31 }
  0xdb   : > { %v7477_v14 = vpop.permute.xlu0 %5378  ;;  %v999_v15 = vsel %vm998_vm6, %v990_v25, %v5310_v18  ;;  %v5345_v25 = vunpack.i.l.bf16 %v7358_v27  ;;  %v1011_v18 = vsel %vm1007_vm7, %v1002_v26, %v5336_v34  ;;  %v1009_v27 = vsel %vm1007_vm7, %v1000_v57, %v5331_v60 }
  0xdc   : > { %5673 = vrot.lane.b32.xlu1 %v7412_v24, %s6624_s19  ;;  %v1008_v28 = vsel %vm1007_vm7, %v999_v15, %v5330_v4  ;;  %v5351_v3 = vunpack.i.h.bf16 %v7368_v32  ;;  %v5350_v0 = vunpack.i.l.bf16 %v7368_v32  ;;  %v5366_v47 = vunpack.i.h.bf16 %v7392_v53 }
  0xdd   : > { %5668 = vrot.lane.b32.xlu0 %v7416_v51, %s6624_s19  ;;  %v5365_v10 = vunpack.i.l.bf16 %v7392_v53  ;;  %v5361_v31 = vunpack.i.h.bf16 %v7400_v11  ;;  %v5360_v55 = vunpack.i.l.bf16 %v7400_v11  ;;  %v9722_v26 = vpack.i.bf16 %v7048_v8, %v7382_v49 }
  0xde   : > { %v7499_v50 = vpop.permute.xlu1 %5393  ;;  %v1014_v34 = vsel %vm1007_vm7, %v1005_v45, %v5345_v25  ;;  %v1015_v32 = vsel %vm1007_vm7, %v1006_v41, %v5346_v63  ;;  %v1013_v6 = vsel %vm1007_vm7, %v1004_v39, %v5341_v2  ;;  %v1012_v15 = vsel %vm1007_vm7, %v1003_v1, %v5340_v16 }
  0xdf   : > { %v7505_v37 = vpop.permute.xlu0 %5388  ;;  %v1019_v53 = vsel %vm1016_vm8, %v1010_v23, %v5355_v5  ;;  %v1020_v11 = vsel %vm1016_vm8, %v1011_v18, %v5356_v58  ;;  %v5376_v57 = vunpack.i.h.bf16 %v7434_v42  ;;  %v5375_v8 = vunpack.i.l.bf16 %v7434_v42 }
  0xe0   : > { %5683 = vrot.lane.b32.xlu1 %v9720_v29, %s6624_s19  ;;  %v1018_v4 = vsel %vm1016_vm8, %v1009_v27, %v5351_v3  ;;  %v1017_v41 = vsel %vm1016_vm8, %v1008_v28, %v5350_v0  ;;  %v5371_v45 = vunpack.i.h.bf16 %v7442_v44  ;;  %v5370_v39 = vunpack.i.l.bf16 %v7442_v44 }
  0xe1   : > { %5678 = vrot.lane.b32.xlu0 %v9721_v43, %s6624_s19  ;;  %v7564_v29 = vsel %vm1016_vm8, %v1014_v34, %v5365_v10  ;;  %v7567_v63 = vsel %vm1016_vm8, %v1015_v32, %v5366_v47  ;;  %v1022_v25 = vsel %vm1016_vm8, %v1013_v6, %v5361_v31  ;;  %v1021_v42 = vsel %vm1016_vm8, %v1012_v15, %v5360_v55  ;;  %v9725_v15 = vld [vmem:[#allocation10_spill] sm:$0xff] }
  0xe2   : > { %v7532_v59 = vpop.permute.xlu1 %5403  ;;  %v9723_v2 = vpack.i.bf16 %v7203_v46, %v7384_v35  ;;  %v5381_v16 = vunpack.i.h.bf16 %v7477_v14  ;;  %v5380_v44 = vunpack.i.l.bf16 %v7477_v14  ;;  %v5396_v43 = vunpack.i.h.bf16 %v7499_v50 }
  0xe3   : > { %v7539_v56 = vpop.permute.xlu0 %5398  ;;  %v5395_v23 = vunpack.i.l.bf16 %v7499_v50  ;;  %v1028_v18 = vsel %vm1025_vm9, %v1019_v53, %v5375_v8  ;;  %v1029_v58 = vsel %vm1025_vm9, %v1020_v11, %v5376_v57  ;;  %v5391_v5 = vunpack.i.h.bf16 %v7505_v37 }
  0xe4   : > { %5693 = vrot.lane.b32.xlu1 %v9722_v26, %s6625_s22  ;;  %v5390_v46 = vunpack.i.l.bf16 %v7505_v37  ;;  %v1026_v14 = vsel %vm1025_vm9, %v1017_v41, %v5370_v39  ;;  %v1027_v28 = vsel %vm1025_vm9, %v1018_v4, %v5371_v45  ;;  %v5386_v47 = vunpack.i.h.bf16 %v7470_v36 }
  0xe5   : > { %5688 = vrot.lane.b32.xlu0 %v7426_v7, %s6625_s22  ;;  %v5385_v10 = vunpack.i.l.bf16 %v7470_v36  ;;  %v9724_v37 = vpack.i.bf16 %v7079_v21, %v7388_v48  ;;  %v1030_v26 = vsel %vm1025_vm9, %v1021_v42, %v5380_v44  ;;  %v1031_v34 = vsel %vm1025_vm9, %v1022_v25, %v5381_v16 }
  0xe6   : > { %v5414_v60 = vpop.permute.xlu1 %5413  ;;  %v1037_v32 = vsel %vm1034_vm10, %v1028_v18, %v5395_v23  ;;  %v1038_v6 = vsel %vm1034_vm10, %v1029_v58, %v5396_v43  ;;  %v9726_v53 = vpack.i.bf16 %v7394_v54, %v9725_v15  ;;  %v5401_v36 = vunpack.i.h.bf16 %v7539_v56  ;;  %v9727_v54 = vld [vmem:[#allocation11_spill] sm:$0xff] }
  0xe7   : > { %v5409_v1 = vpop.permute.xlu0 %5408  ;;  %v5416_v3 = vunpack.i.h.bf16 %v5414_v60  ;;  %v5415_v50 = vunpack.i.l.bf16 %v5414_v60  ;;  %v5400_v11 = vunpack.i.l.bf16 %v7539_v56  ;;  %v1035_v21 = vsel %vm1034_vm10, %v1026_v14, %v5390_v46 }
  0xe8   : > { %5703 = vrot.lane.b32.xlu1 %v9723_v2, %s6625_s22  ;;  %v5411_v31 = vunpack.i.h.bf16 %v5409_v1  ;;  %v5410_v55 = vunpack.i.l.bf16 %v5409_v1  ;;  %v1036_v48 = vsel %vm1034_vm10, %v1027_v28, %v5391_v5  ;;  %v9728_v25 = vpack.i.bf16 %v7398_v61, %v9727_v54  ;;  %v7678_v54 = vld [vmem:[#allocation2 + $0x101] sm:$0xff] }
  0xe9   : > { %5698 = vrot.lane.b32.xlu0 %v7430_v13, %s6625_s22  ;;  %v1046_v8 = vsel %vm1043_vm11, %v1037_v32, %v5415_v50  ;;  %v1047_v60 = vsel %vm1043_vm11, %v1038_v6, %v5416_v3  ;;  %v9729_v23 = vpack.i.bf16 %v7404_v19, %v7402_v17  ;;  %v5406_v18 = vunpack.i.h.bf16 %v7532_v59  ;;  %v7641_v6 = vld [vmem:[#allocation2 + $0xf1] sm:$0xff] }
  0xea   : > { %v7585_v27 = vpop.permute.xlu1 %5423  ;;  %v1044_v56 = vsel %vm1043_vm11, %v1035_v21, %v5410_v55  ;;  %v1045_v42 = vsel %vm1043_vm11, %v1036_v48, %v5411_v31  ;;  %v5405_v14 = vunpack.i.l.bf16 %v7532_v59  ;;  %v1039_v28 = vsel %vm1034_vm10, %v1030_v26, %v5400_v11  ;;  %v6578_v59 = vld [vmem:[%s9658_s2 + $0x8] sm:$0xff]  }
  0xeb   : > { %v5419_v0 = vpop.permute.xlu0 %5418  ;;  %v1040_v3 = vsel %vm1034_vm10, %v1031_v34, %v5401_v36  ;;  %v5426_v31 = vunpack.i.h.bf16 %v7585_v27  ;;  %v5425_v17 = vunpack.i.l.bf16 %v7585_v27  ;;  %v1841_v27 = vld [vmem:[#allocation2 + $0xe1] sm:$0xff]  ;;  %v1032_v33 = vsel %vm1025_vm9, %v7564_v29, %v5385_v10 }
  0xec   : > { %5713 = vrot.lane.b32.xlu1 %v9724_v37, %s6626_s29  ;;  %v5421_v2 = vunpack.i.h.bf16 %v5419_v0  ;;  %v5420_v16 = vunpack.i.l.bf16 %v5419_v0  ;;  %v1839_v11 = vld [vmem:[#allocation2 + $0xc1] sm:$0xff]  ;;  %v1041_v21 = vsel %vm1034_vm10, %v1032_v33, %v5405_v14  ;;  %v7662_v10 = vpack.i.bf16 %v7641_v6, %v1841_v27 }
  0xed   : > { %5708 = vrot.lane.b32.xlu0 %v9726_v53, %s6626_s29  ;;  %v2361_v33 = vld [vmem:[#allocation2 + $0x162] sm:$0xff] }
  0xee   : > { %v5434_v57 = vpop.permute.xlu1 %5433  ;;  %v1048_v37 = vsel %vm1043_vm11, %v1039_v28, %v5420_v16  ;;  %v1049_v26 = vsel %vm1043_vm11, %v1040_v3, %v5421_v2  ;;  %v6580_v16 = vld [vmem:[%s9658_s2 + $0x18] sm:$0xff]   ;;  %v7720_v3 = vld [vmem:[%s9658_s2] sm:$0xff]  }
  0xef   : > { %v5436_v4 = vunpack.i.h.bf16 %v5434_v57  ;;  %v5435_v41 = vunpack.i.l.bf16 %v5434_v57  ;;  %v5429_v45 = vpop.permute.xlu0 %5428  ;;  %v1840_v57 = vld [vmem:[#allocation2 + $0xd1] sm:$0xff]  ;;  %5171 = vmatprep.subr.bf16.mxu1 %v7720_v3 }
  0xf0   : > { %v5431_v39 = vunpack.i.h.bf16 %v5429_v45  ;;  %v5430_v1 = vunpack.i.l.bf16 %v5429_v45  ;;  %5723 = vrot.lane.b32.xlu1 %v9728_v25, %s6626_s29  ;;  %v7674_v45 = vld [vmem:[#allocation2 + $0x121] sm:$0xff]  ;;  %v7680_v25 = vld [vmem:[#allocation2 + $0x111] sm:$0xff] }
  0xf1   : > { %v1055_v44 = vsel %vm1052_vm12, %v1046_v8, %v5435_v41  ;;  %v1056_v43 = vsel %vm1052_vm12, %v1047_v60, %v5436_v4  ;;  %5718 = vrot.lane.b32.xlu0 %v9729_v23, %s6626_s29  ;;  %v6579_v60 = vld [vmem:[%s9658_s2 + $0x10] sm:$0xff]  }
  0xf2   : > { %v5444_v58 = vpop.permute.xlu1 %5443  ;;  %v1053_v61 = vsel %vm1052_vm12, %v1044_v56, %v5430_v1  ;;  %v1054_v5 = vsel %vm1052_vm12, %v1045_v42, %v5431_v39  ;;  %v1062_v46 = vpack.c.bf16 %v1056_v43, %v1055_v44  ;;  %v1846_v39 = vld [vmem:[#allocation2 + $0x131] sm:$0xff]  ;;  %v7696_v44 = vpack.i.bf16 %v7680_v25, %v7678_v54 }
  0xf3   : > { %v5439_v50 = vpop.permute.xlu0 %5438  ;;  %v1061_v0 = vpack.c.bf16 %v1054_v5, %v1053_v61  ;;  %v5446_v34 = vunpack.i.h.bf16 %v5444_v58  ;;  %v5445_v32 = vunpack.i.l.bf16 %v5444_v58  ;;  %v7687_v2 = vpack.i.bf16 %v1846_v39, %v7674_v45  ;;  %v2328_v23 = vld [vmem:[#allocation2 + $0xb1] sm:$0xff]  ;;  %v6581_v61 = vld [vmem:[%s9658_s2 + $0x20] ss:$0 sps:$4 sm:$0xff]  }
  0xf4   : > { %v5441_v19 = vunpack.i.h.bf16 %v5439_v50  ;;  %v5440_v55 = vunpack.i.l.bf16 %v5439_v50  ;;  %5733 = vrot.lane.b32.xlu1 %v5732_v52, %s6627_s12  ;;  %v1033_v52 = vsel %vm1025_vm9, %v7567_v63, %v5386_v47  ;;  %v1050_v63 = vsel %vm1043_vm11, %v1041_v21, %v5425_v17  ;;  %9731 = vst [vmem:[#allocation11_spill] sm:$0xff] %v7696_v44  ;;  %v9733_v17 = vld [vmem:[#allocation5_spill] sm:$0xff]  ;;  %v7758_v21 = vld [vmem:[#allocation2 + $0x32] sm:$0xff] }
  0xf5   : > { %5728 = vrot.lane.b32.xlu0 %v7452_v12, %s6627_s12  ;;  %5127 = vmatprep.mubr.msk.bf16.mxu0 %vm1101_vm13, %v1061_v0  ;;  %v1042_v48 = vsel %vm1034_vm10, %v1033_v52, %v5406_v18  ;;  %v1059_v4 = vsel %vm1052_vm12, %v1050_v63, %v5445_v32  ;;  %9730 = vst [vmem:[#allocation10_spill] sm:$0xff] %v7687_v2  ;;  %v2220_v28 = vsel %vm1114_vm5, %v6581_v61, 0  ;;  %v7764_v63 = vld [vmem:[#allocation2 + $0x82] sm:$0xff]  ;;  %v7777_v39 = vld [vmem:[#allocation2 + $0x1b2] sm:$0xff] }
  0xf6   : > { %v1057_v15 = vsel %vm1052_vm12, %v1048_v37, %v5440_v55  ;;  %v1058_v53 = vsel %vm1052_vm12, %v1049_v26, %v5441_v19  ;;  %5128 = vmatmul.mubr.msk.bf16.vlgmr.msra.gmra.mrb[0].mxu0 %vm1101_vm13, %v1062_v46  ;;  %v7650_v36 = vpop.permute.xlu1 %5453  ;;  %v1051_v47 = vsel %vm1043_vm11, %v1042_v48, %v5426_v31  ;;  %v5772_v58 = vpack.i.bf16 %v1841_v27, %v1840_v57  ;;  %v9732_v31 = vld [vmem:[#allocation4_spill] sm:$0xff]  ;;  %v2362_v26 = vld [vmem:[#allocation2 + $0x172] sm:$0xff] }
  0xf7   : > { %v7654_v8 = vpop.permute.xlu0 %5448  ;;  %v1063_v29 = vpack.c.bf16 %v1058_v53, %v1057_v15  ;;  %5154 = vmatpush3.bf16.msra.mxu0 %v7518_v9  ;;  %v1060_v41 = vsel %vm1052_vm12, %v1051_v47, %v5446_v34  ;;  %v7672_v9 = vpack.i.bf16 %v1840_v57, %v1839_v11  ;;  %v5767_v5 = vpack.i.bf16 %v1839_v11, %v2328_v23  ;;  %v2355_v19 = vld [vmem:[#allocation2 + $0x221] sm:$0xff]  ;;  %v2360_v27 = vld [vmem:[#allocation2 + $0x152] sm:$0xff] }
  0xf8   : > { %5743 = vrot.lane.b32.xlu1 %v7454_v38, %s6627_s12  ;;  %5155 = vmatprep.subr.bf16.mxu0 %v6578_v59  ;;  %v1064_v42 = vpack.c.bf16 %v1060_v41, %v1059_v4  ;;  %v5802_v37 = vpack.i.bf16 %v2355_v19, %v7382_v49  ;;  %v2363_v34 = vld [vmem:[#allocation2 + $0x182] sm:$0xff]  ;;  %v7748_v53 = vld [vmem:[#allocation2 + $0x51] sm:$0xff] }
  0xf9   : > { %5738 = vrot.lane.b32.xlu0 %v7456_v22, %s6627_s12  ;;  %5131 = vmatprep.mubr.msk.bf16.mxu0 %vm1101_vm13, %v1063_v29  ;;  %v5812_v15 = vpack.i.bf16 %v2363_v34, %v2362_v26  ;;  %9734 = vst [vmem:[#allocation4_spill] sm:$0xff] %v7748_v53  ;;  %v7750_v49 = vld [vmem:[#allocation2 + $0x42] sm:$0xff]  ;;  %v7760_v48 = vld [vmem:[#allocation2 + $0x72] sm:$0xff]  ;;  %v5450_v26 = vunpack.i.l.bf16 %v7654_v8 }
  0xfa   : > { %v7676_v1 = vpop.permute.xlu1 %5463  ;;  %v7756_v57 = vld [vmem:[#allocation2 + $0x22] sm:$0xff]  ;;  %v7773_v4 = vld [vmem:[#allocation2 + $0x191] sm:$0xff] }
  0xfb   : > { %v7682_v56 = vpop.permute.xlu0 %5458  ;;  %5156 = vmatpush3.bf16.msra.mxu0 %v6578_v59  ;;  %v7768_v47 = vld [vmem:[#allocation2 + $0x1c1] sm:$0xff]  ;;  %v5465_v19 = vunpack.i.l.bf16 %v7676_v1 }
  0xfc   : > { %5753 = vrot.lane.b32.xlu1 %v7662_v10, %s6628_s13  ;;  %5157 = vmatprep.subr.bf16.mxu0 %v6579_v60  ;;  %v7775_v41 = vld [vmem:[#allocation2 + $0x261] sm:$0xff] }
  0xfd   : > { %5748 = vrot.lane.b32.xlu0 %v7672_v9, %s6628_s13 }
  0xfe   : > { %5132 = vmatmul.mubr.msk.bf16.gmra.mrb[4].mxu0 %vm1101_vm13, %v1064_v42  ;;  %v7699_v43 = vpop.permute.xlu1 %5473 }
  0xff   : > { %v7701_v18 = vpop.permute.xlu0 %5468  ;;  %5158 = vmatpush3.bf16.msra.mxu0 %v6579_v60  ;;  %v5822_v60 = vpack.i.bf16 %v7748_v53, %v7406_v62  ;;  %v7788_v62 = vld [vmem:[#allocation2 + $0x192] sm:$0xff]  ;;  %v5476_v23 = vunpack.i.h.bf16 %v7699_v43 }
 0x100   : > { %5763 = vrot.lane.b32.xlu1 %v7687_v2, %s6628_s13  ;;  %5159 = vmatprep.subr.bf16.mxu0 %v6580_v16 }
 0x101   : > { %5758 = vrot.lane.b32.xlu0 %v7696_v44, %s6628_s13  ;;  %v5471_v44 = vunpack.i.h.bf16 %v7701_v18 }
 0x102   : > { %v7710_v46 = vpop.permute.xlu1 %5483 }
 0x103   : > { %v7712_v14 = vpop.permute.xlu0 %5478  ;;  %5160 = vmatpush3.bf16.msra.mxu0 %v6580_v16 }
 0x104   : > { %5773 = vrot.lane.b32.xlu1 %v5772_v58, %s6621_s16  ;;  %5263 = vmatprep.subr.msk.bf16.mxu0 %vm1114_vm5, %v6581_v61  ;;  %v7786_v58 = vld [vmem:[#allocation2 + $0x1c2] sm:$0xff] }
 0x105   : > { %5768 = vrot.lane.b32.xlu0 %v5767_v5, %s6621_s16  ;;  %v7790_v61 = vld [vmem:[#allocation2 + $0x1a2] sm:$0xff]  ;;  %v5456_v5 = vunpack.i.h.bf16 %v7650_v36 }
 0x106   : > { %v7723_v50 = vpop.permute.xlu1 %5493 }
 0x107   : > { %v7726_v0 = vpop.permute.xlu0 %5488  ;;  %5162 = vmatpush3.bf16.msra.mxu0 %v2220_v28  ;;  %v5455_v28 = vunpack.i.l.bf16 %v7650_v36  ;;  %v5461_v36 = vunpack.i.h.bf16 %v7682_v56 }
 0x108   : > { %5783 = vrot.lane.b32.xlu1 %v9732_v31, %s6622_s17 }
 0x109   : > { %5778 = vrot.lane.b32.xlu0 %v9733_v17, %s6622_s17  ;;  %v9736_v17 = vld [vmem:[#allocation9_spill] sm:$0xff] }
 0x10a   : > { %v7732_v55 = vpop.permute.xlu1 %5503 }
 0x10b   : > { %v7734_v59 = vpop.permute.xlu0 %5498 }
 0x10c   : > { %5793 = vrot.lane.b32.xlu1 %v7412_v24, %s6623_s18  ;;  %v5807_v24 = vpack.i.bf16 %v2361_v33, %v2360_v27  ;;  %v1228_v33 = vld [vmem:[#allocation2 + $0x141] sm:$0xff]  ;;  %v5466_v27 = vunpack.i.h.bf16 %v7676_v1 }
 0x10d   : > { %5788 = vrot.lane.b32.xlu0 %v7416_v51, %s6623_s18  ;;  %v7752_v51 = vld [vmem:[#allocation2 + $0x52] sm:$0xff]  ;;  %v9737_v1 = vld [vmem:[#allocation8_spill] sm:$0xff] }
 0x10e   : > { %v7741_v32 = vpop.permute.xlu1 %5513  ;;  %v5842_v42 = vpack.i.bf16 %v7752_v51, %v7750_v49  ;;  %v5475_v49 = vunpack.i.l.bf16 %v7699_v43  ;;  %v5480_v43 = vunpack.i.l.bf16 %v7712_v14 }
 0x10f   : > { %v7743_v52 = vpop.permute.xlu0 %5508 }
 0x110   : > { %5803 = vrot.lane.b32.xlu1 %v5802_v37, %s6624_s19  ;;  %v5451_v37 = vunpack.i.h.bf16 %v7654_v8  ;;  %v1558_v8 = vsel %vm327_vm0, %v9736_v17, %v5455_v28  ;;  %v5485_v28 = vunpack.i.l.bf16 %v7710_v46  ;;  %v5481_v17 = vunpack.i.h.bf16 %v7712_v14 }
 0x111   : > { %5798 = vrot.lane.b32.xlu0 %v7426_v7, %s6624_s19  ;;  %v7766_v7 = vld [vmem:[#allocation2 + $0x62] sm:$0xff]  ;;  %v1566_v14 = vsel %vm998_vm6, %v1558_v8, %v5475_v49  ;;  %v5506_v8 = vunpack.i.h.bf16 %v7732_v55  ;;  %v9739_v49 = vpack.i.bf16 %v7758_v21, %v7756_v57 }
 0x112   : > { %v7754_v11 = vpop.permute.xlu1 %5523  ;;  %v1557_v53 = vsel %vm327_vm0, %v9737_v1, %v5451_v37  ;;  %v1563_v37 = vsel %vm327_vm0, %v7376_v40, %v5466_v27  ;;  %v5495_v27 = vunpack.i.l.bf16 %v7723_v50 }
 0x113   : > { %v7762_v29 = vpop.permute.xlu0 %5518  ;;  %v5526_v21 = vunpack.i.h.bf16 %v7754_v11 }
 0x114   : > { %5813 = vrot.lane.b32.xlu1 %v5812_v15, %s6625_s22  ;;  %v9735_v15 = vld [vmem:[#allocation7_spill] sm:$0xff] }
 0x115   : > { %5808 = vrot.lane.b32.xlu0 %v5807_v24, %s6625_s22  ;;  %v1559_v24 = vsel %vm327_vm0, %v9735_v15, %v5456_v5  ;;  %v5486_v5 = vunpack.i.h.bf16 %v7710_v46 }
 0x116   : > { %v7794_v31 = vpop.permute.xlu1 %5533  ;;  %v1567_v46 = vsel %vm998_vm6, %v1559_v24, %v5476_v23 }
 0x117   : > { %v7802_v34 = vpop.permute.xlu0 %5528 }
 0x118   : > { %5823 = vrot.lane.b32.xlu1 %v5822_v60, %s6626_s29  ;;  %v5460_v60 = vunpack.i.l.bf16 %v7682_v56  ;;  %v1556_v56 = vsel %vm327_vm0, %v1228_v33, %v5450_v26  ;;  %v1562_v26 = vsel %vm327_vm0, %v7378_v30, %v5465_v19  ;;  %v9738_v33 = vld [vmem:[#allocation6_spill] sm:$0xff] }
 0x119   : > { %5818 = vrot.lane.b32.xlu0 %v7452_v12, %s6626_s29  ;;  %v5470_v12 = vunpack.i.l.bf16 %v7701_v18  ;;  %v1561_v18 = vsel %vm327_vm0, %v7293_v20, %v5461_v36  ;;  %v1565_v20 = vsel %vm998_vm6, %v1557_v53, %v5471_v44  ;;  %v5491_v36 = vunpack.i.h.bf16 %v7726_v0 }
 0x11a   : > { %v7829_v16 = vpop.permute.xlu1 %5543  ;;  %v1560_v15 = vsel %vm327_vm0, %v9738_v33, %v5460_v60  ;;  %v5490_v60 = vunpack.i.l.bf16 %v7726_v0  ;;  %v1570_v23 = vsel %vm998_vm6, %v1562_v26, %v5485_v28  ;;  %v5505_v44 = vunpack.i.l.bf16 %v7732_v55 }
 0x11b   : > { %v7836_v2 = vpop.permute.xlu0 %5538  ;;  %v1564_v19 = vsel %vm998_vm6, %v1556_v56, %v5470_v12  ;;  %v1568_v24 = vsel %vm998_vm6, %v1560_v15, %v5480_v43  ;;  %v5501_v53 = vunpack.i.h.bf16 %v7734_v59  ;;  %v5500_v0 = vunpack.i.l.bf16 %v7734_v59 }
 0x11c   : > { %5833 = vrot.lane.b32.xlu1 %v7662_v10, %s6627_s12  ;;  %v5496_v10 = vunpack.i.h.bf16 %v7723_v50  ;;  %v1569_v50 = vsel %vm998_vm6, %v1561_v18, %v5481_v17  ;;  %v1574_v56 = vsel %vm1007_vm7, %v1566_v14, %v5495_v27  ;;  %v1572_v55 = vsel %vm1007_vm7, %v1564_v19, %v5490_v60 }
 0x11d   : > { %5828 = vrot.lane.b32.xlu0 %v7672_v9, %s6627_s12  ;;  %v1571_v9 = vsel %vm998_vm6, %v1563_v37, %v5486_v5  ;;  %v5516_v5 = vunpack.i.h.bf16 %v7741_v32  ;;  %v1573_v17 = vsel %vm1007_vm7, %v1565_v20, %v5491_v36  ;;  %v5511_v59 = vunpack.i.h.bf16 %v7743_v52 }
 0x11e   : > { %v7858_v1 = vpop.permute.xlu1 %5553  ;;  %v1575_v12 = vsel %vm1007_vm7, %v1567_v46, %v5496_v10  ;;  %v5510_v43 = vunpack.i.l.bf16 %v7743_v52  ;;  %v5525_v37 = vunpack.i.l.bf16 %v7754_v11  ;;  %v5521_v26 = vunpack.i.h.bf16 %v7762_v29 }
 0x11f   : > { %v7864_v33 = vpop.permute.xlu0 %5548  ;;  %v9740_v18 = vpack.i.bf16 %v7674_v45, %v7680_v25  ;;  %v1578_v15 = vsel %vm1007_vm7, %v1570_v23, %v5505_v44  ;;  %v1579_v46 = vsel %vm1007_vm7, %v1571_v9, %v5506_v8  ;;  %v1576_v52 = vsel %vm1007_vm7, %v1568_v24, %v5500_v0 }
 0x120   : > { %5843 = vrot.lane.b32.xlu1 %v5842_v42, %s6628_s13  ;;  %v5515_v42 = vunpack.i.l.bf16 %v7741_v32  ;;  %v5520_v32 = vunpack.i.l.bf16 %v7762_v29  ;;  %v1577_v14 = vsel %vm1007_vm7, %v1569_v50, %v5501_v53  ;;  %v9741_v11 = vpack.i.bf16 %v7678_v54, %v7641_v6 }
 0x121   : > { %5838 = vrot.lane.b32.xlu0 %v9739_v49, %s6628_s13  ;;  %v1583_v10 = vsel %vm1016_vm8, %v1575_v12, %v5516_v5  ;;  %v5536_v45 = vunpack.i.h.bf16 %v7794_v31  ;;  %v5535_v25 = vunpack.i.l.bf16 %v7794_v31  ;;  %v1580_v19 = vsel %vm1016_vm8, %v1572_v55, %v5510_v43 }
 0x122   : > { %v7883_v28 = vpop.permute.xlu1 %5563  ;;  %v1582_v29 = vsel %vm1016_vm8, %v1574_v56, %v5515_v42  ;;  %v1581_v20 = vsel %vm1016_vm8, %v1573_v17, %v5511_v59  ;;  %v5531_v36 = vunpack.i.h.bf16 %v7802_v34  ;;  %v5530_v60 = vunpack.i.l.bf16 %v7802_v34 }
 0x123   : > { %v7889_v57 = vpop.permute.xlu0 %5558  ;;  %v7916_v6 = vsel %vm1016_vm8, %v1578_v15, %v5525_v37  ;;  %v7919_v54 = vsel %vm1016_vm8, %v1579_v46, %v5526_v21  ;;  %v1584_v23 = vsel %vm1016_vm8, %v1576_v52, %v5520_v32  ;;  %v1585_v31 = vsel %vm1016_vm8, %v1577_v14, %v5521_v26 }
 0x124   : > { %5853 = vrot.lane.b32.xlu1 %v9740_v18, %s6621_s16  ;;  %v9742_v24 = vpack.i.bf16 %v7764_v63, %v7760_v48  ;;  %v5541_v50 = vunpack.i.h.bf16 %v7836_v2  ;;  %v5540_v34 = vunpack.i.l.bf16 %v7836_v2  ;;  %v5556_v8 = vunpack.i.h.bf16 %v7858_v1 }
 0x125   : > { %5848 = vrot.lane.b32.xlu0 %v9741_v11, %s6621_s16  ;;  %v5555_v44 = vunpack.i.l.bf16 %v7858_v1  ;;  %v9743_v53 = vpack.i.bf16 %v7766_v7, %v7752_v51  ;;  %v1590_v0 = vsel %vm1025_vm9, %v1582_v29, %v5535_v25  ;;  %v1591_v49 = vsel %vm1025_vm9, %v1583_v10, %v5536_v45 }
 0x126   : > { %v5574_v27 = vpop.permute.xlu1 %5573  ;;  %v5551_v56 = vunpack.i.h.bf16 %v7864_v33  ;;  %v5550_v12 = vunpack.i.l.bf16 %v7864_v33  ;;  %v1588_v2 = vsel %vm1025_vm9, %v1580_v19, %v5530_v60  ;;  %v1589_v42 = vsel %vm1025_vm9, %v1581_v20, %v5531_v36 }
 0x127   : > { %v5569_v9 = vpop.permute.xlu0 %5568  ;;  %v5576_v1 = vunpack.i.h.bf16 %v5574_v27  ;;  %v5575_v55 = vunpack.i.l.bf16 %v5574_v27  ;;  %v5546_v51 = vunpack.i.h.bf16 %v7829_v16  ;;  %v5545_v59 = vunpack.i.l.bf16 %v7829_v16 }
 0x128   : > { %5863 = vrot.lane.b32.xlu1 %v9742_v24, %s6622_s17  ;;  %v5571_v43 = vunpack.i.h.bf16 %v5569_v9  ;;  %v5570_v21 = vunpack.i.l.bf16 %v5569_v9  ;;  %v9744_v37 = vpack.i.bf16 %v7768_v47, %v7376_v40  ;;  %v1592_v33 = vsel %vm1025_vm9, %v1584_v23, %v5540_v34 }
 0x129   : > { %5858 = vrot.lane.b32.xlu0 %v9743_v53, %s6622_s17  ;;  %v1593_v26 = vsel %vm1025_vm9, %v1585_v31, %v5541_v50  ;;  %v1598_v32 = vsel %vm1034_vm10, %v1590_v0, %v5555_v44  ;;  %v1599_v18 = vsel %vm1034_vm10, %v1591_v49, %v5556_v8  ;;  %v9745_v15 = vpack.i.bf16 %v7378_v30, %v7773_v4 }
 0x12a   : > { %v7939_v5 = vpop.permute.xlu1 %5583  ;;  %v5561_v16 = vunpack.i.h.bf16 %v7889_v57  ;;  %v5560_v46 = vunpack.i.l.bf16 %v7889_v57  ;;  %v1596_v40 = vsel %vm1034_vm10, %v1588_v2, %v5550_v12  ;;  %v1597_v47 = vsel %vm1034_vm10, %v1589_v42, %v5551_v56 }
 0x12b   : > { %v5579_v17 = vpop.permute.xlu0 %5578  ;;  %v1606_v14 = vsel %vm1043_vm11, %v1598_v32, %v5575_v55  ;;  %v1607_v11 = vsel %vm1043_vm11, %v1599_v18, %v5576_v1  ;;  %v9746_v30 = vpack.i.bf16 %v7775_v41, %v7384_v35  ;;  %v1604_v4 = vsel %vm1043_vm11, %v1596_v40, %v5570_v21 }
 0x12c   : > { %5873 = vrot.lane.b32.xlu1 %v9744_v37, %s6623_s18  ;;  %v1605_v57 = vsel %vm1043_vm11, %v1597_v47, %v5571_v43  ;;  %v5581_v19 = vunpack.i.h.bf16 %v5579_v17  ;;  %v5580_v20 = vunpack.i.l.bf16 %v5579_v17  ;;  %v5566_v9 = vunpack.i.h.bf16 %v7883_v28 }
 0x12d   : > { %5868 = vrot.lane.b32.xlu0 %v9745_v15, %s6623_s18  ;;  %v5565_v24 = vunpack.i.l.bf16 %v7883_v28  ;;  %v1600_v50 = vsel %vm1034_vm10, %v1592_v33, %v5560_v46  ;;  %v1601_v34 = vsel %vm1034_vm10, %v1593_v26, %v5561_v16  ;;  %v5586_v53 = vunpack.i.h.bf16 %v7939_v5  ;;  %v6583_v28 = vld [vmem:[%s9658_s2 + $0x8] sm:$0xff]   ;;  %v6585_v16 = vld [vmem:[%s9658_s2 + $0x18] sm:$0xff]  }
 0x12e   : > { %v5594_v52 = vpop.permute.xlu1 %5593  ;;  %v9747_v56 = vpack.i.bf16 %v7786_v58, %v7777_v39  ;;  %v1608_v12 = vsel %vm1043_vm11, %v1600_v50, %v5580_v20  ;;  %v1609_v2 = vsel %vm1043_vm11, %v1601_v34, %v5581_v19  ;;  %v1594_v39 = vsel %vm1025_vm9, %v7916_v6, %v5545_v59  ;;  %v6598_v34 = vld [vmem:[#allocation2 + $0xd0] sm:$0xff] }
 0x12f   : > { %v5596_v29 = vunpack.i.h.bf16 %v5594_v52  ;;  %v5595_v10 = vunpack.i.l.bf16 %v5594_v52  ;;  %v5589_v45 = vpop.permute.xlu0 %5588  ;;  %v1595_v58 = vsel %vm1025_vm9, %v7919_v54, %v5546_v51  ;;  %v1602_v21 = vsel %vm1034_vm10, %v1594_v39, %v5565_v24  ;;  %v6584_v51 = vld [vmem:[%s9658_s2 + $0x10] sm:$0xff]   ;;  %v6597_v24 = vld [vmem:[#allocation2 + $0xe0] sm:$0xff] }
 0x130   : > { %v5591_v25 = vunpack.i.h.bf16 %v5589_v45  ;;  %v5590_v27 = vunpack.i.l.bf16 %v5589_v45  ;;  %5883 = vrot.lane.b32.xlu1 %v9746_v30, %s6624_s19  ;;  %v5917_v46 = vpack.i.bf16 %v7760_v48, %v7766_v7 }
 0x131   : > { %v1614_v36 = vsel %vm1052_vm12, %v1606_v14, %v5595_v10  ;;  %v1615_v60 = vsel %vm1052_vm12, %v1607_v11, %v5596_v29  ;;  %5878 = vrot.lane.b32.xlu0 %v7430_v13, %s6624_s19  ;;  %v5585_v13 = vunpack.i.l.bf16 %v7939_v5  ;;  %v9748_v5 = vpack.i.bf16 %v7790_v61, %v7788_v62 }
 0x132   : > { %v5604_v23 = vpop.permute.xlu1 %5603  ;;  %v1612_v31 = vsel %vm1052_vm12, %v1604_v4, %v5590_v27  ;;  %v1613_v35 = vsel %vm1052_vm12, %v1605_v57, %v5591_v25  ;;  %v1621_v41 = vpack.c.bf16 %v1615_v60, %v1614_v36  ;;  %v1603_v62 = vsel %vm1034_vm10, %v1595_v58, %v5566_v9  ;;  %v1773_v9 = vld [vmem:[#allocation2 + $0xb0] sm:$0xff] }
 0x133   : > { %v5599_v8 = vpop.permute.xlu0 %5598  ;;  %v1620_v44 = vpack.c.bf16 %v1613_v35, %v1612_v31  ;;  %v5606_v42 = vunpack.i.h.bf16 %v5604_v23  ;;  %v5605_v1 = vunpack.i.l.bf16 %v5604_v23  ;;  %v1610_v6 = vsel %vm1043_vm11, %v1602_v21, %v5585_v13 }
 0x134   : > { %v5601_v0 = vunpack.i.h.bf16 %v5599_v8  ;;  %v5600_v49 = vunpack.i.l.bf16 %v5599_v8  ;;  %5893 = vrot.lane.b32.xlu1 %v9747_v56, %s6625_s22  ;;  %v1611_v54 = vsel %vm1043_vm11, %v1603_v62, %v5586_v53  ;;  %v6602_v62 = vld [vmem:[#allocation2 + $0x100] sm:$0xff] }
 0x135   : > { %5888 = vrot.lane.b32.xlu0 %v9748_v5, %s6625_s22  ;;  %5145 = vmatprep.mubr.msk.bf16.mxu1 %vm1101_vm13, %v1620_v44  ;;  %v1618_v59 = vsel %vm1052_vm12, %v1610_v6, %v5605_v1  ;;  %v1619_v33 = vsel %vm1052_vm12, %v1611_v54, %v5606_v42  ;;  %v1777_v44 = vld [vmem:[#allocation2 + $0xf0] sm:$0xff] }
 0x136   : > { %v1616_v55 = vsel %vm1052_vm12, %v1608_v12, %v5600_v49  ;;  %v1617_v17 = vsel %vm1052_vm12, %v1609_v2, %v5601_v0  ;;  %5146 = vmatmul.mubr.msk.bf16.vlgmr.msra.gmra.mrb[0].mxu1 %vm1101_vm13, %v1621_v41  ;;  %v8002_v43 = vpop.permute.xlu1 %5613  ;;  %v1623_v18 = vpack.c.bf16 %v1619_v33, %v1618_v59  ;;  %v6599_v49 = vld [vmem:[#allocation2 + $0xc0] sm:$0xff] }
 0x137   : > { %v8006_v61 = vpop.permute.xlu0 %5608  ;;  %v1622_v37 = vpack.c.bf16 %v1617_v17, %v1616_v55  ;;  %5172 = vmatpush3.bf16.msra.mxu1 %v7720_v3  ;;  %v2391_v3 = vld [vmem:[#allocation2 + $0x92] sm:$0xff]  ;;  %v5616_v4 = vunpack.i.h.bf16 %v8002_v43  ;;  %v5615_v57 = vunpack.i.l.bf16 %v8002_v43  ;;  %v6600_v55 = vld [vmem:[#allocation2 + $0x120] sm:$0xff] }
 0x138   : > { %5903 = vrot.lane.b32.xlu1 %v7454_v38, %s6626_s29  ;;  %5173 = vmatprep.subr.bf16.mxu1 %v6583_v28  ;;  %v9749_v38 = vld [vmem:[#allocation10_spill] sm:$0xff]  ;;  %v5922_v15 = vpack.i.bf16 %v2391_v3, %v7764_v63  ;;  %v6586_v63 = vld [vmem:[%s9658_s2 + $0x20] ss:$0 sps:$4 sm:$0xff]   ;;  %v5611_v20 = vunpack.i.h.bf16 %v8006_v61  ;;  %v5610_v36 = vunpack.i.l.bf16 %v8006_v61 }
 0x139   : > { %5898 = vrot.lane.b32.xlu0 %v7456_v22, %s6626_s29  ;;  %5149 = vmatprep.mubr.msk.bf16.mxu1 %vm1101_vm13, %v1622_v37  ;;  %v9750_v22 = vld [vmem:[#allocation11_spill] sm:$0xff]  ;;  %v2765_v48 = vsel %vm1114_vm5, %v6586_v63, 0  ;;  %v2106_v50 = vsel %vm327_vm0, %v6597_v24, %v5616_v4  ;;  %v2105_v8 = vsel %vm327_vm0, %v6598_v34, %v5615_v57  ;;  %v6601_v43 = vld [vmem:[#allocation2 + $0x110] sm:$0xff] }
 0x13a   : > { %v8021_v26 = vpop.permute.xlu1 %5623  ;;  %v2104_v56 = vsel %vm327_vm0, %v6599_v49, %v5611_v20 }
 0x13b   : > { %v8023_v32 = vpop.permute.xlu0 %5618  ;;  %5174 = vmatpush3.bf16.msra.mxu1 %v6583_v28  ;;  %v5626_v23 = vunpack.i.h.bf16 %v8021_v26  ;;  %v5625_v31 = vunpack.i.l.bf16 %v8021_v26  ;;  %v2103_v28 = vsel %vm327_vm0, %v1773_v9, %v5610_v36 }
 0x13c   : > { %5913 = vrot.lane.b32.xlu1 %v9749_v38, %s6627_s12  ;;  %5175 = vmatprep.subr.bf16.mxu1 %v6584_v51  ;;  %v5621_v35 = vunpack.i.h.bf16 %v8023_v32  ;;  %v5620_v41 = vunpack.i.l.bf16 %v8023_v32 }
 0x13d   : > { %5908 = vrot.lane.b32.xlu0 %v9750_v22, %s6627_s12  ;;  %v2110_v17 = vsel %vm327_vm0, %v6600_v55, %v5626_v23  ;;  %v2109_v21 = vsel %vm327_vm0, %v6601_v43, %v5625_v31 }
 0x13e   : > { %5150 = vmatmul.mubr.msk.bf16.gmra.mrb[4].mxu1 %vm1101_vm13, %v1623_v18  ;;  %v5634_v52 = vpop.permute.xlu1 %5633  ;;  %v2108_v61 = vsel %vm327_vm0, %v6602_v62, %v5621_v35  ;;  %v2107_v37 = vsel %vm327_vm0, %v1777_v44, %v5620_v41 }
 0x13f   : > { %v8036_v40 = vpop.permute.xlu0 %5628  ;;  %5176 = vmatpush3.bf16.msra.mxu1 %v6584_v51  ;;  %v5636_v53 = vunpack.i.h.bf16 %v5634_v52  ;;  %v5635_v13 = vunpack.i.l.bf16 %v5634_v52 }
 0x140   : > { %5923 = vrot.lane.b32.xlu1 %v5922_v15, %s6628_s13  ;;  %5177 = vmatprep.subr.bf16.mxu1 %v6585_v16  ;;  %v5631_v12 = vunpack.i.h.bf16 %v8036_v40  ;;  %v5630_v2 = vunpack.i.l.bf16 %v8036_v40 }
 0x141   : > { %5918 = vrot.lane.b32.xlu0 %v5917_v46, %s6628_s13  ;;  %v2113_v6 = vsel %vm998_vm6, %v2105_v8, %v5635_v13  ;;  %v2114_v54 = vsel %vm998_vm6, %v2106_v50, %v5636_v53 }
 0x142   : > { %v8043_v47 = vpop.permute.xlu1 %5643  ;;  %v2111_v3 = vsel %vm998_vm6, %v2103_v28, %v5630_v2  ;;  %v2112_v26 = vsel %vm998_vm6, %v2104_v56, %v5631_v12 }
 0x143   : > { %v8045_v14 = vpop.permute.xlu0 %5638  ;;  %5178 = vmatpush3.bf16.msra.mxu1 %v6585_v16  ;;  %v5646_v1 = vunpack.i.h.bf16 %v8043_v47  ;;  %v5645_v5 = vunpack.i.l.bf16 %v8043_v47 }
 0x144   : > { %5264 = vmatprep.subr.msk.bf16.mxu1 %vm1114_vm5, %v6586_v63  ;;  %v5641_v39 = vunpack.i.h.bf16 %v8045_v14  ;;  %v5640_v58 = vunpack.i.l.bf16 %v8045_v14 }
 0x145   : > { %v2117_v15 = vsel %vm998_vm6, %v2109_v21, %v5645_v5  ;;  %v2118_v16 = vsel %vm998_vm6, %v2110_v17, %v5646_v1 }
 0x146   : > { %v8049_v7 = vpop.permute.xlu1 %5653  ;;  %v2115_v22 = vsel %vm998_vm6, %v2107_v37, %v5640_v58  ;;  %v2116_v46 = vsel %vm998_vm6, %v2108_v61, %v5641_v39 }
 0x147   : > { %v8051_v11 = vpop.permute.xlu0 %5648  ;;  %5180 = vmatpush3.bf16.msra.mxu1 %v2765_v48  ;;  %v5656_v51 = vunpack.i.h.bf16 %v8049_v7  ;;  %v5655_v59 = vunpack.i.l.bf16 %v8049_v7 }
 0x148   : > { %v5651_v32 = vunpack.i.h.bf16 %v8051_v11  ;;  %v5650_v38 = vunpack.i.l.bf16 %v8051_v11 }
 0x149   : > { %v2121_v14 = vsel %vm1007_vm7, %v2113_v6, %v5655_v59  ;;  %v2122_v48 = vsel %vm1007_vm7, %v2114_v54, %v5656_v51 }
 0x14a   : > { %v8053_v29 = vpop.permute.xlu1 %5663  ;;  %v2119_v57 = vsel %vm1007_vm7, %v2111_v3, %v5650_v38  ;;  %v2120_v20 = vsel %vm1007_vm7, %v2112_v26, %v5651_v32 }
 0x14b   : > { %v8055_v10 = vpop.permute.xlu0 %5658  ;;  %v5666_v52 = vunpack.i.h.bf16 %v8053_v29  ;;  %v5665_v40 = vunpack.i.l.bf16 %v8053_v29 }
 0x14c   : > { %v5661_v63 = vunpack.i.h.bf16 %v8055_v10  ;;  %v5660_v47 = vunpack.i.l.bf16 %v8055_v10 }
 0x14d   : > { %v2125_v35 = vsel %vm1007_vm7, %v2117_v15, %v5665_v40  ;;  %v2126_v41 = vsel %vm1007_vm7, %v2118_v16, %v5666_v52 }
 0x14e   : > { %v8057_v45 = vpop.permute.xlu1 %5673  ;;  %v2123_v24 = vsel %vm1007_vm7, %v2115_v22, %v5660_v47  ;;  %v2124_v50 = vsel %vm1007_vm7, %v2116_v46, %v5661_v63 }
 0x14f   : > { %v8059_v25 = vpop.permute.xlu0 %5668  ;;  %v5676_v7 = vunpack.i.h.bf16 %v8057_v45  ;;  %v5675_v11 = vunpack.i.l.bf16 %v8057_v45 }
 0x150   : > { %v5671_v29 = vunpack.i.h.bf16 %v8059_v25  ;;  %v5670_v36 = vunpack.i.l.bf16 %v8059_v25 }
 0x151   : > { %v2129_v25 = vsel %vm1016_vm8, %v2121_v14, %v5675_v11  ;;  %v2130_v34 = vsel %vm1016_vm8, %v2122_v48, %v5676_v7 }
 0x152   : > { %v8061_v27 = vpop.permute.xlu1 %5683  ;;  %v2127_v53 = vsel %vm1016_vm8, %v2119_v57, %v5670_v36 }
 0x153   : > { %v8063_v30 = vpop.permute.xlu0 %5678  ;;  %v5686_v10 = vunpack.i.h.bf16 %v8061_v27  ;;  %v5685_v23 = vunpack.i.l.bf16 %v8061_v27 }
 0x154   : > { %v5681_v31 = vunpack.i.h.bf16 %v8063_v30  ;;  %v5680_v45 = vunpack.i.l.bf16 %v8063_v30  ;;  %v2128_v30 = vsel %vm1016_vm8, %v2120_v20, %v5671_v29 }
 0x155   : > { %v8144_v28 = vsel %vm1016_vm8, %v2125_v35, %v5685_v23  ;;  %v8147_v12 = vsel %vm1016_vm8, %v2126_v41, %v5686_v10 }
 0x156   : > { %v8067_v19 = vpop.permute.xlu1 %5693  ;;  %v2131_v2 = vsel %vm1016_vm8, %v2123_v24, %v5680_v45 }
 0x157   : > { %v8071_v60 = vpop.permute.xlu0 %5688  ;;  %v5696_v8 = vunpack.i.h.bf16 %v8067_v19  ;;  %v5695_v27 = vunpack.i.l.bf16 %v8067_v19  ;;  %v2132_v19 = vsel %vm1016_vm8, %v2124_v50, %v5681_v31 }
 0x158   : > { %v5691_v13 = vunpack.i.h.bf16 %v8071_v60  ;;  %v5690_v49 = vunpack.i.l.bf16 %v8071_v60 }
 0x159   : > { %v2137_v60 = vsel %vm1025_vm9, %v2129_v25, %v5695_v27  ;;  %v2138_v55 = vsel %vm1025_vm9, %v2130_v34, %v5696_v8 }
 0x15a   : > { %v8079_v0 = vpop.permute.xlu1 %5703  ;;  %v2135_v62 = vsel %vm1025_vm9, %v2127_v53, %v5690_v49  ;;  %v2136_v61 = vsel %vm1025_vm9, %v2128_v30, %v5691_v13 }
 0x15b   : > { %v8085_v42 = vpop.permute.xlu0 %5698  ;;  %v5706_v54 = vunpack.i.h.bf16 %v8079_v0  ;;  %v5705_v51 = vunpack.i.l.bf16 %v8079_v0 }
 0x15c   : > { %v5701_v1 = vunpack.i.h.bf16 %v8085_v42  ;;  %v5700_v5 = vunpack.i.l.bf16 %v8085_v42 }
 0x15e   : > { %v8099_v33 = vpop.permute.xlu1 %5713  ;;  %v2139_v3 = vsel %vm1025_vm9, %v2131_v2, %v5700_v5  ;;  %v2140_v26 = vsel %vm1025_vm9, %v2132_v19, %v5701_v1 }
 0x15f   : > { %v8105_v18 = vpop.permute.xlu0 %5708  ;;  %v5716_v39 = vunpack.i.h.bf16 %v8099_v33  ;;  %v5715_v58 = vunpack.i.l.bf16 %v8099_v33 }
 0x160   : > { %v5711_v17 = vunpack.i.h.bf16 %v8105_v18  ;;  %v5710_v43 = vunpack.i.l.bf16 %v8105_v18 }
 0x161   : > { %v2145_v32 = vsel %vm1034_vm10, %v2137_v60, %v5715_v58  ;;  %v2146_v38 = vsel %vm1034_vm10, %v2138_v55, %v5716_v39 }
 0x162   : > { %v8119_v4 = vpop.permute.xlu1 %5723  ;;  %v2143_v18 = vsel %vm1034_vm10, %v2135_v62, %v5710_v43  ;;  %v2144_v15 = vsel %vm1034_vm10, %v2136_v61, %v5711_v17 }
 0x163   : > { %v8125_v9 = vpop.permute.xlu0 %5718  ;;  %v5725_v35 = vunpack.i.l.bf16 %v8119_v4 }
 0x164   : > { %v5721_v16 = vunpack.i.h.bf16 %v8125_v9  ;;  %v5720_v22 = vunpack.i.l.bf16 %v8125_v9  ;;  %v5726_v9 = vunpack.i.h.bf16 %v8119_v4  ;;  %v2141_v4 = vsel %vm1025_vm9, %v8144_v28, %v5705_v51 }
 0x165   : > { %v2149_v5 = vsel %vm1034_vm10, %v2141_v4, %v5725_v35 }
 0x166   : > { %v5734_v44 = vpop.permute.xlu1 %5733  ;;  %v2147_v41 = vsel %vm1034_vm10, %v2139_v3, %v5720_v22  ;;  %v2148_v24 = vsel %vm1034_vm10, %v2140_v26, %v5721_v16  ;;  %v2321_v16 = vld [vmem:[#allocation2 + $0x21] sm:$0xff] }
 0x167   : > { %v5729_v56 = vpop.permute.xlu0 %5728  ;;  %v5736_v37 = vunpack.i.h.bf16 %v5734_v44  ;;  %v5735_v42 = vunpack.i.l.bf16 %v5734_v44 }
 0x168   : > { %v5731_v59 = vunpack.i.h.bf16 %v5729_v56  ;;  %v5730_v33 = vunpack.i.l.bf16 %v5729_v56  ;;  %v2142_v56 = vsel %vm1025_vm9, %v8147_v12, %v5706_v54 }
 0x169   : > { %v2153_v0 = vsel %vm1043_vm11, %v2145_v32, %v5735_v42  ;;  %v2154_v52 = vsel %vm1043_vm11, %v2146_v38, %v5736_v37  ;;  %v2150_v39 = vsel %vm1034_vm10, %v2142_v56, %v5726_v9 }
 0x16a   : > { %v8159_v21 = vpop.permute.xlu1 %5743  ;;  %v2151_v14 = vsel %vm1043_vm11, %v2143_v18, %v5730_v33  ;;  %v2152_v48 = vsel %vm1043_vm11, %v2144_v15, %v5731_v59  ;;  %v2322_v59 = vld [vmem:[#allocation2 + $0x31] sm:$0xff]  ;;  %v2323_v33 = vld [vmem:[#allocation2 + $0x41] sm:$0xff] }
 0x16b   : > { %v5739_v6 = vpop.permute.xlu0 %5738  ;;  %v5746_v34 = vunpack.i.h.bf16 %v8159_v21  ;;  %v5745_v8 = vunpack.i.l.bf16 %v8159_v21  ;;  %v2320_v15 = vld [vmem:[#allocation2 + $0x11] sm:$0xff] }
 0x16c   : > { %v5741_v57 = vunpack.i.h.bf16 %v5739_v6  ;;  %v5740_v20 = vunpack.i.l.bf16 %v5739_v6 }
 0x16d   : > { %v2157_v55 = vsel %vm1043_vm11, %v2149_v5, %v5745_v8  ;;  %v2158_v28 = vsel %vm1043_vm11, %v2150_v39, %v5746_v34 }
 0x16e   : > { %v5754_v46 = vpop.permute.xlu1 %5753  ;;  %v2155_v53 = vsel %vm1043_vm11, %v2147_v41, %v5740_v20  ;;  %v2156_v30 = vsel %vm1043_vm11, %v2148_v24, %v5741_v57 }
 0x16f   : > { %v5756_v40 = vunpack.i.h.bf16 %v5754_v46  ;;  %v5755_v63 = vunpack.i.l.bf16 %v5754_v46  ;;  %v5749_v47 = vpop.permute.xlu0 %5748 }
 0x170   : > { %v5751_v7 = vunpack.i.h.bf16 %v5749_v47  ;;  %v5750_v11 = vunpack.i.l.bf16 %v5749_v47 }
 0x171   : > { %v2161_v29 = vsel %vm1052_vm12, %v2153_v0, %v5755_v63  ;;  %v2162_v36 = vsel %vm1052_vm12, %v2154_v52, %v5756_v40 }
 0x172   : > { %v2168_v10 = vpack.c.bf16 %v2162_v36, %v2161_v29  ;;  %v2159_v23 = vsel %vm1052_vm12, %v2151_v14, %v5750_v11  ;;  %v2160_v31 = vsel %vm1052_vm12, %v2152_v48, %v5751_v7  ;;  %v5764_v45 = vpop.permute.xlu1 %5763 }
 0x173   : > { %v5759_v50 = vpop.permute.xlu0 %5758  ;;  %v2167_v25 = vpack.c.bf16 %v2160_v31, %v2159_v23  ;;  %v5766_v13 = vunpack.i.h.bf16 %v5764_v45  ;;  %v5765_v49 = vunpack.i.l.bf16 %v5764_v45 }
 0x174   : > { %v5761_v27 = vunpack.i.h.bf16 %v5759_v50  ;;  %v5760_v44 = vunpack.i.l.bf16 %v5759_v50 }
 0x175   : > { %5163 = vmatprep.mubr.msk.bf16.mxu0 %vm1101_vm13, %v2167_v25  ;;  %v2165_v17 = vsel %vm1052_vm12, %v2157_v55, %v5765_v49  ;;  %v2166_v12 = vsel %vm1052_vm12, %v2158_v28, %v5766_v13 }
 0x176   : > { %v2163_v2 = vsel %vm1052_vm12, %v2155_v53, %v5760_v44  ;;  %v2164_v19 = vsel %vm1052_vm12, %v2156_v30, %v5761_v27  ;;  %5164 = vmatmul.mubr.msk.bf16.vlgmr.msra.gmra.mrb[8].mxu0 %vm1101_vm13, %v2168_v10  ;;  %v5774_v1 = vpop.permute.xlu1 %5773  ;;  %v2170_v62 = vpack.c.bf16 %v2166_v12, %v2165_v17 }
 0x177   : > { %v5769_v58 = vpop.permute.xlu0 %5768  ;;  %v2169_v60 = vpack.c.bf16 %v2164_v19, %v2163_v2  ;;  %v5776_v54 = vunpack.i.h.bf16 %v5774_v1  ;;  %v5775_v51 = vunpack.i.l.bf16 %v5774_v1 }
 0x178   : > { %v5771_v3 = vunpack.i.h.bf16 %v5769_v58  ;;  %v5770_v26 = vunpack.i.l.bf16 %v5769_v58 }
 0x179   : > { %5167 = vmatprep.mubr.msk.bf16.mxu0 %vm1101_vm13, %v2169_v60  ;;  %v2651_v63 = vsel %vm327_vm0, %v2323_v33, %v5776_v54  ;;  %v2650_v47 = vsel %vm327_vm0, %v2322_v59, %v5775_v51 }
 0x17a   : > { %v5784_v43 = vpop.permute.xlu1 %5783  ;;  %v2649_v7 = vsel %vm327_vm0, %v2321_v16, %v5771_v3  ;;  %v2648_v11 = vsel %vm327_vm0, %v2320_v15, %v5770_v26 }
 0x17b   : > { %v5779_v21 = vpop.permute.xlu0 %5778  ;;  %v5786_v32 = vunpack.i.h.bf16 %v5784_v43  ;;  %v5785_v38 = vunpack.i.l.bf16 %v5784_v43 }
 0x17c   : > { %v5781_v22 = vunpack.i.h.bf16 %v5779_v21  ;;  %v5780_v46 = vunpack.i.l.bf16 %v5779_v21 }
 0x17d   : > { %v2658_v57 = vsel %vm998_vm6, %v2650_v47, %v5785_v38  ;;  %v2659_v20 = vsel %vm998_vm6, %v2651_v63, %v5786_v32 }
 0x17e   : > { %5168 = vmatmul.mubr.msk.bf16.gmra.mrb[12].mxu0 %vm1101_vm13, %v2170_v62  ;;  %v5794_v61 = vpop.permute.xlu1 %5793  ;;  %v2656_v36 = vsel %vm998_vm6, %v2648_v11, %v5780_v46  ;;  %v2657_v9 = vsel %vm998_vm6, %v2649_v7, %v5781_v22  ;;  %v2326_v7 = vld [vmem:[#allocation2 + $0x71] sm:$0xff]  ;;  %v2327_v11 = vld [vmem:[#allocation2 + $0x81] sm:$0xff] }
 0x17f   : > { %v5789_v37 = vpop.permute.xlu0 %5788  ;;  %v5796_v52 = vunpack.i.h.bf16 %v5794_v61  ;;  %v5795_v40 = vunpack.i.l.bf16 %v5794_v61 }
 0x180   : > { %v5791_v14 = vunpack.i.h.bf16 %v5789_v37  ;;  %v5790_v48 = vunpack.i.l.bf16 %v5789_v37 }
 0x181   : > { %v2666_v45 = vsel %vm1007_vm7, %v2658_v57, %v5795_v40  ;;  %v2667_v35 = vsel %vm1007_vm7, %v2659_v20, %v5796_v52 }
 0x182   : > { %v5804_v42 = vpop.permute.xlu1 %5803  ;;  %v2664_v50 = vsel %vm1007_vm7, %v2656_v36, %v5790_v48  ;;  %v2665_v25 = vsel %vm1007_vm7, %v2657_v9, %v5791_v14 }
 0x183   : > { %v5799_v6 = vpop.permute.xlu0 %5798  ;;  %v5806_v10 = vunpack.i.h.bf16 %v5804_v42  ;;  %v5805_v23 = vunpack.i.l.bf16 %v5804_v42 }
 0x184   : > { %v5801_v41 = vunpack.i.h.bf16 %v5799_v6  ;;  %v5800_v24 = vunpack.i.l.bf16 %v5799_v6 }
 0x185   : > { %v2674_v49 = vsel %vm1016_vm8, %v2666_v45, %v5805_v23  ;;  %v2675_v4 = vsel %vm1016_vm8, %v2667_v35, %v5806_v10 }
 0x186   : > { %v5814_v18 = vpop.permute.xlu1 %5813  ;;  %v2672_v1 = vsel %vm1016_vm8, %v2664_v50, %v5800_v24  ;;  %v2673_v5 = vsel %vm1016_vm8, %v2665_v25, %v5801_v41  ;;  %v9751_v50 = vld [vmem:[#allocation4_spill] sm:$0xff] }
 0x187   : > { %v5809_v0 = vpop.permute.xlu0 %5808  ;;  %v5816_v34 = vunpack.i.h.bf16 %v5814_v18  ;;  %v5815_v8 = vunpack.i.l.bf16 %v5814_v18 }
 0x188   : > { %v5811_v27 = vunpack.i.h.bf16 %v5809_v0  ;;  %v5810_v44 = vunpack.i.l.bf16 %v5809_v0 }
 0x189   : > { %v2682_v60 = vsel %vm1025_vm9, %v2674_v49, %v5815_v8  ;;  %v2683_v55 = vsel %vm1025_vm9, %v2675_v4, %v5816_v34 }
 0x18a   : > { %v5824_v29 = vpop.permute.xlu1 %5823  ;;  %v2680_v12 = vsel %vm1025_vm9, %v2672_v1, %v5810_v44  ;;  %v2681_v43 = vsel %vm1025_vm9, %v2673_v5, %v5811_v27 }
 0x18b   : > { %v5819_v31 = vpop.permute.xlu0 %5818  ;;  %v5826_v53 = vunpack.i.h.bf16 %v5824_v29  ;;  %v5825_v30 = vunpack.i.l.bf16 %v5824_v29  ;;  %v2325_v29 = vld [vmem:[#allocation2 + $0x61] sm:$0xff] }
 0x18c   : > { %v5821_v56 = vunpack.i.h.bf16 %v5819_v31  ;;  %v5820_v2 = vunpack.i.l.bf16 %v5819_v31 }
 0x18d   : > { %v2690_v21 = vsel %vm1034_vm10, %v2682_v60, %v5825_v30  ;;  %v2691_v62 = vsel %vm1034_vm10, %v2683_v55, %v5826_v53 }
 0x18e   : > { %v5834_v13 = vpop.permute.xlu1 %5833  ;;  %v2688_v37 = vsel %vm1034_vm10, %v2680_v12, %v5820_v2  ;;  %v2689_v42 = vsel %vm1034_vm10, %v2681_v43, %v5821_v56 }
 0x18f   : > { %v5829_v19 = vpop.permute.xlu0 %5828  ;;  %v5836_v39 = vunpack.i.h.bf16 %v5834_v13  ;;  %v5835_v58 = vunpack.i.l.bf16 %v5834_v13 }
 0x190   : > { %v5831_v28 = vunpack.i.h.bf16 %v5829_v19  ;;  %v5830_v17 = vunpack.i.l.bf16 %v5829_v19 }
 0x191   : > { %v2698_v59 = vsel %vm1043_vm11, %v2690_v21, %v5835_v58  ;;  %v2699_v33 = vsel %vm1043_vm11, %v2691_v62, %v5836_v39 }
 0x192   : > { %v5844_v61 = vpop.permute.xlu1 %5843  ;;  %v2696_v32 = vsel %vm1043_vm11, %v2688_v37, %v5830_v17  ;;  %v2697_v38 = vsel %vm1043_vm11, %v2689_v42, %v5831_v28 }
 0x193   : > { %v5846_v6 = vunpack.i.h.bf16 %v5844_v61  ;;  %v5845_v54 = vunpack.i.l.bf16 %v5844_v61  ;;  %v5839_v51 = vpop.permute.xlu0 %5838 }
 0x194   : > { %v5841_v3 = vunpack.i.h.bf16 %v5839_v51  ;;  %v5840_v26 = vunpack.i.l.bf16 %v5839_v51 }
 0x195   : > { %v2706_v18 = vsel %vm1052_vm12, %v2698_v59, %v5845_v54  ;;  %v2707_v15 = vsel %vm1052_vm12, %v2699_v33, %v5846_v6 }
 0x196   : > { %v2713_v16 = vpack.c.bf16 %v2707_v15, %v2706_v18  ;;  %v2704_v22 = vsel %vm1052_vm12, %v2696_v32, %v5840_v26  ;;  %v2705_v46 = vsel %vm1052_vm12, %v2697_v38, %v5841_v3  ;;  %v5854_v0 = vpop.permute.xlu1 %5853 }
 0x197   : > { %v5849_v52 = vpop.permute.xlu0 %5848  ;;  %v2712_v40 = vpack.c.bf16 %v2705_v46, %v2704_v22  ;;  %v5856_v14 = vunpack.i.h.bf16 %v5854_v0  ;;  %v5855_v48 = vunpack.i.l.bf16 %v5854_v0 }
 0x198   : > { %v5851_v57 = vunpack.i.h.bf16 %v5849_v52  ;;  %v5850_v20 = vunpack.i.l.bf16 %v5849_v52 }
 0x199   : > { %5181 = vmatprep.mubr.msk.bf16.mxu1 %vm1101_vm13, %v2712_v40  ;;  %v2655_v31 = vsel %vm327_vm0, %v2327_v11, %v5856_v14  ;;  %v2654_v45 = vsel %vm327_vm0, %v2326_v7, %v5855_v48 }
 0x19a   : > { %5182 = vmatmul.mubr.msk.bf16.vlgmr.msra.gmra.mrb[8].mxu1 %vm1101_vm13, %v2713_v16  ;;  %v5864_v63 = vpop.permute.xlu1 %5863  ;;  %v2653_v24 = vsel %vm327_vm0, %v2325_v29, %v5851_v57  ;;  %v2652_v25 = vsel %vm327_vm0, %v9751_v50, %v5850_v20 }
 0x19b   : > { %v5859_v47 = vpop.permute.xlu0 %5858  ;;  %v5866_v9 = vunpack.i.h.bf16 %v5864_v63  ;;  %v5865_v10 = vunpack.i.l.bf16 %v5864_v63 }
 0x19c   : > { %v5861_v35 = vunpack.i.h.bf16 %v5859_v47  ;;  %v5860_v41 = vunpack.i.l.bf16 %v5859_v47 }
 0x19d   : > { %v2662_v44 = vsel %vm998_vm6, %v2654_v45, %v5865_v10  ;;  %v2663_v53 = vsel %vm998_vm6, %v2655_v31, %v5866_v9 }
 0x19e   : > { %v5874_v36 = vpop.permute.xlu1 %5873  ;;  %v2660_v4 = vsel %vm998_vm6, %v2652_v25, %v5860_v41  ;;  %v2661_v56 = vsel %vm998_vm6, %v2653_v24, %v5861_v35 }
 0x19f   : > { %v5869_v23 = vpop.permute.xlu0 %5868  ;;  %v5876_v34 = vunpack.i.h.bf16 %v5874_v36  ;;  %v5875_v8 = vunpack.i.l.bf16 %v5874_v36 }
 0x1a0   : > { %v5871_v30 = vunpack.i.h.bf16 %v5869_v23  ;;  %v5870_v13 = vunpack.i.l.bf16 %v5869_v23 }
 0x1a1   : > { %v2670_v1 = vsel %vm1007_vm7, %v2662_v44, %v5875_v8  ;;  %v2671_v5 = vsel %vm1007_vm7, %v2663_v53, %v5876_v34  ;;  %v8277_v34 = vld [vmem:[%s9659_s3] ss:$0 sm:$0xff] }
 0x1a2   : > { %v5884_v27 = vpop.permute.xlu1 %5883  ;;  %v2668_v55 = vsel %vm1007_vm7, %v2660_v4, %v5870_v13  ;;  %v2669_v28 = vsel %vm1007_vm7, %v2661_v56, %v5871_v30  ;;  %v8282_v8 = vld [vmem:[%s9660_s4] ss:$0 sm:$0xff] }
 0x1a3   : > { %v5879_v49 = vpop.permute.xlu0 %5878  ;;  %v5886_v2 = vunpack.i.h.bf16 %v5884_v27  ;;  %v5885_v19 = vunpack.i.l.bf16 %v5884_v27 }
 0x1a4   : > { %v5881_v39 = vunpack.i.h.bf16 %v5879_v49  ;;  %v5880_v58 = vunpack.i.l.bf16 %v5879_v49 }
 0x1a5   : > { %v2678_v21 = vsel %vm1016_vm8, %v2670_v1, %v5885_v19  ;;  %v2679_v62 = vsel %vm1016_vm8, %v2671_v5, %v5886_v2 }
 0x1a6   : > { %v5894_v60 = vpop.permute.xlu1 %5893  ;;  %v2676_v42 = vsel %vm1016_vm8, %v2668_v55, %v5880_v58  ;;  %v2677_v6 = vsel %vm1016_vm8, %v2669_v28, %v5881_v39 }
 0x1a7   : > { %v5889_v17 = vpop.permute.xlu0 %5888  ;;  %v5896_v12 = vunpack.i.h.bf16 %v5894_v60  ;;  %v5895_v43 = vunpack.i.l.bf16 %v5894_v60 }
 0x1a8   : > { %v5891_v61 = vunpack.i.h.bf16 %v5889_v17  ;;  %v5890_v37 = vunpack.i.l.bf16 %v5889_v17 }
 0x1a9   : > { %v2686_v3 = vsel %vm1025_vm9, %v2678_v21, %v5895_v43  ;;  %v2687_v26 = vsel %vm1025_vm9, %v2679_v62, %v5896_v12 }
 0x1aa   : > { %v5904_v54 = vpop.permute.xlu1 %5903  ;;  %v2684_v18 = vsel %vm1025_vm9, %v2676_v42, %v5890_v37  ;;  %v2685_v15 = vsel %vm1025_vm9, %v2677_v6, %v5891_v61 }
 0x1ab   : > { %v5906_v51 = vunpack.i.h.bf16 %v5904_v54  ;;  %v5905_v59 = vunpack.i.l.bf16 %v5904_v54  ;;  %v5899_v33 = vpop.permute.xlu0 %5898 }
 0x1ac   : > { %v5901_v32 = vunpack.i.h.bf16 %v5899_v33  ;;  %v5900_v38 = vunpack.i.l.bf16 %v5899_v33 }
 0x1ad   : > { %v2694_v22 = vsel %vm1034_vm10, %v2686_v3, %v5905_v59  ;;  %v2695_v46 = vsel %vm1034_vm10, %v2687_v26, %v5906_v51 }
 0x1ae   : > { %v5914_v16 = vpop.permute.xlu1 %5913  ;;  %v2692_v63 = vsel %vm1034_vm10, %v2684_v18, %v5900_v38  ;;  %v2693_v47 = vsel %vm1034_vm10, %v2685_v15, %v5901_v32 }
 0x1af   : > { %v5916_v0 = vunpack.i.h.bf16 %v5914_v16  ;;  %v5915_v52 = vunpack.i.l.bf16 %v5914_v16  ;;  %v5909_v40 = vpop.permute.xlu0 %5908 }
 0x1b0   : > { %v5911_v14 = vunpack.i.h.bf16 %v5909_v40  ;;  %v5910_v48 = vunpack.i.l.bf16 %v5909_v40 }
 0x1b1   : > { %v2702_v7 = vsel %vm1043_vm11, %v2694_v22, %v5915_v52  ;;  %v2703_v11 = vsel %vm1043_vm11, %v2695_v46, %v5916_v0 }
 0x1b2   : > { %v5924_v57 = vpop.permute.xlu1 %5923  ;;  %v2700_v20 = vsel %vm1043_vm11, %v2692_v63, %v5910_v48  ;;  %v2701_v29 = vsel %vm1043_vm11, %v2693_v47, %v5911_v14 }
 0x1b3   : > { %v5926_v36 = vunpack.i.h.bf16 %v5924_v57  ;;  %v5925_v9 = vunpack.i.l.bf16 %v5924_v57  ;;  %v5919_v10 = vpop.permute.xlu0 %5918 }
 0x1b4   : > { %v5921_v23 = vunpack.i.h.bf16 %v5919_v10  ;;  %v5920_v31 = vunpack.i.l.bf16 %v5919_v10 }
 0x1b5   : > { %v2710_v45 = vsel %vm1052_vm12, %v2702_v7, %v5925_v9  ;;  %v2711_v35 = vsel %vm1052_vm12, %v2703_v11, %v5926_v36 }
 0x1b6   : > { %v2708_v41 = vsel %vm1052_vm12, %v2700_v20, %v5920_v31  ;;  %v2709_v24 = vsel %vm1052_vm12, %v2701_v29, %v5921_v23  ;;  %v2715_v50 = vpack.c.bf16 %v2711_v35, %v2710_v45 }
 0x1b7   : > { %v2714_v25 = vpack.c.bf16 %v2709_v24, %v2708_v41 }
 0x1b9   : > { %5185 = vmatprep.mubr.msk.bf16.mxu1 %vm1101_vm13, %v2714_v25 }
 0x1ba   : > { %5186 = vmatmul.mubr.msk.bf16.gmra.mrb[12].mxu1 %vm1101_vm13, %v2715_v50 }
 0x1c9   : > { %v5129_v27 = vpop.f32.mrb[0].mxu0 }
 0x1ca   : > { %v1191_v44 = vmul.f32 %v5129_v27, %v8277_v34  ;;  %v1152_v53 = vpop.f32.mrb[1].mxu0 }
 0x1cb   : > { %v1189_v30 = vmul.f32 %v8277_v34, %v1152_v53  ;;  %v5130_v13 = vpop.f32.mrb[2].mxu0 }
 0x1cc   : > { %v1205_v49 = vadd.f32 %v8282_v8, %v1191_v44  ;;  %v1192_v4 = vmul.f32 %v5130_v13, %v8277_v34  ;;  %v1155_v56 = vpop.f32.mrb[3].mxu0 }
 0x1cd   : > { %v1203_v2 = vadd.f32 %v8282_v8, %v1189_v30  ;;  %v1190_v19 = vmul.f32 %v8277_v34, %v1155_v56 }
 0x1ce   : > { %v1213_v1 = vmax.f32 %v1205_v49, 0.0  ;;  %v1206_v5 = vadd.f32 %v8282_v8, %v1192_v4 }
 0x1cf   : > { %v1211_v39 = vmax.f32 %v1203_v2, 0.0  ;;  %v1204_v58 = vadd.f32 %v8282_v8, %v1190_v19 }
 0x1d0   : > { %1222 = vst.msk [vmem:[#allocation3 + $0x31] sm:$0xff] %vm327_vm0, %v1213_v1  ;;  %v1214_v60 = vmax.f32 %v1206_v5, 0.0 }
 0x1d1   : > { %1220 = vst.msk [vmem:[#allocation3 + $0x11] sm:$0xff] %vm327_vm0, %v1211_v39  ;;  %v1212_v55 = vmax.f32 %v1204_v58, 0.0  ;;  %v5133_v28 = vpop.f32.mrb[4].mxu0 }
 0x1d2   : > { %1223 = vst.msk [vmem:[#allocation3 + $0x41] sm:$0xff] %vm327_vm0, %v1214_v60  ;;  %v1195_v17 = vmul.f32 %v5133_v28, %v8277_v34  ;;  %v1168_v12 = vpop.f32.mrb[5].mxu0 }
 0x1d3   : > { %1221 = vst.msk [vmem:[#allocation3 + $0x21] sm:$0xff] %vm327_vm0, %v1212_v55  ;;  %v1193_v43 = vmul.f32 %v8277_v34, %v1168_v12  ;;  %v5134_v21 = vpop.f32.mrb[6].mxu0 }
 0x1d4   : > { %v1209_v62 = vadd.f32 %v8282_v8, %v1195_v17  ;;  %v1196_v61 = vmul.f32 %v5134_v21, %v8277_v34  ;;  %v1171_v37 = vpop.f32.mrb[7].mxu0 }
 0x1d5   : > { %v1207_v42 = vadd.f32 %v8282_v8, %v1193_v43  ;;  %v1194_v6 = vmul.f32 %v8277_v34, %v1171_v37 }
 0x1d6   : > { %v1217_v54 = vmax.f32 %v1209_v62, 0.0  ;;  %v1210_v51 = vadd.f32 %v8282_v8, %v1196_v61 }
 0x1d7   : > { %v1215_v59 = vmax.f32 %v1207_v42, 0.0  ;;  %v1208_v33 = vadd.f32 %v8282_v8, %v1194_v6  ;;  %v8307_v32 = vld [vmem:[#allocation3 + $0x32] sm:$0xff] }
 0x1d8   : > { %1226 = vst.msk [vmem:[#allocation3 + $0x71] sm:$0xff] %vm327_vm0, %v1217_v54  ;;  %v1218_v3 = vmax.f32 %v1210_v51, 0.0  ;;  %v8369_v6 = vld [vmem:[#allocation3 + $0x31] sm:$0xff] }
 0x1d9   : > { %1224 = vst.msk [vmem:[#allocation3 + $0x51] sm:$0xff] %vm327_vm0, %v1215_v59  ;;  %v1216_v26 = vmax.f32 %v1208_v33, 0.0  ;;  %v8314_v15 = vld [vmem:[#allocation3 + $0x42] sm:$0xff] }
 0x1da   : > { %1227 = vst.msk [vmem:[#allocation3 + $0x81] sm:$0xff] %vm327_vm0, %v1218_v3  ;;  %v8309_v38 = vld [vmem:[#allocation3 + $0x22] sm:$0xff]  ;;  %v5952_v54 = vpack.i.bf16 %v8314_v15, %v8307_v32 }
 0x1db   : > { %1225 = vst.msk [vmem:[#allocation3 + $0x61] sm:$0xff] %vm327_vm0, %v1216_v26  ;;  %v8360_v61 = vld [vmem:[#allocation3 + $0x41] sm:$0xff] }
 0x1dc   : > { %v8375_v51 = vpack.i.bf16 %v8360_v61, %v8369_v6 }
 0x1df   : > { %v8318_v22 = vld [vmem:[#allocation3 + $0x71] sm:$0xff] }
 0x1e0   : > { %v8316_v16 = vld [vmem:[#allocation3 + $0x52] sm:$0xff] }
 0x1e1   : > { %v8324_v52 = vld [vmem:[#allocation3 + $0x72] sm:$0xff] }
 0x1e2   : > { %v8322_v0 = vld [vmem:[#allocation3 + $0x61] sm:$0xff] }
 0x1e3   : > { %v8326_v40 = vld [vmem:[#allocation3 + $0x62] sm:$0xff]  ;;  %v8330_v63 = vpack.i.bf16 %v8318_v22, %v8322_v0 }
 0x1e5   : > { %9752 = vst [vmem:[#allocation5_spill] sm:$0xff] %v8330_v63 }
 0x209   : > { %v5147_v14 = vpop.f32.mrb[0].mxu1 }
 0x20a   : > { %v1742_v48 = vmul.f32 %v5147_v14, %v8277_v34  ;;  %v1709_v7 = vpop.f32.mrb[1].mxu1 }
 0x20b   : > { %v1740_v11 = vmul.f32 %v8277_v34, %v1709_v7  ;;  %v5148_v57 = vpop.f32.mrb[2].mxu1 }
 0x20c   : > { %v1750_v20 = vadd.f32 %v8282_v8, %v1742_v48  ;;  %v1743_v29 = vmul.f32 %v5148_v57, %v8277_v34  ;;  %v1712_v36 = vpop.f32.mrb[3].mxu1 }
 0x20d   : > { %v1748_v9 = vadd.f32 %v8282_v8, %v1740_v11  ;;  %v1741_v10 = vmul.f32 %v8277_v34, %v1712_v36 }
 0x20e   : > { %v1758_v23 = vmax.f32 %v1750_v20, 0.0  ;;  %v1751_v31 = vadd.f32 %v8282_v8, %v1743_v29  ;;  %v8387_v20 = vld [vmem:[#allocation3 + $0x21] sm:$0xff] }
 0x20f   : > { %v1756_v45 = vmax.f32 %v1748_v9, 0.0  ;;  %v1749_v35 = vadd.f32 %v8282_v8, %v1741_v10  ;;  %v2899_v9 = vld [vmem:[#allocation3 + $0x11] sm:$0xff] }
 0x210   : > { %1767 = vst.msk [vmem:[#allocation3 + $0xd1] sm:$0xff] %vm327_vm0, %v1758_v23  ;;  %v1759_v41 = vmax.f32 %v1751_v31, 0.0  ;;  %v8397_v10 = vpack.i.bf16 %v8387_v20, %v2899_v9  ;;  %v3423_v23 = vld [vmem:[#allocation3 + $0x12] sm:$0xff] }
 0x211   : > { %1765 = vst.msk [vmem:[#allocation3 + $0xb1] sm:$0xff] %vm327_vm0, %v1756_v45  ;;  %v1757_v24 = vmax.f32 %v1749_v35, 0.0  ;;  %v5151_v50 = vpop.f32.mrb[4].mxu1  ;;  %v5992_v31 = vpack.i.bf16 %v8309_v38, %v3423_v23 }
 0x212   : > { %1768 = vst.msk [vmem:[#allocation3 + $0xe1] sm:$0xff] %vm327_vm0, %v1759_v41  ;;  %v1746_v25 = vmul.f32 %v5151_v50, %v8277_v34  ;;  %v1725_v27 = vpop.f32.mrb[5].mxu1 }
 0x213   : > { %1766 = vst.msk [vmem:[#allocation3 + $0xc1] sm:$0xff] %vm327_vm0, %v1757_v24  ;;  %v1744_v44 = vmul.f32 %v8277_v34, %v1725_v27  ;;  %v5152_v53 = vpop.f32.mrb[6].mxu1  ;;  %v8417_v27 = vld [vmem:[#allocation3 + $0x81] sm:$0xff] }
 0x214   : > { %v1754_v30 = vadd.f32 %v8282_v8, %v1746_v25  ;;  %v1747_v13 = vmul.f32 %v5152_v53, %v8277_v34  ;;  %v1728_v49 = vpop.f32.mrb[7].mxu1  ;;  %v6012_v53 = vpack.i.bf16 %v8417_v27, %v8318_v22 }
 0x215   : > { %v1752_v4 = vadd.f32 %v8282_v8, %v1744_v44  ;;  %v1745_v56 = vmul.f32 %v8277_v34, %v1728_v49  ;;  %v8421_v44 = vld [vmem:[#allocation3 + $0x51] sm:$0xff] }
 0x216   : > { %v1762_v2 = vmax.f32 %v1754_v30, 0.0  ;;  %v1755_v19 = vadd.f32 %v8282_v8, %v1747_v13  ;;  %v6042_v30 = vpack.i.bf16 %v8322_v0, %v8421_v44 }
 0x217   : > { %v1760_v1 = vmax.f32 %v1752_v4, 0.0  ;;  %v1753_v5 = vadd.f32 %v8282_v8, %v1745_v56  ;;  %v2909_v58 = vld [vmem:[#allocation3 + $0xd1] sm:$0xff]  ;;  %v8437_v56 = vld [vmem:[#allocation3 + $0x82] sm:$0xff] }
 0x218   : > { %1771 = vst.msk [vmem:[#allocation3 + $0x111] sm:$0xff] %vm327_vm0, %v1762_v2  ;;  %v1763_v39 = vmax.f32 %v1755_v19, 0.0  ;;  %v2893_v28 = vld [vmem:[#allocation3 + $0xd0] sm:$0xff] }
 0x219   : > { %1769 = vst.msk [vmem:[#allocation3 + $0xf1] sm:$0xff] %vm327_vm0, %v1760_v1  ;;  %v1761_v60 = vmax.f32 %v1753_v5, 0.0  ;;  %v2910_v55 = vld [vmem:[#allocation3 + $0xe1] sm:$0xff]  ;;  %v2907_v21 = vld [vmem:[#allocation3 + $0xb1] sm:$0xff] }
 0x21a   : > { %v2894_v17 = vld [vmem:[#allocation3 + $0xe0] sm:$0xff]  ;;  %1772 = vst.msk [vmem:[#allocation3 + $0x121] sm:$0xff] %vm327_vm0, %v1763_v39  ;;  %v8357_v12 = vpack.i.bf16 %v2910_v55, %v2909_v58  ;;  %v2891_v3 = vld [vmem:[#allocation3 + $0xb0] sm:$0xff] }
 0x21b   : > { %v5927_v43 = vpack.i.bf16 %v2894_v17, %v2893_v28  ;;  %v2908_v62 = vld [vmem:[#allocation3 + $0xc1] sm:$0xff]  ;;  %1770 = vst.msk [vmem:[#allocation3 + $0x101] sm:$0xff] %vm327_vm0, %v1761_v60  ;;  %v8454_v28 = vpack.i.bf16 %v8326_v40, %v8316_v16 }
 0x21c   : > { %v8362_v37 = vpack.i.bf16 %v2909_v58, %v2908_v62  ;;  %v8364_v42 = vpack.i.bf16 %v2908_v62, %v2907_v21  ;;  %5948 = vrot.lane.b32.xlu0 %v8357_v12, %s6624_s19  ;;  %v2892_v59 = vld [vmem:[#allocation3 + $0xc0] sm:$0xff] }
 0x21d   : > { %5928 = vrot.lane.b32.xlu1 %v5927_v43, %s6623_s18  ;;  %v5967_v7 = vpack.i.bf16 %v2892_v59, %v2891_v3 }
 0x21f   : > { %v2913_v26 = vld [vmem:[#allocation3 + $0x111] sm:$0xff] }
 0x220   : > { %5953 = vrot.lane.b32.xlu0 %v5952_v54, %s6625_s22  ;;  %v2911_v33 = vld [vmem:[#allocation3 + $0xf1] sm:$0xff] }
 0x221   : > { %5933 = vrot.lane.b32.xlu1 %v8375_v51, %s6624_s19  ;;  %v8380_v14 = vld [vmem:[#allocation3 + $0x121] sm:$0xff]  ;;  %v8382_v48 = vpack.i.bf16 %v2911_v33, %v2910_v55  ;;  %v2897_v41 = vld [vmem:[#allocation3 + $0x110] sm:$0xff]  ;;  %v8450_v55 = vpack.i.bf16 %v8437_v56, %v8324_v52 }
 0x222   : > { %v2912_v11 = vld [vmem:[#allocation3 + $0x101] sm:$0xff]  ;;  %v8385_v57 = vpack.i.bf16 %v8380_v14, %v2913_v26  ;;  %v2895_v24 = vld [vmem:[#allocation3 + $0xf0] sm:$0xff] }
 0x223   : > { %v8389_v29 = vpack.i.bf16 %v2913_v26, %v2912_v11  ;;  %v8391_v36 = vpack.i.bf16 %v2912_v11, %v2911_v33  ;;  %v2898_v45 = vld [vmem:[#allocation3 + $0x120] sm:$0xff] }
 0x224   : > { %5968 = vrot.lane.b32.xlu0 %v5967_v7, %s6623_s18  ;;  %v2896_v35 = vld [vmem:[#allocation3 + $0x100] sm:$0xff]  ;;  %v6007_v50 = vpack.i.bf16 %v2898_v45, %v2897_v41 }
 0x225   : > { %9753 = vst [vmem:[#allocation7_spill] sm:$0xff] %v8389_v29  ;;  %5938 = vrot.lane.b32.xlu1 %v8357_v12, %s6625_s22  ;;  %v6037_v25 = vpack.i.bf16 %v2896_v35, %v2895_v24  ;;  %v8472_v41 = vld [vmem:[#allocation3 + $0x141] sm:$0xff] }
 0x228   : > { %5973 = vrot.lane.b32.xlu0 %v8397_v10, %s6624_s19 }
 0x229   : > { %5943 = vrot.lane.b32.xlu1 %v8375_v51, %s6623_s18 }
 0x22c   : > { %5978 = vrot.lane.b32.xlu0 %v8364_v42, %s6625_s22 }
 0x22d   : > { %5958 = vrot.lane.b32.xlu1 %v8357_v12, %s6621_s16 }
 0x230   : > { %5983 = vrot.lane.b32.xlu0 %v8397_v10, %s6623_s18 }
 0x231   : > { %5963 = vrot.lane.b32.xlu1 %v5952_v54, %s6622_s17 }
 0x234   : > { %5998 = vrot.lane.b32.xlu0 %v8364_v42, %s6621_s16 }
 0x235   : > { %5988 = vrot.lane.b32.xlu1 %v8364_v42, %s6624_s19 }
 0x238   : > { %6003 = vrot.lane.b32.xlu0 %v5992_v31, %s6622_s17 }
 0x239   : > { %5993 = vrot.lane.b32.xlu1 %v5992_v31, %s6625_s22 }
 0x23c   : > { %6038 = vrot.lane.b32.xlu0 %v6037_v25, %s6623_s18 }
 0x23d   : > { %6008 = vrot.lane.b32.xlu1 %v6007_v50, %s6623_s18 }
 0x240   : > { %6043 = vrot.lane.b32.xlu0 %v6042_v30, %s6624_s19 }
 0x241   : > { %6013 = vrot.lane.b32.xlu1 %v6012_v53, %s6624_s19 }
 0x244   : > { %6048 = vrot.lane.b32.xlu0 %v8391_v36, %s6625_s22 }
 0x245   : > { %6018 = vrot.lane.b32.xlu1 %v8385_v57, %s6625_s22 }
 0x248   : > { %6053 = vrot.lane.b32.xlu0 %v6042_v30, %s6623_s18 }
 0x249   : > { %6023 = vrot.lane.b32.xlu1 %v6012_v53, %s6623_s18  ;;  %v5165_v13 = vpop.f32.mrb[8].mxu0 }
 0x24a   : > { %v2289_v22 = vmul.f32 %v5165_v13, %v8277_v34  ;;  %v2256_v49 = vpop.f32.mrb[9].mxu0 }
 0x24b   : > { %v2287_v0 = vmul.f32 %v8277_v34, %v2256_v49  ;;  %v5166_v4 = vpop.f32.mrb[10].mxu0 }
 0x24c   : > { %v2297_v2 = vadd.f32 %v8282_v8, %v2289_v22  ;;  %v2290_v19 = vmul.f32 %v5166_v4, %v8277_v34  ;;  %v2259_v1 = vpop.f32.mrb[11].mxu0  ;;  %6058 = vrot.lane.b32.xlu0 %v8391_v36, %s6624_s19 }
 0x24d   : > { %6028 = vrot.lane.b32.xlu1 %v8385_v57, %s6624_s19  ;;  %v2295_v5 = vadd.f32 %v8282_v8, %v2287_v0  ;;  %v2288_v39 = vmul.f32 %v8277_v34, %v2259_v1 }
 0x24e   : > { %v2305_v58 = vmax.f32 %v2297_v2, 0.0  ;;  %v2298_v60 = vadd.f32 %v8282_v8, %v2290_v19 }
 0x24f   : > { %v2303_v17 = vmax.f32 %v2295_v5, 0.0  ;;  %v2296_v43 = vadd.f32 %v8282_v8, %v2288_v39 }
 0x250   : > { %2314 = vst.msk [vmem:[#allocation3 + $0x171] sm:$0xff] %vm327_vm0, %v2305_v58  ;;  %v2306_v21 = vmax.f32 %v2298_v60, 0.0  ;;  %6063 = vrot.lane.b32.xlu0 %v8454_v28, %s6625_s22 }
 0x251   : > { %6033 = vrot.lane.b32.xlu1 %v8450_v55, %s6625_s22  ;;  %2312 = vst.msk [vmem:[#allocation3 + $0x151] sm:$0xff] %vm327_vm0, %v2303_v17  ;;  %v2304_v62 = vmax.f32 %v2296_v43, 0.0  ;;  %v5169_v54 = vpop.f32.mrb[12].mxu0 }
 0x252   : > { %2315 = vst.msk [vmem:[#allocation3 + $0x181] sm:$0xff] %vm327_vm0, %v2306_v21  ;;  %v2293_v59 = vmul.f32 %v5169_v54, %v8277_v34  ;;  %v2272_v33 = vpop.f32.mrb[13].mxu0 }
 0x253   : > { %2313 = vst.msk [vmem:[#allocation3 + $0x161] sm:$0xff] %vm327_vm0, %v2304_v62  ;;  %v2291_v3 = vmul.f32 %v8277_v34, %v2272_v33  ;;  %v5170_v26 = vpop.f32.mrb[14].mxu0 }
 0x254   : > { %v2301_v7 = vadd.f32 %v8282_v8, %v2293_v59  ;;  %v2294_v11 = vmul.f32 %v5170_v26, %v8277_v34  ;;  %v2275_v9 = vpop.f32.mrb[15].mxu0  ;;  %v2883_v59 = vld [vmem:[#allocation3 + $0x1e1] sm:$0xff] }
 0x255   : > { %v2299_v23 = vadd.f32 %v8282_v8, %v2291_v3  ;;  %v2292_v31 = vmul.f32 %v8277_v34, %v2275_v9 }
 0x256   : > { %v2309_v45 = vmax.f32 %v2301_v7, 0.0  ;;  %v2302_v35 = vadd.f32 %v8282_v8, %v2294_v11 }
 0x257   : > { %v2307_v24 = vmax.f32 %v2299_v23, 0.0  ;;  %v2300_v50 = vadd.f32 %v8282_v8, %v2292_v31 }
 0x258   : > { %2318 = vst.msk [vmem:[#allocation3 + $0x1b1] sm:$0xff] %vm327_vm0, %v2309_v45  ;;  %v2310_v25 = vmax.f32 %v2302_v35, 0.0  ;;  %v8476_v53 = vld [vmem:[#allocation3 + $0x151] sm:$0xff] }
 0x259   : > { %2316 = vst.msk [vmem:[#allocation3 + $0x191] sm:$0xff] %vm327_vm0, %v2307_v24  ;;  %v2308_v30 = vmax.f32 %v2300_v50, 0.0  ;;  %v6067_v13 = vpack.i.bf16 %v8476_v53, %v8472_v41  ;;  %v8513_v45 = vld [vmem:[#allocation3 + $0x181] sm:$0xff]  ;;  %v8517_v35 = vld [vmem:[#allocation3 + $0x171] sm:$0xff] }
 0x25a   : > { %2319 = vst.msk [vmem:[#allocation3 + $0x1c1] sm:$0xff] %vm327_vm0, %v2310_v25  ;;  %v8521_v24 = vpack.i.bf16 %v8513_v45, %v8517_v35  ;;  %v3415_v50 = vld [vmem:[#allocation3 + $0x142] sm:$0xff]  ;;  %v8523_v25 = vld [vmem:[#allocation3 + $0x152] sm:$0xff] }
 0x25b   : > { %2317 = vst.msk [vmem:[#allocation3 + $0x1a1] sm:$0xff] %vm327_vm0, %v2308_v30  ;;  %6068 = vrot.lane.b32.xlu0 %v6067_v13, %s6621_s16  ;;  %v6082_v30 = vpack.i.bf16 %v8523_v25, %v3415_v50  ;;  %v6587_v13 = vld [vmem:[%s9661_s5] sm:$0xff]  }
 0x25c   : > { %5189 = vmatprep.subr.bf16.mxu0 %v6587_v13  ;;  %5207 = vmatprep.subr.bf16.mxu1 %v6587_v13  ;;  %v8565_v50 = vld [vmem:[#allocation3 + $0x161] sm:$0xff] }
 0x25d   : > { %5190 = vmatpush3.bf16.msra.mxu0 %v6587_v13  ;;  %5208 = vmatpush3.bf16.msra.mxu1 %v6587_v13 }
 0x26d   : > { %v5183_v22 = vpop.f32.mrb[8].mxu1 }
 0x26e   : > { %v2834_v49 = vmul.f32 %v5183_v22, %v8277_v34  ;;  %v2801_v0 = vpop.f32.mrb[9].mxu1  ;;  %v6588_v22 = vld [vmem:[%s9661_s5 + $0x8] sm:$0xff]  }
 0x26f   : > { %v2832_v4 = vmul.f32 %v8277_v34, %v2801_v0  ;;  %v5184_v2 = vpop.f32.mrb[10].mxu1  ;;  %5191 = vmatprep.subr.bf16.mxu0 %v6588_v22  ;;  %5209 = vmatprep.subr.bf16.mxu1 %v6588_v22 }
 0x270   : > { %v2842_v19 = vadd.f32 %v8282_v8, %v2834_v49  ;;  %v2835_v1 = vmul.f32 %v5184_v2, %v8277_v34  ;;  %v2804_v5 = vpop.f32.mrb[11].mxu1  ;;  %5192 = vmatpush3.bf16.msra.mxu0 %v6588_v22  ;;  %v6589_v2 = vld [vmem:[%s9661_s5 + $0x10] sm:$0xff]   ;;  %5210 = vmatpush3.bf16.msra.mxu1 %v6588_v22 }
 0x271   : > { %v2840_v39 = vadd.f32 %v8282_v8, %v2832_v4  ;;  %v2833_v58 = vmul.f32 %v8277_v34, %v2804_v5  ;;  %v8543_v4 = vld [vmem:[#allocation3 + $0x182] sm:$0xff]  ;;  %5193 = vmatprep.subr.bf16.mxu0 %v6589_v2  ;;  %5211 = vmatprep.subr.bf16.mxu1 %v6589_v2 }
 0x272   : > { %v2850_v60 = vmax.f32 %v2842_v19, 0.0  ;;  %v2843_v17 = vadd.f32 %v8282_v8, %v2835_v1 }
 0x273   : > { %v2848_v43 = vmax.f32 %v2840_v39, 0.0  ;;  %v2841_v21 = vadd.f32 %v8282_v8, %v2833_v58  ;;  %v3433_v58 = vld [vmem:[#allocation3 + $0x172] sm:$0xff] }
 0x274   : > { %2859 = vst.msk [vmem:[#allocation3 + $0x211] sm:$0xff] %vm327_vm0, %v2850_v60  ;;  %v2851_v62 = vmax.f32 %v2843_v17, 0.0  ;;  %5194 = vmatpush3.bf16.msra.mxu0 %v6589_v2  ;;  %5212 = vmatpush3.bf16.msra.mxu1 %v6589_v2  ;;  %v6132_v2 = vpack.i.bf16 %v8517_v35, %v8565_v50 }
 0x275   : > { %2857 = vst.msk [vmem:[#allocation3 + $0x1f1] sm:$0xff] %vm327_vm0, %v2848_v43  ;;  %v2849_v54 = vmax.f32 %v2841_v21, 0.0  ;;  %v6112_v43 = vpack.i.bf16 %v8543_v4, %v3433_v58 }
 0x276   : > { %2860 = vst.msk [vmem:[#allocation3 + $0x221] sm:$0xff] %vm327_vm0, %v2851_v62 }
 0x277   : > { %2858 = vst.msk [vmem:[#allocation3 + $0x201] sm:$0xff] %vm327_vm0, %v2849_v54 }
 0x27b   : > { %v8498_v3 = vld [vmem:[#allocation3 + $0x210] sm:$0xff] }
 0x27c   : > { %v8496_v33 = vld [vmem:[#allocation3 + $0x1f1] sm:$0xff] }
 0x27d   : > { %v6072_v26 = vpack.i.bf16 %v8496_v33, %v2883_v59  ;;  %v2918_v7 = vld [vmem:[#allocation3 + $0x220] sm:$0xff]  ;;  %v8501_v11 = vld [vmem:[#allocation3 + $0x211] sm:$0xff] }
 0x27e   : > { %v8503_v9 = vld [vmem:[#allocation3 + $0x221] sm:$0xff]  ;;  %v8506_v23 = vpack.i.bf16 %v2918_v7, %v8498_v3 }
 0x27f   : > { %v8510_v31 = vpack.i.bf16 %v8503_v9, %v8501_v11  ;;  %6073 = vrot.lane.b32.xlu0 %v6072_v26, %s6622_s17  ;;  %v8558_v59 = vld [vmem:[#allocation3 + $0x200] sm:$0xff] }
 0x280   : > { %6088 = vrot.lane.b32.xlu1 %v8506_v23, %s6626_s29 }
 0x281   : > { %9754 = vst [vmem:[#allocation9_spill] sm:$0xff] %v8510_v31 }
 0x283   : > { %6078 = vrot.lane.b32.xlu0 %v6072_v26, %s6621_s16  ;;  %v6590_v26 = vld [vmem:[%s9661_s5 + $0x18] sm:$0xff]  }
 0x284   : > { %6093 = vrot.lane.b32.xlu1 %v8521_v24, %s6627_s12  ;;  %5195 = vmatprep.subr.bf16.mxu0 %v6590_v26 }
 0x285   : > { %5196 = vmatpush3.bf16.msra.mxu0 %v6590_v26  ;;  %5213 = vmatprep.subr.bf16.mxu1 %v6590_v26 }
 0x286   : > { %5214 = vmatpush3.bf16.msra.mxu1 %v6590_v26 }
 0x287   : > { %6083 = vrot.lane.b32.xlu0 %v6082_v30, %s6622_s17 }
 0x288   : > { %6098 = vrot.lane.b32.xlu1 %v8510_v31, %s6628_s13 }
 0x28b   : > { %6103 = vrot.lane.b32.xlu0 %v8521_v24, %s6626_s29 }
 0x28c   : > { %6118 = vrot.lane.b32.xlu1 %v8521_v24, %s6623_s18 }
 0x28d   : > { %v5187_v49 = vpop.f32.mrb[12].mxu1 }
 0x28e   : > { %v2838_v0 = vmul.f32 %v5187_v49, %v8277_v34  ;;  %v2817_v19 = vpop.f32.mrb[13].mxu1 }
 0x28f   : > { %6108 = vrot.lane.b32.xlu0 %v8510_v31, %s6627_s12  ;;  %v2836_v5 = vmul.f32 %v8277_v34, %v2817_v19  ;;  %v5188_v39 = vpop.f32.mrb[14].mxu1  ;;  %v2885_v19 = vld [vmem:[#allocation3 + $0x201] sm:$0xff] }
 0x290   : > { %v2846_v1 = vadd.f32 %v8282_v8, %v2838_v0  ;;  %6123 = vrot.lane.b32.xlu1 %v8510_v31, %s6624_s19  ;;  %v2839_v60 = vmul.f32 %v5188_v39, %v8277_v34  ;;  %v2820_v17 = vpop.f32.mrb[15].mxu1  ;;  %v6137_v39 = vpack.i.bf16 %v8501_v11, %v2885_v19 }
 0x291   : > { %v2844_v62 = vadd.f32 %v8282_v8, %v2836_v5  ;;  %v2837_v54 = vmul.f32 %v8277_v34, %v2820_v17  ;;  %v8570_v34 = vld [vmem:[#allocation3 + $0x1f0] sm:$0xff]  ;;  %v8591_v5 = vpack.i.bf16 %v8565_v50, %v8476_v53  ;;  %v8601_v17 = vpack.i.bf16 %v2885_v19, %v8496_v33 }
 0x292   : > { %v2854_v21 = vmax.f32 %v2846_v1, 0.0  ;;  %v2847_v7 = vadd.f32 %v8282_v8, %v2839_v60  ;;  %v8574_v49 = vpack.i.bf16 %v8558_v59, %v8570_v34  ;;  %v8595_v60 = vpop.permute.xlu0 %5948 }
 0x293   : > { %6113 = vrot.lane.b32.xlu0 %v6112_v43, %s6628_s13  ;;  %v2852_v30 = vmax.f32 %v2844_v62, 0.0  ;;  %v2845_v13 = vadd.f32 %v8282_v8, %v2837_v54  ;;  %v6591_v8 = vld [vmem:[%s9661_s5 + $0x20] ss:$0 sps:$4 sm:$0xff]  }
 0x294   : > { %2863 = vst.msk [vmem:[#allocation3 + $0x251] sm:$0xff] %vm327_vm0, %v2854_v21  ;;  %6128 = vrot.lane.b32.xlu1 %v6112_v43, %s6625_s22  ;;  %v2855_v22 = vmax.f32 %v2847_v7, 0.0  ;;  %5265 = vmatprep.subr.msk.bf16.mxu0 %vm1114_vm5, %v6591_v8  ;;  %v3312_v1 = vsel %vm1114_vm5, %v6591_v8, 0  ;;  %v3417_v43 = vld [vmem:[#allocation3 + $0x162] sm:$0xff]  ;;  %v8605_v21 = vpop.permute.xlu1 %5928  ;;  %v8622_v7 = vld [vmem:[#allocation3 + $0x191] sm:$0xff] }
 0x295   : > { %2861 = vst.msk [vmem:[#allocation3 + $0x231] sm:$0xff] %vm327_vm0, %v2852_v30  ;;  %v2853_v0 = vmax.f32 %v2845_v13, 0.0  ;;  %5198 = vmatpush3.bf16.msra.mxu0 %v3312_v1  ;;  %5266 = vmatprep.subr.msk.bf16.mxu1 %vm1114_vm5, %v6591_v8  ;;  %v6162_v62 = vpack.i.bf16 %v3433_v58, %v3417_v43  ;;  %v6192_v26 = vpack.i.bf16 %v3417_v43, %v8523_v25  ;;  %9755 = vst [vmem:[#allocation8_spill] sm:$0xff] %v8622_v7 }
 0x296   : > { %2864 = vst.msk [vmem:[#allocation3 + $0x261] sm:$0xff] %vm327_vm0, %v2855_v22  ;;  %5216 = vmatpush3.bf16.msra.mxu1 %v3312_v1  ;;  %v8608_v11 = vpop.permute.xlu0 %5953  ;;  %v6197_v13 = vpack.i.bf16 %v8622_v7, %v8513_v45  ;;  %v8645_v45 = vld [vmem:[#allocation3 + $0x1b1] sm:$0xff] }
 0x297   : > { %6143 = vrot.lane.b32.xlu0 %v8574_v49, %s6626_s29  ;;  %2862 = vst.msk [vmem:[#allocation3 + $0x241] sm:$0xff] %vm327_vm0, %v2853_v0  ;;  %9757 = vst [vmem:[#allocation10_spill] sm:$0xff] %v8645_v45 }
 0x298   : > { %6133 = vrot.lane.b32.xlu1 %v6132_v2, %s6621_s16  ;;  %v8613_v54 = vpop.permute.xlu1 %5933 }
 0x29a   : > { %v8615_v33 = vpop.permute.xlu0 %5968 }
 0x29b   : > { %6148 = vrot.lane.b32.xlu0 %v8591_v5, %s6627_s12  ;;  %v2921_v2 = vld [vmem:[#allocation3 + $0x250] sm:$0xff] }
 0x29c   : > { %6138 = vrot.lane.b32.xlu1 %v6137_v39, %s6622_s17  ;;  %v8625_v58 = vpop.permute.xlu1 %5938  ;;  %v2888_v22 = vld [vmem:[#allocation3 + $0x231] sm:$0xff] }
 0x29d   : > { %v2922_v0 = vld [vmem:[#allocation3 + $0x260] sm:$0xff]  ;;  %v6202_v25 = vpack.i.bf16 %v2888_v22, %v8503_v9 }
 0x29e   : > { %v8629_v30 = vpop.permute.xlu0 %5973  ;;  %v8638_v19 = vpack.i.bf16 %v2922_v0, %v2921_v2  ;;  %v2938_v9 = vld [vmem:[#allocation3 + $0x261] sm:$0xff]  ;;  %v2937_v2 = vld [vmem:[#allocation3 + $0x251] sm:$0xff] }
 0x29f   : > { %6153 = vrot.lane.b32.xlu0 %v8601_v17, %s6628_s13  ;;  %v8658_v47 = vpack.i.bf16 %v2938_v9, %v2937_v2  ;;  %v8660_v46 = vld [vmem:[#allocation3 + $0x240] sm:$0xff] }
 0x2a0   : > { %6158 = vrot.lane.b32.xlu1 %v6137_v39, %s6621_s16  ;;  %v8636_v8 = vpop.permute.xlu1 %5943  ;;  %9756 = vst [vmem:[#allocation6_spill] sm:$0xff] %v8638_v19  ;;  %v2930_v39 = vld [vmem:[#allocation3 + $0x1c1] sm:$0xff]  ;;  %9761 = vst [vmem:[#allocation13_spill] sm:$0xff] %v8660_v46 }
 0x2a1   : > { %v8648_v43 = vpack.i.bf16 %v2930_v39, %v8645_v45  ;;  %9760 = vst [vmem:[#allocation12_spill] sm:$0xff] %v8658_v47 }
 0x2a2   : > { %v8640_v1 = vpop.permute.xlu0 %5978 }
 0x2a3   : > { %6183 = vrot.lane.b32.xlu0 %v8591_v5, %s6623_s18  ;;  %9758 = vst [vmem:[#allocation11_spill] sm:$0xff] %v8648_v43 }
 0x2a4   : > { %6163 = vrot.lane.b32.xlu1 %v6162_v62, %s6622_s17  ;;  %v3420_v62 = vld [vmem:[#allocation3 + $0x192] sm:$0xff] }
 0x2a5   : > { %v6212_v0 = vpack.i.bf16 %v3420_v62, %v8543_v4 }
 0x2a7   : > { %6188 = vrot.lane.b32.xlu0 %v8601_v17, %s6624_s19 }
 0x2a8   : > { %6168 = vrot.lane.b32.xlu1 %v8591_v5, %s6626_s29 }
 0x2ab   : > { %6193 = vrot.lane.b32.xlu0 %v6192_v26, %s6625_s22 }
 0x2ac   : > { %6173 = vrot.lane.b32.xlu1 %v8601_v17, %s6627_s12 }
 0x2af   : > { %6198 = vrot.lane.b32.xlu0 %v6197_v13, %s6621_s16  ;;  %v8655_v13 = vpop.permute.xlu0 %5983 }
 0x2b0   : > { %6178 = vrot.lane.b32.xlu1 %v6192_v26, %s6628_s13  ;;  %v8651_v26 = vpop.permute.xlu1 %5958 }
 0x2b1   : > { %9759 = vst [vmem:[#allocation4_spill] sm:$0xff] %v8651_v26 }
 0x2b3   : > { %6203 = vrot.lane.b32.xlu0 %v6202_v25, %s6622_s17  ;;  %v8675_v4 = vpop.permute.xlu0 %5998 }
 0x2b4   : > { %6218 = vrot.lane.b32.xlu1 %v8638_v19, %s6626_s29  ;;  %v8671_v18 = vpop.permute.xlu1 %5963  ;;  %v8673_v19 = vld [vmem:[#allocation3 + $0x1a1] sm:$0xff]  ;;  %9766 = vst [vmem:[#allocation18_spill] sm:$0xff] %v8675_v4 }
 0x2b5   : > { %9764 = vst [vmem:[#allocation16_spill] sm:$0xff] %v8671_v18  ;;  %9765 = vst [vmem:[#allocation17_spill] sm:$0xff] %v8673_v19  ;;  %v8683_v9 = vpack.i.bf16 %v8673_v19, %v8622_v7  ;;  %v3437_v18 = vld [vmem:[#allocation3 + $0x1b2] sm:$0xff]  ;;  %v6247_v31 = vpack.i.bf16 %v8645_v45, %v8673_v19 }
 0x2b7   : > { %6208 = vrot.lane.b32.xlu0 %v6202_v25, %s6621_s16  ;;  %v8665_v25 = vld [vmem:[#allocation3 + $0x230] sm:$0xff]  ;;  %9767 = vst [vmem:[#allocation19_spill] sm:$0xff] %v8683_v9  ;;  %v8691_v4 = vpop.permute.xlu0 %6003 }
 0x2b8   : > { %6223 = vrot.lane.b32.xlu1 %v8648_v43, %s6627_s12  ;;  %9762 = vst [vmem:[#allocation14_spill] sm:$0xff] %v8665_v25  ;;  %v8669_v39 = vpack.i.bf16 %v8660_v46, %v8665_v25  ;;  %v3438_v46 = vld [vmem:[#allocation3 + $0x1c2] sm:$0xff]  ;;  %v8687_v25 = vpop.permute.xlu1 %5988  ;;  %9769 = vst [vmem:[#allocation21_spill] sm:$0xff] %v8691_v4 }
 0x2b9   : > { %9768 = vst [vmem:[#allocation20_spill] sm:$0xff] %v8687_v25  ;;  %v6242_v26 = vpack.i.bf16 %v3438_v46, %v3437_v18  ;;  %v8705_v25 = vld [vmem:[%s9661_s5] sm:$0xff]  }
 0x2ba   : > { %9763 = vst [vmem:[#allocation15_spill] sm:$0xff] %v8669_v39  ;;  %5243 = vmatprep.subr.bf16.mxu1 %v8705_v25  ;;  %5225 = vmatprep.subr.bf16.mxu0 %v8705_v25 }
 0x2bb   : > { %6213 = vrot.lane.b32.xlu0 %v6212_v0, %s6622_s17  ;;  %v2936_v0 = vld [vmem:[#allocation3 + $0x241] sm:$0xff]  ;;  %v8707_v4 = vpop.permute.xlu0 %6038 }
 0x2bc   : > { %6228 = vrot.lane.b32.xlu1 %v8658_v47, %s6628_s13  ;;  %v8698_v7 = vpop.permute.xlu1 %5993  ;;  %9772 = vst [vmem:[#allocation24_spill] sm:$0xff] %v8707_v4  ;;  %v6252_v46 = vpack.i.bf16 %v2937_v2, %v2936_v0 }
 0x2bd   : > { %9771 = vst [vmem:[#allocation23_spill] sm:$0xff] %v8698_v7 }
 0x2bf   : > { %6258 = vrot.lane.b32.xlu0 %v8669_v39, %s6626_s29  ;;  %v8693_v39 = vpack.i.bf16 %v2936_v0, %v2888_v22  ;;  %v3436_v22 = vld [vmem:[#allocation3 + $0x1a2] sm:$0xff]  ;;  %v8719_v45 = vpop.permute.xlu0 %6043 }
 0x2c0   : > { %6233 = vrot.lane.b32.xlu1 %v8648_v43, %s6626_s29  ;;  %v8716_v19 = vpop.permute.xlu1 %6008  ;;  %9773 = vst [vmem:[#allocation25_spill] sm:$0xff] %v8719_v45  ;;  %v6292_v4 = vpack.i.bf16 %v3436_v22, %v3420_v62  ;;  %v6277_v0 = vpack.i.bf16 %v3437_v18, %v3436_v22  ;;  %v8736_v62 = vpack.i.bf16 %v8421_v44, %v8360_v61 }
 0x2c1   : > { %9770 = vst [vmem:[#allocation22_spill] sm:$0xff] %v8693_v39  ;;  %v9780_v44 = vpack.i.bf16 %v8316_v16, %v8314_v15 }
 0x2c3   : > { %6263 = vrot.lane.b32.xlu0 %v8683_v9, %s6627_s12  ;;  %v8729_v7 = vpop.permute.xlu0 %6048 }
 0x2c4   : > { %6238 = vrot.lane.b32.xlu1 %v8658_v47, %s6627_s12  ;;  %v8727_v2 = vpop.permute.xlu1 %6013  ;;  %9774 = vst [vmem:[#allocation26_spill] sm:$0xff] %v8729_v7 }
 0x2c7   : > { %6268 = vrot.lane.b32.xlu0 %v8693_v39, %s6628_s13  ;;  %v8744_v18 = vpop.permute.xlu0 %6053 }
 0x2c8   : > { %6243 = vrot.lane.b32.xlu1 %v6242_v26, %s6628_s13  ;;  %9776 = vst [vmem:[#allocation28_spill] sm:$0xff] %v8744_v18  ;;  %v8818_v18 = vld [vmem:[#allocation3 + $0xc0] sm:$0xff] }
 0x2cb   : > { %6283 = vrot.lane.b32.xlu0 %v8683_v9, %s6626_s29 }
 0x2cc   : > { %6248 = vrot.lane.b32.xlu1 %v6247_v31, %s6621_s16  ;;  %v8725_v31 = vpack.i.bf16 %v8369_v6, %v8387_v20  ;;  %v9777_v6 = vpack.i.bf16 %v8307_v32, %v8309_v38  ;;  %v8754_v20 = vpop.permute.xlu0 %6058 }
 0x2cd   : > { %9779 = vst [vmem:[#allocation30_spill] sm:$0xff] %v8754_v20 }
 0x2cf   : > { %6288 = vrot.lane.b32.xlu0 %v8693_v39, %s6627_s12 }
 0x2d0   : > { %6253 = vrot.lane.b32.xlu1 %v6252_v46, %s6622_s17  ;;  %v8768_v38 = vpop.permute.xlu0 %6063 }
 0x2d1   : > { %9782 = vst [vmem:[#allocation32_spill] sm:$0xff] %v8768_v38 }
 0x2d3   : > { %6293 = vrot.lane.b32.xlu0 %v6292_v4, %s6628_s13 }
 0x2d4   : > { %6273 = vrot.lane.b32.xlu1 %v6252_v46, %s6621_s16  ;;  %v8740_v46 = vpop.permute.xlu1 %6018  ;;  %v6069_v15 = vpop.permute.xlu0 %6068 }
 0x2d5   : > { %9775 = vst [vmem:[#allocation27_spill] sm:$0xff] %v8740_v46  ;;  %v6070_v38 = vunpack.i.l.bf16 %v6069_v15 }
 0x2d7   : > { %6298 = vrot.lane.b32.xlu0 %v8725_v31, %s6626_s29 }
 0x2d8   : > { %6278 = vrot.lane.b32.xlu1 %v6277_v0, %s6622_s17  ;;  %v8752_v61 = vpop.permute.xlu1 %6023 }
 0x2d9   : > { %9778 = vst [vmem:[#allocation29_spill] sm:$0xff] %v8752_v61 }
 0x2db   : > { %6308 = vrot.lane.b32.xlu0 %v8362_v37, %s6627_s12 }
 0x2dc   : > { %6303 = vrot.lane.b32.xlu1 %v8736_v62, %s6626_s29  ;;  %v8764_v32 = vpop.permute.xlu1 %6028 }
 0x2dd   : > { %9781 = vst [vmem:[#allocation31_spill] sm:$0xff] %v8764_v32 }
 0x2df   : > { %6318 = vrot.lane.b32.xlu0 %v9777_v6, %s6628_s13  ;;  %v3938_v6 = vld [vmem:[#allocation3 + $0x91] sm:$0xff] }
 0x2e0   : > { %6313 = vrot.lane.b32.xlu1 %v8382_v48, %s6627_s12  ;;  %v8774_v16 = vpop.permute.xlu1 %6033 }
 0x2e1   : > { %9783 = vst [vmem:[#allocation33_spill] sm:$0xff] %v8774_v16  ;;  %v2867_v16 = vld [vmem:[#allocation3 + $0x1e0] sm:$0xff] }
 0x2e3   : > { %6328 = vrot.lane.b32.xlu0 %v9780_v44, %s6628_s13 }
 0x2e4   : > { %6323 = vrot.lane.b32.xlu1 %v8391_v36, %s6621_s16 }
 0x2e7   : > { %6338 = vrot.lane.b32.xlu0 %v8454_v28, %s6622_s17 }
 0x2e8   : > { %6333 = vrot.lane.b32.xlu1 %v8385_v57, %s6621_s16 }
 0x2eb   : > { %6348 = vrot.lane.b32.xlu0 %v8683_v9, %s6623_s18 }
 0x2ec   : > { %6343 = vrot.lane.b32.xlu1 %v8450_v55, %s6622_s17 }
 0x2ef   : > { %6358 = vrot.lane.b32.xlu0 %v8693_v39, %s6624_s19  ;;  %v8797_v39 = vpack.i.bf16 %v3938_v6, %v8417_v27  ;;  %v9787_v27 = vpack.i.bf16 %v8324_v52, %v8326_v40  ;;  %v4434_v6 = vld [vmem:[#allocation3 + $0x92] sm:$0xff]  ;;  %v3195_v52 = vsel %vm327_vm0, %v2867_v16, %v6070_v38  ;;  %v5970_v38 = vunpack.i.l.bf16 %v8615_v33 }
 0x2f0   : > { %6353 = vrot.lane.b32.xlu1 %v8648_v43, %s6623_s18  ;;  %v8828_v40 = vld [vmem:[#allocation3 + $0xd0] sm:$0xff] }
 0x2f1   : > { %v6074_v28 = vpop.permute.xlu0 %6073  ;;  %9784 = vst [vmem:[#allocation34_spill] sm:$0xff] %v8797_v39 }
 0x2f2   : > { %v8780_v22 = vpop.permute.xlu1 %6088  ;;  %v6075_v20 = vunpack.i.l.bf16 %v6074_v28 }
 0x2f3   : > { %6368 = vrot.lane.b32.xlu0 %v6292_v4, %s6625_s22  ;;  %v3946_v4 = vld [vmem:[#allocation3 + $0x131] sm:$0xff] }
 0x2f4   : > { %6363 = vrot.lane.b32.xlu1 %v8658_v47, %s6624_s19 }
 0x2f5   : > { %v8785_v0 = vpop.permute.xlu0 %6078 }
 0x2f6   : > { %v8787_v55 = vpop.permute.xlu1 %6093 }
 0x2f7   : > { %6378 = vrot.lane.b32.xlu0 %v8330_v63, %s6626_s29 }
 0x2f8   : > { %6373 = vrot.lane.b32.xlu1 %v6242_v26, %s6625_s22  ;;  %v8808_v26 = vpack.i.bf16 %v3946_v4, %v8380_v14  ;;  %v6402_v4 = vpack.i.bf16 %v4434_v6, %v8437_v56  ;;  %v8836_v56 = vld [vmem:[#allocation3 + $0xe0] sm:$0xff]  ;;  %v5940_v6 = vunpack.i.l.bf16 %v8625_v58 }
 0x2f9   : > { %v8792_v44 = vpop.permute.xlu0 %6083 }
 0x2fa   : > { %v8794_v43 = vpop.permute.xlu1 %6098  ;;  %9786 = vst [vmem:[#allocation36_spill] sm:$0xff] %v8808_v26  ;;  %v6086_v46 = vunpack.i.h.bf16 %v8792_v44 }
 0x2fb   : > { %6388 = vrot.lane.b32.xlu0 %v8389_v29, %s6627_s12  ;;  %v6071_v29 = vunpack.i.h.bf16 %v6069_v15 }
 0x2fc   : > { %6383 = vrot.lane.b32.xlu1 %v8797_v39, %s6626_s29  ;;  %v6076_v39 = vunpack.i.h.bf16 %v6074_v28  ;;  %v3203_v28 = vsel %vm998_vm6, %v3195_v52, %v6075_v20  ;;  %v5931_v20 = vunpack.i.h.bf16 %v8605_v21  ;;  %v5971_v52 = vunpack.i.h.bf16 %v8615_v33 }
 0x2fd   : > { %v8803_v47 = vpop.permute.xlu0 %6103  ;;  %v3196_v15 = vsel %vm327_vm0, %v8570_v34, %v6071_v29  ;;  %v5935_v29 = vunpack.i.l.bf16 %v8613_v54  ;;  %v5941_v34 = vunpack.i.h.bf16 %v8625_v58  ;;  %v6091_v58 = vunpack.i.h.bf16 %v8780_v22 }
 0x2fe   : > { %v8805_v63 = vpop.permute.xlu1 %6118 }
 0x2ff   : > { %9785 = vst [vmem:[#allocation35_spill] sm:$0xff] %v8805_v63  ;;  %6398 = vrot.lane.b32.xlu0 %v9787_v27, %s6628_s13  ;;  %v8823_v63 = vld [vmem:[#allocation3 + $0xf0] sm:$0xff] }
 0x300   : > { %6393 = vrot.lane.b32.xlu1 %v8808_v26, %s6627_s12  ;;  %v6090_v26 = vunpack.i.l.bf16 %v8780_v22 }
 0x301   : > { %v8816_v32 = vpop.permute.xlu0 %6108 }
 0x302   : > { %v8820_v14 = vpop.permute.xlu1 %6123 }
 0x303   : > { %9788 = vst [vmem:[#allocation37_spill] sm:$0xff] %v8820_v14  ;;  %6408 = vrot.lane.b32.xlu0 %v8397_v10, %s6621_s16  ;;  %v3204_v10 = vsel %vm998_vm6, %v3196_v15, %v6076_v39  ;;  %v5936_v39 = vunpack.i.h.bf16 %v8613_v54  ;;  %v3211_v15 = vsel %vm1007_vm7, %v3203_v28, %v5970_v38  ;;  %v5976_v38 = vunpack.i.h.bf16 %v8629_v30 }
 0x304   : > { %6403 = vrot.lane.b32.xlu1 %v6402_v4, %s6628_s13  ;;  %v5930_v4 = vunpack.i.l.bf16 %v8605_v21  ;;  %v5975_v21 = vunpack.i.l.bf16 %v8629_v30  ;;  %v3212_v33 = vsel %vm1007_vm7, %v3204_v10, %v5971_v52  ;;  %v5981_v54 = vunpack.i.h.bf16 %v8640_v1 }
 0x305   : > { %v8841_v16 = vpop.permute.xlu0 %6113  ;;  %v6081_v14 = vunpack.i.h.bf16 %v8785_v0  ;;  %v3220_v28 = vsel %vm1016_vm8, %v3212_v33, %v5976_v38 }
 0x306   : > { %v8849_v27 = vpop.permute.xlu1 %6128  ;;  %v3219_v10 = vsel %vm1016_vm8, %v3211_v15, %v5975_v21  ;;  %v6080_v15 = vunpack.i.l.bf16 %v8785_v0  ;;  %v6096_v21 = vunpack.i.h.bf16 %v8787_v55 }
 0x307   : > { %9789 = vst [vmem:[#allocation38_spill] sm:$0xff] %v8849_v27  ;;  %6418 = vrot.lane.b32.xlu0 %v8364_v42, %s6622_s17  ;;  %v5980_v27 = vunpack.i.l.bf16 %v8640_v1  ;;  %v3656_v33 = vsel %vm327_vm0, %v8476_v53, %v6081_v14 }
 0x308   : > { %6413 = vrot.lane.b32.xlu1 %v8375_v51, %s6621_s16  ;;  %v6095_v51 = vunpack.i.l.bf16 %v8787_v55 }
 0x309   : > { %v6144_v42 = vpop.permute.xlu0 %6143  ;;  %v3227_v22 = vsel %vm1025_vm9, %v3219_v10, %v5980_v27 }
 0x30a   : > { %v6134_v52 = vpop.permute.xlu1 %6133  ;;  %v6146_v30 = vunpack.i.h.bf16 %v6144_v42  ;;  %v6145_v9 = vunpack.i.l.bf16 %v6144_v42 }
 0x30b   : > { %6428 = vrot.lane.b32.xlu0 %v8574_v49, %s6623_s18  ;;  %v6136_v61 = vunpack.i.h.bf16 %v6134_v52  ;;  %v6135_v1 = vunpack.i.l.bf16 %v6134_v52  ;;  %v3228_v49 = vsel %vm1025_vm9, %v3220_v28, %v5981_v54 }
 0x30c   : > { %6423 = vrot.lane.b32.xlu1 %v8357_v12, %s6622_s17  ;;  %v6085_v12 = vunpack.i.l.bf16 %v8792_v44  ;;  %v3235_v55 = vsel %vm1034_vm10, %v3227_v22, %v6145_v9  ;;  %v3236_v27 = vsel %vm1034_vm10, %v3228_v49, %v6146_v30 }
 0x30d   : > { %v6149_v7 = vpop.permute.xlu0 %6148  ;;  %v3198_v53 = vsel %vm327_vm0, %v8498_v3, %v6136_v61 }
 0x30e   : > { %v6151_v38 = vunpack.i.h.bf16 %v6149_v7  ;;  %v6150_v42 = vunpack.i.l.bf16 %v6149_v7  ;;  %v6139_v52 = vpop.permute.xlu1 %6138  ;;  %v3197_v7 = vsel %vm327_vm0, %v8558_v59, %v6135_v1 }
 0x30f   : > { %v6141_v0 = vunpack.i.h.bf16 %v6139_v52  ;;  %v6140_v45 = vunpack.i.l.bf16 %v6139_v52  ;;  %6438 = vrot.lane.b32.xlu0 %v8591_v5, %s6624_s19 }
 0x310   : > { %6433 = vrot.lane.b32.xlu1 %v8506_v23, %s6623_s18  ;;  %v3243_v44 = vsel %vm1043_vm11, %v3235_v55, %v6150_v42  ;;  %v3244_v14 = vsel %vm1043_vm11, %v3236_v27, %v6151_v38 }
 0x311   : > { %v3205_v28 = vsel %vm998_vm6, %v3197_v7, %v6140_v45  ;;  %v3206_v5 = vsel %vm998_vm6, %v3198_v53, %v6141_v0  ;;  %v6154_v9 = vpop.permute.xlu0 %6153 }
 0x312   : > { %v3213_v54 = vsel %vm1007_vm7, %v3205_v28, %v5930_v4  ;;  %v3214_v10 = vsel %vm1007_vm7, %v3206_v5, %v5931_v20  ;;  %v6156_v3 = vunpack.i.h.bf16 %v6154_v9  ;;  %v6155_v61 = vunpack.i.l.bf16 %v6154_v9  ;;  %v6159_v30 = vpop.permute.xlu1 %6158 }
 0x313   : > { %v3221_v59 = vsel %vm1016_vm8, %v3213_v54, %v5935_v29  ;;  %v3222_v23 = vsel %vm1016_vm8, %v3214_v10, %v5936_v39  ;;  %v6161_v1 = vunpack.i.h.bf16 %v6159_v30  ;;  %v6160_v22 = vunpack.i.l.bf16 %v6159_v30  ;;  %6448 = vrot.lane.b32.xlu0 %v8601_v17, %s6625_s22  ;;  %v8954_v10 = vld [vmem:[#allocation3 + $0x61] sm:$0xff] }
 0x314   : > { %v3229_v45 = vsel %vm1025_vm9, %v3221_v59, %v5940_v6  ;;  %v3230_v49 = vsel %vm1025_vm9, %v3222_v23, %v5941_v34  ;;  %v3251_v4 = vsel %vm1052_vm12, %v3243_v44, %v6155_v61  ;;  %v3252_v20 = vsel %vm1052_vm12, %v3244_v14, %v6156_v3  ;;  %6443 = vrot.lane.b32.xlu1 %v8521_v24, %s6624_s19  ;;  %v8956_v3 = vld [vmem:[#allocation3 + $0x81] sm:$0xff] }
 0x315   : > { %v6100_v29 = vunpack.i.l.bf16 %v8794_v43  ;;  %v3237_v39 = vsel %vm1034_vm10, %v3229_v45, %v6090_v26  ;;  %v3238_v38 = vsel %vm1034_vm10, %v3230_v49, %v6091_v58  ;;  %v3259_v42 = vpack.c.bf16 %v3252_v20, %v3251_v4  ;;  %v8917_v52 = vpop.permute.xlu0 %6183 }
 0x316   : > { %v3655_v17 = vsel %vm327_vm0, %v8472_v41, %v6080_v15  ;;  %v6101_v6 = vunpack.i.h.bf16 %v8794_v43  ;;  %v3245_v34 = vsel %vm1043_vm11, %v3237_v39, %v6095_v51  ;;  %v3246_v0 = vsel %vm1043_vm11, %v3238_v38, %v6096_v21  ;;  %v6164_v55 = vpop.permute.xlu1 %6163  ;;  %v9791_v15 = vld [vmem:[#allocation9_spill] sm:$0xff]  ;;  %v9801_v39 = vld [vmem:[#allocation4_spill] sm:$0xff] }
 0x317   : > { %v3663_v24 = vsel %vm998_vm6, %v3655_v17, %v6085_v12  ;;  %v6166_v27 = vunpack.i.h.bf16 %v6164_v55  ;;  %v6165_v53 = vunpack.i.l.bf16 %v6164_v55  ;;  %v9790_v26 = vpack.i.bf16 %v8828_v40, %v8818_v18  ;;  %5199 = vmatprep.mubr.msk.bf16.mxu0 %vm1101_vm13, %v3259_v42 }
 0x318   : > { %v3253_v41 = vsel %vm1052_vm12, %v3245_v34, %v6100_v29  ;;  %v3664_v43 = vsel %vm998_vm6, %v3656_v33, %v6086_v46  ;;  %v3658_v51 = vsel %vm327_vm0, %v8517_v35, %v6161_v1  ;;  %v3657_v58 = vsel %vm327_vm0, %v8565_v50, %v6160_v22  ;;  %6453 = vrot.lane.b32.xlu1 %v9791_v15, %s6625_s22  ;;  %v9792_v33 = vld [vmem:[#allocation20_spill] sm:$0xff]  ;;  %v8981_v29 = vld [vmem:[#allocation3 + $0x51] sm:$0xff] }
 0x319   : > { %6458 = vrot.lane.b32.xlu0 %v9790_v26, %s6626_s29  ;;  %v3254_v21 = vsel %vm1052_vm12, %v3246_v0, %v6101_v6  ;;  %v5986_v18 = vunpack.i.h.bf16 %v8655_v13  ;;  %v3665_v40 = vsel %vm998_vm6, %v3657_v58, %v6165_v53  ;;  %v3666_v12 = vsel %vm998_vm6, %v3658_v51, %v6166_v27  ;;  %v8942_v7 = vpop.permute.xlu0 %6188  ;;  %v9802_v26 = vld [vmem:[#allocation23_spill] sm:$0xff]  ;;  %v9014_v15 = vld [vmem:[%s9661_s5 + $0x10] sm:$0xff]  }
 0x31a   : > { %v3260_v46 = vpack.c.bf16 %v3254_v21, %v3253_v41  ;;  %v5991_v44 = vunpack.i.h.bf16 %v9792_v33  ;;  %v9793_v35 = vunpack.i.l.bf16 %v8655_v13  ;;  %v9794_v14 = vunpack.i.l.bf16 %v8636_v8  ;;  %v6169_v54 = vpop.permute.xlu1 %6168  ;;  %v9803_v21 = vld [vmem:[#allocation16_spill] sm:$0xff] }
 0x31b   : > { %v9795_v5 = vunpack.i.h.bf16 %v8636_v8  ;;  %v5990_v61 = vunpack.i.l.bf16 %v9792_v33  ;;  %v3672_v30 = vsel %vm1007_vm7, %v3664_v43, %v5986_v18  ;;  %v9796_v13 = vunpack.i.l.bf16 %v8595_v60 }
 0x31c   : > { %v3671_v50 = vsel %vm1007_vm7, %v3663_v24, %v9793_v35  ;;  %v3673_v28 = vsel %vm1007_vm7, %v3665_v40, %v9794_v14  ;;  %v9797_v23 = vunpack.i.h.bf16 %v8595_v60  ;;  %5200 = vmatmul.mubr.msk.bf16.vlgmr.msra.gmra.mrb[16].mxu0 %vm1101_vm13, %v3260_v46  ;;  %v6106_v8 = vunpack.i.h.bf16 %v8803_v47 }
 0x31d   : > { %v3674_v9 = vsel %vm1007_vm7, %v3666_v12, %v9795_v5  ;;  %v3681_v59 = vsel %vm1016_vm8, %v3673_v28, %v9796_v13  ;;  %6468 = vrot.lane.b32.xlu0 %v8725_v31, %s6627_s12  ;;  %v6105_v22 = vunpack.i.l.bf16 %v8803_v47  ;;  %v9798_v45 = vunpack.i.l.bf16 %v8608_v11  ;;  %v8983_v31 = vld [vmem:[#allocation3 + $0x71] sm:$0xff]  ;;  %v8988_v47 = vld [vmem:[%s9661_s5 + $0x8] sm:$0xff]   ;;  %v8991_v42 = vpop.permute.xlu0 %6193  ;;  %5226 = vmatpush3.bf16.msra.mxu0 %v8705_v25 }
 0x31e   : > { %v3682_v1 = vsel %vm1016_vm8, %v3674_v9, %v9797_v23  ;;  %v9799_v4 = vunpack.i.h.bf16 %v8608_v11  ;;  %v9800_v60 = vpack.i.bf16 %v8823_v63, %v8836_v56  ;;  %v5961_v38 = vunpack.i.h.bf16 %v9801_v39  ;;  %v6174_v0 = vpop.permute.xlu1 %6173  ;;  %5227 = vmatprep.subr.bf16.mxu0 %v8988_v47  ;;  %v9042_v13 = vld [vmem:[%s9661_s5 + $0x18] sm:$0xff]  }
 0x31f   : > { %v3689_v49 = vsel %vm1025_vm9, %v3681_v59, %v9798_v45  ;;  %v6482_v11 = vpack.i.bf16 %v8954_v10, %v8981_v29  ;;  %v6492_v63 = vpack.i.bf16 %v8956_v3, %v8983_v31  ;;  %v3679_v6 = vsel %vm1016_vm8, %v3671_v50, %v5990_v61  ;;  %v9804_v59 = vld [vmem:[#allocation18_spill] sm:$0xff]  ;;  %v9050_v45 = vld [vmem:[#allocation3 + $0x120] sm:$0xff] }
 0x320   : > { %v3690_v20 = vsel %vm1025_vm9, %v3682_v1, %v9799_v4  ;;  %6463 = vrot.lane.b32.xlu1 %v9800_v60, %s6626_s29  ;;  %v3697_v56 = vsel %vm1034_vm10, %v3689_v49, %v6105_v22  ;;  %v3680_v34 = vsel %vm1016_vm8, %v3672_v30, %v5991_v44  ;;  %v6111_v55 = vunpack.i.h.bf16 %v8816_v32  ;;  %v9037_v30 = vld [vmem:[#allocation3 + $0x100] sm:$0xff]  ;;  %v9052_v49 = vld [vmem:[#allocation3 + $0x130] sm:$0xff] }
 0x321   : > { %v3698_v17 = vsel %vm1034_vm10, %v3690_v20, %v6106_v8  ;;  %v6110_v24 = vunpack.i.l.bf16 %v8816_v32  ;;  %v6171_v27 = vunpack.i.h.bf16 %v6169_v54  ;;  %v6170_v53 = vunpack.i.l.bf16 %v6169_v54  ;;  %6478 = vrot.lane.b32.xlu0 %v8362_v37, %s6628_s13  ;;  %v9020_v12 = vpop.permute.xlu0 %6198  ;;  %5228 = vmatpush3.bf16.msra.mxu0 %v8988_v47  ;;  %v9805_v20 = vld [vmem:[#allocation21_spill] sm:$0xff] }
 0x322   : > { %v5996_v41 = vunpack.i.h.bf16 %v9802_v26  ;;  %v5995_v43 = vunpack.i.l.bf16 %v9802_v26  ;;  %v6176_v51 = vunpack.i.h.bf16 %v6174_v0  ;;  %v6175_v58 = vunpack.i.l.bf16 %v6174_v0  ;;  %v6179_v35 = vpop.permute.xlu1 %6178  ;;  %5229 = vmatprep.subr.bf16.mxu0 %v9014_v15  ;;  %v9081_v26 = vld [vmem:[%s9661_s5 + $0x20] ss:$0 sps:$4 sm:$0xff]  }
 0x323   : > { %v5960_v32 = vunpack.i.l.bf16 %v9801_v39  ;;  %v5965_v18 = vunpack.i.l.bf16 %v9803_v21  ;;  %v3705_v37 = vsel %vm1043_vm11, %v3697_v56, %v6110_v24  ;;  %v3706_v40 = vsel %vm1043_vm11, %v3698_v17, %v6111_v55  ;;  %v6603_v55 = vld [vmem:[#allocation3 + $0x41] sm:$0xff] }
 0x324   : > { %6473 = vrot.lane.b32.xlu1 %v8736_v62, %s6627_s12  ;;  %v6116_v46 = vunpack.i.h.bf16 %v8841_v16  ;;  %v6115_v62 = vunpack.i.l.bf16 %v8841_v16  ;;  %v3687_v33 = vsel %vm1025_vm9, %v3679_v6, %v5995_v43  ;;  %v3688_v44 = vsel %vm1025_vm9, %v3680_v34, %v5996_v41  ;;  %v9060_v6 = vld [vmem:[#allocation3 + $0x110] sm:$0xff] }
 0x325   : > { %v3695_v50 = vsel %vm1034_vm10, %v3687_v33, %v6170_v53  ;;  %v3696_v14 = vsel %vm1034_vm10, %v3688_v44, %v6171_v27  ;;  %v6181_v28 = vunpack.i.h.bf16 %v6179_v35  ;;  %v6180_v5 = vunpack.i.l.bf16 %v6179_v35  ;;  %6488 = vrot.lane.b32.xlu0 %v8382_v48, %s6628_s13  ;;  %v9048_v22 = vpop.permute.xlu0 %6203  ;;  %5230 = vmatpush3.bf16.msra.mxu0 %v9014_v15  ;;  %v6604_v27 = vld [vmem:[#allocation3 + $0x31] sm:$0xff] }
 0x326   : > { %v3703_v9 = vsel %vm1043_vm11, %v3695_v50, %v6175_v58  ;;  %v3704_v16 = vsel %vm1043_vm11, %v3696_v14, %v6176_v51  ;;  %v3713_v54 = vsel %vm1052_vm12, %v3705_v37, %v6115_v62  ;;  %v3714_v61 = vsel %vm1052_vm12, %v3706_v40, %v6116_v46  ;;  %v9058_v17 = vpop.permute.xlu1 %6218  ;;  %5231 = vmatprep.subr.bf16.mxu0 %v9042_v13  ;;  %v6606_v43 = vld [vmem:[#allocation3 + $0x11] sm:$0xff]  ;;  %v9806_v46 = vld [vmem:[#allocation24_spill] sm:$0xff] }
 0x327   : > { %v6001_v23 = vunpack.i.h.bf16 %v9804_v59  ;;  %v6000_v48 = vunpack.i.l.bf16 %v9804_v59  ;;  %v3711_v1 = vsel %vm1052_vm12, %v3703_v9, %v6180_v5  ;;  %v3712_v8 = vsel %vm1052_vm12, %v3704_v16, %v6181_v28  ;;  %v9807_v35 = vld [vmem:[#allocation15_spill] sm:$0xff]  ;;  %v9808_v9 = vld [vmem:[#allocation25_spill] sm:$0xff] }
 0x328   : > { %6483 = vrot.lane.b32.xlu1 %v6482_v11, %s6621_s16  ;;  %v5966_v4 = vunpack.i.h.bf16 %v9803_v21  ;;  %v6006_v60 = vunpack.i.h.bf16 %v9805_v20  ;;  %v6005_v11 = vunpack.i.l.bf16 %v9805_v20  ;;  %v3719_v56 = vpack.c.bf16 %v3712_v8, %v3711_v1  ;;  %v9809_v59 = vld [vmem:[#allocation27_spill] sm:$0xff]  ;;  %v9811_v20 = vld [vmem:[#allocation29_spill] sm:$0xff] }
 0x329   : > { %6498 = vrot.lane.b32.xlu0 %v8391_v36, %s6622_s17  ;;  %v3720_v34 = vpack.c.bf16 %v3714_v61, %v3713_v54  ;;  %v6537_v0 = vpack.i.bf16 %v9060_v6, %v9037_v30  ;;  %v4654_v24 = vsel %vm327_vm0, %v6603_v55, %v5961_v38  ;;  %v4653_v53 = vsel %vm327_vm0, %v6604_v27, %v5960_v32  ;;  %v6605_v38 = vld [vmem:[#allocation3 + $0x21] sm:$0xff]  ;;  %v9814_v27 = vld [vmem:[#allocation35_spill] sm:$0xff] }
 0x32a   : > { %5217 = vmatprep.mubr.msk.bf16.mxu1 %vm1101_vm13, %v3719_v56  ;;  %v6542_v36 = vpack.i.bf16 %v9052_v49, %v9050_v45  ;;  %v9084_v39 = vsel %vm998_vm6, %v4653_v53, %v5965_v18  ;;  %v4652_v41 = vsel %vm327_vm0, %v6605_v38, %v6001_v23  ;;  %v4651_v51 = vsel %vm327_vm0, %v6606_v43, %v6000_v48  ;;  %v9100_v37 = vpop.permute.xlu1 %6223  ;;  %v9810_v48 = vld [vmem:[#allocation26_spill] sm:$0xff] }
 0x32b   : > { %5218 = vmatmul.mubr.msk.bf16.vlgmr.msra.gmra.mrb[16].mxu1 %vm1101_vm13, %v3720_v34  ;;  %5232 = vmatpush3.bf16.msra.mxu0 %v9042_v13  ;;  %v4662_v58 = vsel %vm998_vm6, %v4654_v24, %v5966_v4  ;;  %v9094_v32 = vsel %vm998_vm6, %v4651_v51, %v6005_v11  ;;  %v9097_v21 = vsel %vm998_vm6, %v4652_v41, %v6006_v60  ;;  %v6041_v62 = vunpack.i.h.bf16 %v9806_v46  ;;  %v9812_v56 = vld [vmem:[#allocation14_spill] sm:$0xff]  ;;  %v9813_v24 = vld [vmem:[#allocation19_spill] sm:$0xff]  ;;  %v9816_v51 = vld [vmem:[#allocation28_spill] sm:$0xff] }
 0x32c   : > { %6493 = vrot.lane.b32.xlu1 %v6492_v63, %s6621_s16  ;;  %v9088_v63 = vpop.permute.xlu0 %6208  ;;  %5244 = vmatpush3.bf16.msra.mxu1 %v8705_v25  ;;  %v6201_v33 = vunpack.i.h.bf16 %v9020_v12  ;;  %v6200_v44 = vunpack.i.l.bf16 %v9020_v12  ;;  %v6040_v50 = vunpack.i.l.bf16 %v9806_v46  ;;  %v6206_v25 = vunpack.i.h.bf16 %v9048_v22  ;;  %v9815_v43 = vld [vmem:[#allocation6_spill] sm:$0xff]  ;;  %v9819_v60 = vld [vmem:[#allocation33_spill] sm:$0xff] }
 0x32d   : > { %5267 = vmatprep.subr.msk.bf16.mxu0 %vm1114_vm5, %v9081_v26  ;;  %6508 = vrot.lane.b32.xlu0 %v9807_v35, %s6623_s18  ;;  %v6205_v14 = vunpack.i.l.bf16 %v9048_v22  ;;  %v9119_v28 = vsel %vm1114_vm5, %v9081_v26, 0  ;;  %v6046_v16 = vunpack.i.h.bf16 %v9808_v9  ;;  %v6045_v54 = vunpack.i.l.bf16 %v9808_v9  ;;  %v2871_v22 = vld [vmem:[#allocation3 + $0x220] sm:$0xff]  ;;  %v9821_v23 = vld [vmem:[#allocation22_spill] sm:$0xff] }
 0x32e   : > { %5245 = vmatprep.subr.bf16.mxu1 %v8988_v47  ;;  %v6051_v1 = vunpack.i.h.bf16 %v9810_v48  ;;  %v6050_v8 = vunpack.i.l.bf16 %v9810_v48  ;;  %v9132_v4 = vpop.permute.xlu1 %6228  ;;  %v3200_v34 = vsel %vm327_vm0, %v9812_v56, %v6201_v33  ;;  %v3199_v55 = vsel %vm327_vm0, %v2871_v22, %v6200_v44  ;;  %v9817_v44 = vld [vmem:[#allocation31_spill] sm:$0xff]  ;;  %v9818_v56 = vld [vmem:[#allocation30_spill] sm:$0xff] }
 0x32f   : > { %5234 = vmatpush3.bf16.msra.mxu0 %v9119_v28  ;;  %v6121_v53 = vunpack.i.h.bf16 %v9814_v27  ;;  %v6120_v38 = vunpack.i.l.bf16 %v9814_v27  ;;  %v3208_v41 = vsel %vm998_vm6, %v3200_v34, %v6206_v25  ;;  %v6056_v46 = vunpack.i.h.bf16 %v9816_v51 }
 0x330   : > { %6503 = vrot.lane.b32.xlu1 %v8385_v57, %s6622_s17  ;;  %v9125_v61 = vpop.permute.xlu0 %6213  ;;  %5246 = vmatpush3.bf16.msra.mxu1 %v8988_v47  ;;  %v3207_v47 = vsel %vm998_vm6, %v3199_v55, %v6205_v14  ;;  %v6055_v33 = vunpack.i.l.bf16 %v9816_v51  ;;  %v6060_v27 = vunpack.i.l.bf16 %v9818_v56  ;;  %v9820_v55 = vld [vmem:[#allocation32_spill] sm:$0xff]  ;;  %v3216_v9 = vsel %vm1007_vm7, %v3208_v41, %v6041_v62  ;;  %v9823_v62 = vld [vmem:[#allocation37_spill] sm:$0xff] }
 0x331   : > { %6518 = vrot.lane.b32.xlu0 %v9813_v24, %s6624_s19  ;;  %5247 = vmatprep.subr.bf16.mxu1 %v9014_v15  ;;  %v6061_v24 = vunpack.i.h.bf16 %v9818_v56  ;;  %v6065_v11 = vunpack.i.l.bf16 %v9820_v55  ;;  %v3215_v35 = vsel %vm1007_vm7, %v3207_v47, %v6040_v50  ;;  %v9168_v14 = vsel %vm1007_vm7, %v4662_v58, %v6121_v53  ;;  %v9822_v50 = vld [vmem:[#allocation11_spill] sm:$0xff] }
 0x332   : > { %v9157_v34 = vpop.permute.xlu1 %6233  ;;  %v9172_v25 = vsel %vm1007_vm7, %v9084_v39, %v6120_v38  ;;  %v6210_v57 = vunpack.i.l.bf16 %v9088_v63  ;;  %v6216_v41 = vunpack.i.h.bf16 %v9125_v61  ;;  %v6215_v58 = vunpack.i.l.bf16 %v9125_v61  ;;  %v9824_v61 = vld [vmem:[#allocation8_spill] sm:$0xff] }
 0x333   : > { %v3223_v39 = vsel %vm1016_vm8, %v3215_v35, %v6045_v54  ;;  %v3224_v38 = vsel %vm1016_vm8, %v3216_v9, %v6046_v16  ;;  %v6190_v16 = vunpack.i.l.bf16 %v8942_v7  ;;  %v6195_v54 = vunpack.i.l.bf16 %v8991_v42  ;;  %v9825_v9 = vld [vmem:[#allocation12_spill] sm:$0xff] }
 0x334   : > { %6513 = vrot.lane.b32.xlu1 %v9815_v43, %s6623_s18  ;;  %v6259_v22 = vpop.permute.xlu0 %6258  ;;  %5248 = vmatpush3.bf16.msra.mxu1 %v9014_v15  ;;  %v6066_v43 = vunpack.i.h.bf16 %v9820_v55  ;;  %v6211_v15 = vunpack.i.h.bf16 %v9088_v63  ;;  %v6185_v63 = vunpack.i.l.bf16 %v8917_v52  ;;  %v6225_v56 = vunpack.i.l.bf16 %v9100_v37 }
 0x335   : > { %6528 = vrot.lane.b32.xlu0 %v9821_v23, %s6625_s22  ;;  %5249 = vmatprep.subr.bf16.mxu1 %v9042_v13  ;;  %v6186_v23 = vunpack.i.h.bf16 %v8917_v52  ;;  %v6261_v12 = vunpack.i.h.bf16 %v6259_v22  ;;  %v6260_v5 = vunpack.i.l.bf16 %v6259_v22  ;;  %v6607_v52 = vld [vmem:[#allocation3 + $0x181] sm:$0xff] }
 0x336   : > { %v9184_v18 = vpop.permute.xlu1 %6238  ;;  %v3659_v35 = vsel %vm327_vm0, %v6607_v52, %v6210_v57 }
 0x337   : > { %v3667_v22 = vsel %vm998_vm6, %v3659_v35, %v6215_v58  ;;  %v9826_v58 = vld [vmem:[#allocation5_spill] sm:$0xff]  ;;  %v6221_v35 = vunpack.i.h.bf16 %v9058_v17 }
 0x338   : > { %6523 = vrot.lane.b32.xlu1 %v9822_v50, %s6624_s19  ;;  %v6264_v53 = vpop.permute.xlu0 %6263  ;;  %5250 = vmatpush3.bf16.msra.mxu1 %v9042_v13  ;;  %v6191_v50 = vunpack.i.h.bf16 %v8942_v7  ;;  %v3660_v13 = vsel %vm327_vm0, %v9824_v61, %v6211_v15  ;;  %v3232_v7 = vsel %vm1025_vm9, %v3224_v38, %v6051_v1 }
 0x339   : > { %v6266_v47 = vunpack.i.h.bf16 %v6264_v53  ;;  %v6265_v40 = vunpack.i.l.bf16 %v6264_v53  ;;  %6538 = vrot.lane.b32.xlu0 %v6537_v0, %s6626_s29  ;;  %5268 = vmatprep.subr.msk.bf16.mxu1 %vm1114_vm5, %v9081_v26  ;;  %v3668_v0 = vsel %vm998_vm6, %v3660_v13, %v6216_v41  ;;  %v3231_v26 = vsel %vm1025_vm9, %v3223_v39, %v6050_v8 }
 0x33a   : > { %v3239_v15 = vsel %vm1034_vm10, %v3231_v26, %v6260_v5  ;;  %v3240_v57 = vsel %vm1034_vm10, %v3232_v7, %v6261_v12  ;;  %v4667_v41 = vsel %vm1007_vm7, %v9094_v32, %v6185_v63  ;;  %v6196_v8 = vunpack.i.h.bf16 %v8991_v42  ;;  %v9829_v26 = vld [vmem:[#allocation34_spill] sm:$0xff] }
 0x33b   : > { %v3247_v48 = vsel %vm1043_vm11, %v3239_v15, %v6265_v40  ;;  %v3248_v1 = vsel %vm1043_vm11, %v3240_v57, %v6266_v47  ;;  %v3675_v12 = vsel %vm1007_vm7, %v3667_v22, %v6055_v33  ;;  %v3676_v5 = vsel %vm1007_vm7, %v3668_v0, %v6056_v46  ;;  %v9827_v47 = vld [vmem:[#allocation38_spill] sm:$0xff] }
 0x33c   : > { %6533 = vrot.lane.b32.xlu1 %v9825_v9, %s6625_s22  ;;  %v6269_v53 = vpop.permute.xlu0 %6268  ;;  %v9212_v9 = vpop.permute.xlu1 %6243  ;;  %5252 = vmatpush3.bf16.msra.mxu1 %v9119_v28  ;;  %v6125_v42 = vunpack.i.l.bf16 %v9823_v62  ;;  %v4668_v32 = vsel %vm1007_vm7, %v9097_v21, %v6186_v23  ;;  %v4675_v40 = vsel %vm1016_vm8, %v4667_v41, %v6190_v16  ;;  %v6131_v46 = vunpack.i.h.bf16 %v9827_v47  ;;  %v9828_v16 = vld [vmem:[#allocation7_spill] sm:$0xff]  ;;  %s6629_s22 = smov 4  }
 0x33d   : > { %v6271_v61 = vunpack.i.h.bf16 %v6269_v53  ;;  %v6270_v52 = vunpack.i.l.bf16 %v6269_v53  ;;  %6548 = vrot.lane.b32.xlu0 %v9826_v58, %s6627_s12  ;;  %v6130_v38 = vunpack.i.l.bf16 %v9827_v47  ;;  %v4676_v63 = vsel %vm1016_vm8, %v4668_v32, %v6191_v50 }
 0x33e   : > { %v9240_v13 = vsel %vm1025_vm9, %v4675_v40, %v6195_v54  ;;  %v3683_v21 = vsel %vm1016_vm8, %v3675_v12, %v6060_v27  ;;  %v3684_v23 = vsel %vm1016_vm8, %v3676_v5, %v6061_v24  ;;  %v6220_v7 = vunpack.i.l.bf16 %v9058_v17  ;;  %v9830_v5 = vld [vmem:[#allocation13_spill] sm:$0xff] }
 0x33f   : > { %v3255_v28 = vsel %vm1052_vm12, %v3247_v48, %v6270_v52  ;;  %v3256_v39 = vsel %vm1052_vm12, %v3248_v1, %v6271_v61  ;;  %v6226_v27 = vunpack.i.h.bf16 %v9100_v37  ;;  %v6231_v24 = vunpack.i.h.bf16 %v9132_v4  ;;  %v2874_v48 = vld [vmem:[#allocation3 + $0x250] sm:$0xff] }
 0x340   : > { %6543 = vrot.lane.b32.xlu1 %v6542_v36, %s6626_s29  ;;  %v3261_v33 = vpack.c.bf16 %v3256_v39, %v3255_v28  ;;  %v6284_v51 = vpop.permute.xlu0 %6283  ;;  %v6249_v49 = vpop.permute.xlu1 %6248  ;;  %v9243_v36 = vsel %vm1025_vm9, %v4676_v63, %v6196_v8  ;;  %v6230_v15 = vunpack.i.l.bf16 %v9132_v4  ;;  %v6236_v57 = vunpack.i.h.bf16 %v9157_v34  ;;  %v9831_v39 = vld [vmem:[#allocation36_spill] sm:$0xff]  ;;  %s5025_s29 = sshll.u32 %s9848_s28, 7 }
 0x341   : > { %6558 = vrot.lane.b32.xlu0 %v9828_v16, %s6628_s13  ;;  %v6286_v50 = vunpack.i.h.bf16 %v6284_v51  ;;  %v6285_v54 = vunpack.i.l.bf16 %v6284_v51  ;;  %v6251_v22 = vunpack.i.h.bf16 %v6249_v49  ;;  %v6250_v0 = vunpack.i.l.bf16 %v6249_v49  ;;  %s9573_s25 = scalar_lea.vmem %s9664_s8, %s5025_s29 }
 0x342   : > { %5203 = vmatprep.mubr.msk.bf16.mxu0 %vm1101_vm13, %v3261_v33  ;;  %v3691_v8 = vsel %vm1025_vm9, %v3683_v21, %v6065_v11  ;;  %v3692_v17 = vsel %vm1025_vm9, %v3684_v23, %v6066_v43  ;;  %v9832_v33 = vunpack.i.l.bf16 %v8716_v19  ;;  %v9833_v63 = vunpack.i.h.bf16 %v8716_v19 }
 0x343   : > { %v3699_v58 = vsel %vm1034_vm10, %v3691_v8, %v6285_v54  ;;  %v3700_v4 = vsel %vm1034_vm10, %v3692_v17, %v6286_v50  ;;  %v3202_v12 = vsel %vm327_vm0, %v2874_v48, %v6251_v22  ;;  %v3201_v28 = vsel %vm327_vm0, %v9830_v5, %v6250_v0 }
 0x344   : > { %6553 = vrot.lane.b32.xlu1 %v9829_v26, %s6627_s12  ;;  %v6289_v53 = vpop.permute.xlu0 %6288  ;;  %v6254_v41 = vpop.permute.xlu1 %6253  ;;  %v9834_v50 = vunpack.i.l.bf16 %v8727_v2  ;;  %v9835_v22 = vunpack.i.h.bf16 %v8727_v2  ;;  %v9837_v19 = vunpack.i.h.bf16 %v9809_v59  ;;  %v6235_v48 = vunpack.i.l.bf16 %v9157_v34 }
 0x345   : > { %v6291_v61 = vunpack.i.h.bf16 %v6289_v53  ;;  %v6290_v52 = vunpack.i.l.bf16 %v6289_v53  ;;  %v6256_v37 = vunpack.i.h.bf16 %v6254_v41  ;;  %v6255_v1 = vunpack.i.l.bf16 %v6254_v41 }
 0x346   : > { %v6241_v2 = vunpack.i.h.bf16 %v9184_v18 }
 0x347   : > { %v3707_v11 = vsel %vm1043_vm11, %v3699_v58, %v6290_v52  ;;  %v3708_v55 = vsel %vm1043_vm11, %v3700_v4, %v6291_v61  ;;  %v3209_v43 = vsel %vm998_vm6, %v3201_v28, %v6255_v1  ;;  %v3210_v32 = vsel %vm998_vm6, %v3202_v12, %v6256_v37 }
 0x348   : > { %6563 = vrot.lane.b32.xlu1 %v9831_v39, %s6628_s13  ;;  %v6294_v40 = vpop.permute.xlu0 %6293  ;;  %v3217_v51 = vsel %vm1007_vm7, %v3209_v43, %v9832_v33  ;;  %v3218_v49 = vsel %vm1007_vm7, %v3210_v32, %v9833_v63  ;;  %v6274_v16 = vpop.permute.xlu1 %6273  ;;  %v9836_v61 = vunpack.i.l.bf16 %v9809_v59  ;;  %v6240_v4 = vunpack.i.l.bf16 %v9184_v18  ;;  %v9838_v32 = vld [vmem:[#allocation10_spill] sm:$0xff] }
 0x349   : > { %v6296_v21 = vunpack.i.h.bf16 %v6294_v40  ;;  %v6295_v23 = vunpack.i.l.bf16 %v6294_v40  ;;  %v3225_v54 = vsel %vm1016_vm8, %v3217_v51, %v9834_v50  ;;  %v3226_v0 = vsel %vm1016_vm8, %v3218_v49, %v9835_v22 }
 0x34a   : > { %v6276_v26 = vunpack.i.h.bf16 %v6274_v16  ;;  %v6275_v53 = vunpack.i.l.bf16 %v6274_v16  ;;  %v3233_v52 = vsel %vm1025_vm9, %v3225_v54, %v9836_v61  ;;  %v3234_v41 = vsel %vm1025_vm9, %v3226_v0, %v9837_v19 }
 0x34b   : > { %v3715_v8 = vsel %vm1052_vm12, %v3707_v11, %v6295_v23  ;;  %v3716_v17 = vsel %vm1052_vm12, %v3708_v55, %v6296_v21  ;;  %v3241_v58 = vsel %vm1034_vm10, %v3233_v52, %v6220_v7  ;;  %v3242_v59 = vsel %vm1034_vm10, %v3234_v41, %v6221_v35  ;;  %v9839_v7 = vld [vmem:[#allocation17_spill] sm:$0xff] }
 0x34c   : > { %v3721_v37 = vpack.c.bf16 %v3716_v17, %v3715_v8  ;;  %v6299_v1 = vpop.permute.xlu0 %6298  ;;  %v6279_v5 = vpop.permute.xlu1 %6278  ;;  %v3249_v28 = vsel %vm1043_vm11, %v3241_v58, %v6225_v56  ;;  %v3250_v55 = vsel %vm1043_vm11, %v3242_v59, %v6226_v27  ;;  %v3662_v40 = vsel %vm327_vm0, %v9838_v32, %v6276_v26 }
 0x34d   : > { %v6300_v12 = vunpack.i.l.bf16 %v6299_v1  ;;  %v6281_v39 = vunpack.i.h.bf16 %v6279_v5  ;;  %v6280_v11 = vunpack.i.l.bf16 %v6279_v5  ;;  %v3257_v43 = vsel %vm1052_vm12, %v3249_v28, %v6230_v15 }
 0x34e   : > { %5221 = vmatprep.mubr.msk.bf16.mxu1 %vm1101_vm13, %v3721_v37  ;;  %v3661_v18 = vsel %vm327_vm0, %v9839_v7, %v6275_v53  ;;  %v6301_v33 = vunpack.i.h.bf16 %v6299_v1  ;;  %v3258_v51 = vsel %vm1052_vm12, %v3250_v55, %v6231_v24  ;;  %v6246_v35 = vunpack.i.h.bf16 %v9212_v9 }
 0x34f   : > { %v3669_v56 = vsel %vm998_vm6, %v3661_v18, %v6280_v11  ;;  %v3670_v63 = vsel %vm998_vm6, %v3662_v40, %v6281_v39  ;;  %v3262_v21 = vpack.c.bf16 %v3258_v51, %v3257_v43  ;;  %v6245_v27 = vunpack.i.l.bf16 %v9212_v9 }
 0x350   : > { %v6309_v49 = vpop.permute.xlu0 %6308  ;;  %v9840_v15 = vunpack.i.l.bf16 %v9811_v20  ;;  %v9841_v16 = vunpack.i.h.bf16 %v9811_v20  ;;  %v6304_v24 = vpop.permute.xlu1 %6303  ;;  %v4691_v22 = vsel %vm1034_vm10, %v9240_v13, %v6300_v12  ;;  %v9842_v0 = vunpack.i.l.bf16 %v9817_v44 }
 0x351   : > { %v6310_v54 = vunpack.i.l.bf16 %v6309_v49  ;;  %v9843_v53 = vunpack.i.h.bf16 %v9817_v44  ;;  %v6311_v61 = vunpack.i.h.bf16 %v6309_v49  ;;  %5204 = vmatmul.mubr.msk.bf16.gmra.mrb[20].mxu0 %vm1101_vm13, %v3262_v21  ;;  %v4692_v20 = vsel %vm1034_vm10, %v9243_v36, %v6301_v33 }
 0x352   : > { %v3677_v23 = vsel %vm1007_vm7, %v3669_v56, %v9840_v15  ;;  %v3678_v50 = vsel %vm1007_vm7, %v3670_v63, %v9841_v16  ;;  %v9844_v52 = vunpack.i.l.bf16 %v9819_v60  ;;  %v9845_v13 = vunpack.i.h.bf16 %v9819_v60 }
 0x353   : > { %v3685_v26 = vsel %vm1016_vm8, %v3677_v23, %v9842_v0  ;;  %v3686_v9 = vsel %vm1016_vm8, %v3678_v50, %v9843_v53  ;;  %v6306_v8 = vunpack.i.h.bf16 %v6304_v24  ;;  %v4699_v17 = vsel %vm1043_vm11, %v4691_v22, %v6310_v54 }
 0x354   : > { %v3693_v19 = vsel %vm1025_vm9, %v3685_v26, %v9844_v52  ;;  %v3694_v41 = vsel %vm1025_vm9, %v3686_v9, %v9845_v13  ;;  %v6305_v44 = vunpack.i.l.bf16 %v6304_v24  ;;  %v6319_v37 = vpop.permute.xlu0 %6318  ;;  %v6314_v5 = vpop.permute.xlu1 %6313  ;;  %v4700_v28 = vsel %vm1043_vm11, %v4692_v20, %v6311_v61 }
 0x355   : > { %v3701_v1 = vsel %vm1034_vm10, %v3693_v19, %v6235_v48  ;;  %v3702_v58 = vsel %vm1034_vm10, %v3694_v41, %v6236_v57  ;;  %v6321_v36 = vunpack.i.h.bf16 %v6319_v37  ;;  %v6320_v12 = vunpack.i.l.bf16 %v6319_v37 }
 0x356   : > { %v3709_v59 = vsel %vm1043_vm11, %v3701_v1, %v6240_v4  ;;  %v3710_v60 = vsel %vm1043_vm11, %v3702_v58, %v6241_v2  ;;  %v6316_v39 = vunpack.i.h.bf16 %v6314_v5  ;;  %v6315_v43 = vunpack.i.l.bf16 %v6314_v5 }
 0x357   : > { %v3717_v11 = vsel %vm1052_vm12, %v3709_v59, %v6245_v27  ;;  %v3718_v55 = vsel %vm1052_vm12, %v3710_v60, %v6246_v35  ;;  %v4707_v48 = vsel %vm1052_vm12, %v4699_v17, %v6320_v12  ;;  %v4708_v34 = vsel %vm1052_vm12, %v4700_v28, %v6321_v36 }
 0x358   : > { %v3722_v57 = vpack.c.bf16 %v3718_v55, %v3717_v11  ;;  %v4677_v4 = vsel %vm1016_vm8, %v9172_v25, %v6125_v42  ;;  %v9846_v2 = vunpack.i.h.bf16 %v9823_v62  ;;  %v4715_v40 = vpack.c.bf16 %v4708_v34, %v4707_v48  ;;  %v6329_v7 = vpop.permute.xlu0 %6328  ;;  %v6324_v56 = vpop.permute.xlu1 %6323 }
 0x359   : > { %v4685_v18 = vsel %vm1025_vm9, %v4677_v4, %v6130_v38  ;;  %v6331_v51 = vunpack.i.h.bf16 %v6329_v7  ;;  %v6330_v35 = vunpack.i.l.bf16 %v6329_v7  ;;  %v6326_v50 = vunpack.i.h.bf16 %v6324_v56 }
 0x35a   : > { %v4678_v32 = vsel %vm1016_vm8, %v9168_v14, %v9846_v2  ;;  %5222 = vmatmul.mubr.msk.bf16.gmra.mrb[20].mxu1 %vm1101_vm13, %v3722_v57  ;;  %v4693_v62 = vsel %vm1034_vm10, %v4685_v18, %v6305_v44  ;;  %v6325_v54 = vunpack.i.l.bf16 %v6324_v56 }
 0x35b   : > { %v4686_v33 = vsel %vm1025_vm9, %v4678_v32, %v6131_v46  ;;  %5253 = vmatprep.mubr.msk.bf16.mxu1 %vm1101_vm13, %v4715_v40  ;;  %v4701_v14 = vsel %vm1043_vm11, %v4693_v62, %v6315_v43  ;;  %v4656_v19 = vsel %vm327_vm0, %v8954_v10, %v6326_v50 }
 0x35c   : > { %v4694_v25 = vsel %vm1034_vm10, %v4686_v33, %v6306_v8  ;;  %v4709_v47 = vsel %vm1052_vm12, %v4701_v14, %v6330_v35  ;;  %v6339_v46 = vpop.permute.xlu0 %6338  ;;  %v6334_v63 = vpop.permute.xlu1 %6333  ;;  %v4655_v52 = vsel %vm327_vm0, %v8981_v29, %v6325_v54 }
 0x35d   : > { %v4702_v42 = vsel %vm1043_vm11, %v4694_v25, %v6316_v39  ;;  %v6341_v22 = vunpack.i.h.bf16 %v6339_v46  ;;  %v6340_v0 = vunpack.i.l.bf16 %v6339_v46  ;;  %v6336_v26 = vunpack.i.h.bf16 %v6334_v63 }
 0x35e   : > { %v4710_v38 = vsel %vm1052_vm12, %v4702_v42, %v6331_v51  ;;  %v6335_v53 = vunpack.i.l.bf16 %v6334_v63 }
 0x35f   : > { %v4716_v49 = vpack.c.bf16 %v4710_v38, %v4709_v47  ;;  %v4664_v17 = vsel %vm998_vm6, %v4656_v19, %v6341_v22  ;;  %v4663_v44 = vsel %vm998_vm6, %v4655_v52, %v6340_v0  ;;  %v4658_v58 = vsel %vm327_vm0, %v8956_v3, %v6336_v26 }
 0x360   : > { %v6349_v21 = vpop.permute.xlu0 %6348  ;;  %v6344_v27 = vpop.permute.xlu1 %6343  ;;  %v4657_v36 = vsel %vm327_vm0, %v8983_v31, %v6335_v53 }
 0x361   : > { %v6351_v9 = vunpack.i.h.bf16 %v6349_v21  ;;  %v6350_v61 = vunpack.i.l.bf16 %v6349_v21  ;;  %v6346_v13 = vunpack.i.h.bf16 %v6344_v27  ;;  %v6345_v41 = vunpack.i.l.bf16 %v6344_v27 }
 0x362   : > { %5254 = vmatmul.mubr.msk.bf16.vlgmr.msra.gmra.mrb[24].mxu1 %vm1101_vm13, %v4716_v49 }
 0x363   : > { %v4671_v5 = vsel %vm1007_vm7, %v4663_v44, %v6350_v61  ;;  %v4672_v10 = vsel %vm1007_vm7, %v4664_v17, %v6351_v9  ;;  %v4665_v39 = vsel %vm998_vm6, %v4657_v36, %v6345_v41  ;;  %v4666_v11 = vsel %vm998_vm6, %v4658_v58, %v6346_v13 }
 0x364   : > { %v6359_v15 = vpop.permute.xlu0 %6358  ;;  %v6354_v23 = vpop.permute.xlu1 %6353 }
 0x365   : > { %v6361_v37 = vunpack.i.h.bf16 %v6359_v15  ;;  %v6360_v1 = vunpack.i.l.bf16 %v6359_v15  ;;  %v6356_v12 = vunpack.i.h.bf16 %v6354_v23  ;;  %v6355_v29 = vunpack.i.l.bf16 %v6354_v23 }
 0x367   : > { %v4679_v3 = vsel %vm1016_vm8, %v4671_v5, %v6360_v1  ;;  %v4680_v31 = vsel %vm1016_vm8, %v4672_v10, %v6361_v37  ;;  %v4673_v4 = vsel %vm1007_vm7, %v4665_v39, %v6355_v29  ;;  %v4674_v2 = vsel %vm1007_vm7, %v4666_v11, %v6356_v12  ;;  %v6608_v11 = vld [vmem:[#allocation3 + $0xc0] sm:$0xff] }
 0x368   : > { %v6369_v16 = vpop.permute.xlu0 %6368  ;;  %v6364_v24 = vpop.permute.xlu1 %6363 }
 0x369   : > { %v6371_v59 = vunpack.i.h.bf16 %v6369_v16  ;;  %v6370_v60 = vunpack.i.l.bf16 %v6369_v16  ;;  %v6366_v32 = vunpack.i.h.bf16 %v6364_v24  ;;  %v6365_v40 = vunpack.i.l.bf16 %v6364_v24 }
 0x36b   : > { %v4687_v7 = vsel %vm1025_vm9, %v4679_v3, %v6370_v60  ;;  %v4688_v18 = vsel %vm1025_vm9, %v4680_v31, %v6371_v59  ;;  %v4681_v23 = vsel %vm1016_vm8, %v4673_v4, %v6365_v40  ;;  %v4682_v16 = vsel %vm1016_vm8, %v4674_v2, %v6366_v32  ;;  %v3873_v60 = vld [vmem:[#allocation3 + $0xb0] sm:$0xff] }
 0x36c   : > { %v6379_v20 = vpop.permute.xlu0 %6378  ;;  %v6374_v8 = vpop.permute.xlu1 %6373 }
 0x36d   : > { %v6381_v55 = vunpack.i.h.bf16 %v6379_v20  ;;  %v6380_v48 = vunpack.i.l.bf16 %v6379_v20  ;;  %v6376_v33 = vunpack.i.h.bf16 %v6374_v8  ;;  %v6375_v51 = vunpack.i.l.bf16 %v6374_v8 }
 0x36f   : > { %v4695_v56 = vsel %vm1034_vm10, %v4687_v7, %v6380_v48  ;;  %v4696_v25 = vsel %vm1034_vm10, %v4688_v18, %v6381_v55  ;;  %v4689_v24 = vsel %vm1025_vm9, %v4681_v23, %v6375_v51  ;;  %v4690_v22 = vsel %vm1025_vm9, %v4682_v16, %v6376_v33  ;;  %v6609_v51 = vld [vmem:[#allocation3 + $0xe0] sm:$0xff] }
 0x370   : > { %v6389_v28 = vpop.permute.xlu0 %6388  ;;  %v6384_v34 = vpop.permute.xlu1 %6383 }
 0x371   : > { %v6391_v43 = vunpack.i.h.bf16 %v6389_v28  ;;  %v6390_v57 = vunpack.i.l.bf16 %v6389_v28  ;;  %v6386_v46 = vunpack.i.h.bf16 %v6384_v34  ;;  %v6385_v63 = vunpack.i.l.bf16 %v6384_v34 }
 0x373   : > { %v4703_v38 = vsel %vm1043_vm11, %v4695_v56, %v6390_v57  ;;  %v4704_v47 = vsel %vm1043_vm11, %v4696_v25, %v6391_v43  ;;  %v4697_v26 = vsel %vm1034_vm10, %v4689_v24, %v6385_v63  ;;  %v4698_v53 = vsel %vm1034_vm10, %v4690_v22, %v6386_v46  ;;  %v6610_v56 = vld [vmem:[#allocation3 + $0xd0] sm:$0xff] }
 0x374   : > { %v6399_v35 = vpop.permute.xlu0 %6398  ;;  %v6394_v42 = vpop.permute.xlu1 %6393 }
 0x375   : > { %v6401_v62 = vunpack.i.h.bf16 %v6399_v35  ;;  %v6400_v14 = vunpack.i.l.bf16 %v6399_v35  ;;  %v6396_v27 = vunpack.i.h.bf16 %v6394_v42  ;;  %v6395_v15 = vunpack.i.l.bf16 %v6394_v42 }
 0x377   : > { %v4711_v49 = vsel %vm1052_vm12, %v4703_v38, %v6400_v14  ;;  %v4712_v21 = vsel %vm1052_vm12, %v4704_v47, %v6401_v62  ;;  %v4705_v20 = vsel %vm1043_vm11, %v4697_v26, %v6395_v15  ;;  %v4706_v52 = vsel %vm1043_vm11, %v4698_v53, %v6396_v27 }
 0x378   : > { %v4717_v50 = vpack.c.bf16 %v4712_v21, %v4711_v49  ;;  %v6409_v54 = vpop.permute.xlu0 %6408  ;;  %v6404_v0 = vpop.permute.xlu1 %6403 }
 0x379   : > { %v6406_v9 = vunpack.i.h.bf16 %v6404_v0  ;;  %v6405_v61 = vunpack.i.l.bf16 %v6404_v0  ;;  %v6411_v36 = vunpack.i.h.bf16 %v6409_v54  ;;  %v6410_v12 = vunpack.i.l.bf16 %v6409_v54 }
 0x37a   : > { %5257 = vmatprep.mubr.msk.bf16.mxu1 %vm1101_vm13, %v4717_v50 }
 0x37b   : > { %v4713_v19 = vsel %vm1052_vm12, %v4705_v20, %v6405_v61  ;;  %v4714_v13 = vsel %vm1052_vm12, %v4706_v52, %v6406_v9  ;;  %v4204_v55 = vsel %vm327_vm0, %v6608_v11, %v6411_v36  ;;  %v4203_v48 = vsel %vm327_vm0, %v3873_v60, %v6410_v12 }
 0x37c   : > { %v6419_v41 = vpop.permute.xlu0 %6418  ;;  %v4718_v8 = vpack.c.bf16 %v4714_v13, %v4713_v19  ;;  %v6414_v17 = vpop.permute.xlu1 %6413 }
 0x37d   : > { %v6421_v10 = vunpack.i.h.bf16 %v6419_v41  ;;  %v6420_v59 = vunpack.i.l.bf16 %v6419_v41  ;;  %v6416_v28 = vunpack.i.h.bf16 %v6414_v17  ;;  %v6415_v39 = vunpack.i.l.bf16 %v6414_v17 }
 0x37e   : > { %5258 = vmatmul.mubr.msk.bf16.gmra.mrb[28].mxu1 %vm1101_vm13, %v4718_v8 }
 0x37f   : > { %v4211_v40 = vsel %vm998_vm6, %v4203_v48, %v6420_v59  ;;  %v4212_v7 = vsel %vm998_vm6, %v4204_v55, %v6421_v10  ;;  %v4206_v35 = vsel %vm327_vm0, %v6609_v51, %v6416_v28  ;;  %v4205_v25 = vsel %vm327_vm0, %v6610_v56, %v6415_v39 }
 0x380   : > { %v6429_v44 = vpop.permute.xlu0 %6428  ;;  %v6424_v37 = vpop.permute.xlu1 %6423 }
 0x381   : > { %v6431_v34 = vunpack.i.h.bf16 %v6429_v44  ;;  %v6430_v3 = vunpack.i.l.bf16 %v6429_v44  ;;  %v6426_v43 = vunpack.i.h.bf16 %v6424_v37  ;;  %v6425_v57 = vunpack.i.l.bf16 %v6424_v37 }
 0x383   : > { %v4219_v42 = vsel %vm1007_vm7, %v4211_v40, %v6430_v3  ;;  %v4220_v38 = vsel %vm1007_vm7, %v4212_v7, %v6431_v34  ;;  %v4213_v49 = vsel %vm998_vm6, %v4205_v25, %v6425_v57  ;;  %v4214_v21 = vsel %vm998_vm6, %v4206_v35, %v6426_v43 }
 0x384   : > { %v6439_v1 = vpop.permute.xlu0 %6438  ;;  %v6434_v58 = vpop.permute.xlu1 %6433 }
 0x385   : > { %v6441_v4 = vunpack.i.h.bf16 %v6439_v1  ;;  %v6440_v2 = vunpack.i.l.bf16 %v6439_v1  ;;  %v6436_v18 = vunpack.i.h.bf16 %v6434_v58  ;;  %v6435_v33 = vunpack.i.l.bf16 %v6434_v58 }
 0x387   : > { %v4227_v27 = vsel %vm1016_vm8, %v4219_v42, %v6440_v2  ;;  %v4228_v15 = vsel %vm1016_vm8, %v4220_v38, %v6441_v4  ;;  %v4221_v16 = vsel %vm1007_vm7, %v4213_v49, %v6435_v33  ;;  %v4222_v50 = vsel %vm1007_vm7, %v4214_v21, %v6436_v18 }
 0x388   : > { %v6449_v29 = vpop.permute.xlu0 %6448  ;;  %v6444_v5 = vpop.permute.xlu1 %6443 }
 0x389   : > { %v6451_v62 = vunpack.i.h.bf16 %v6449_v29  ;;  %v6450_v14 = vunpack.i.l.bf16 %v6449_v29  ;;  %v6446_v26 = vunpack.i.h.bf16 %v6444_v5  ;;  %v6445_v53 = vunpack.i.l.bf16 %v6444_v5 }
 0x38b   : > { %v4235_v22 = vsel %vm1025_vm9, %v4227_v27, %v6450_v14  ;;  %v4236_v0 = vsel %vm1025_vm9, %v4228_v15, %v6451_v62  ;;  %v4229_v12 = vsel %vm1016_vm8, %v4221_v16, %v6445_v53  ;;  %v4230_v29 = vsel %vm1016_vm8, %v4222_v50, %v6446_v26  ;;  %v6611_v27 = vld [vmem:[#allocation3 + $0xf0] sm:$0xff] }
 0x38c   : > { %v6459_v31 = vpop.permute.xlu0 %6458  ;;  %v6454_v32 = vpop.permute.xlu1 %6453 }
 0x38d   : > { %v6461_v47 = vunpack.i.h.bf16 %v6459_v31  ;;  %v6460_v46 = vunpack.i.l.bf16 %v6459_v31  ;;  %v6456_v20 = vunpack.i.h.bf16 %v6454_v32  ;;  %v6455_v52 = vunpack.i.l.bf16 %v6454_v32 }
 0x38f   : > { %v4243_v9 = vsel %vm1034_vm10, %v4235_v22, %v6460_v46  ;;  %v4244_v61 = vsel %vm1034_vm10, %v4236_v0, %v6461_v47  ;;  %v4237_v59 = vsel %vm1025_vm9, %v4229_v12, %v6455_v52  ;;  %v4238_v60 = vsel %vm1025_vm9, %v4230_v29, %v6456_v20 }
 0x390   : > { %v6469_v63 = vpop.permute.xlu0 %6468 }
 0x391   : > { %v6471_v54 = vunpack.i.h.bf16 %v6469_v63  ;;  %v6470_v24 = vunpack.i.l.bf16 %v6469_v63 }
 0x392   : > { %v6464_v23 = vpop.permute.xlu1 %6463 }
 0x393   : > { %v6466_v13 = vunpack.i.h.bf16 %v6464_v23  ;;  %v6465_v41 = vunpack.i.l.bf16 %v6464_v23  ;;  %v4251_v37 = vsel %vm1043_vm11, %v4243_v9, %v6470_v24  ;;  %v4252_v1 = vsel %vm1043_vm11, %v4244_v61, %v6471_v54 }
 0x394   : > { %v6479_v19 = vpop.permute.xlu0 %6478 }
 0x395   : > { %v6481_v8 = vunpack.i.h.bf16 %v6479_v19  ;;  %v6480_v17 = vunpack.i.l.bf16 %v6479_v19  ;;  %v4245_v11 = vsel %vm1034_vm10, %v4237_v59, %v6465_v41  ;;  %v4246_v55 = vsel %vm1034_vm10, %v4238_v60, %v6466_v13 }
 0x396   : > { %v6474_v44 = vpop.permute.xlu1 %6473 }
 0x397   : > { %v6476_v58 = vunpack.i.h.bf16 %v6474_v44  ;;  %v6475_v36 = vunpack.i.l.bf16 %v6474_v44  ;;  %v4259_v5 = vsel %vm1052_vm12, %v4251_v37, %v6480_v17  ;;  %v4260_v10 = vsel %vm1052_vm12, %v4252_v1, %v6481_v8 }
 0x398   : > { %v4267_v28 = vpack.c.bf16 %v4260_v10, %v4259_v5  ;;  %v6489_v39 = vpop.permute.xlu0 %6488 }
 0x399   : > { %v6491_v48 = vunpack.i.h.bf16 %v6489_v39  ;;  %v6490_v34 = vunpack.i.l.bf16 %v6489_v39  ;;  %v4253_v31 = vsel %vm1043_vm11, %v4245_v11, %v6475_v36  ;;  %v4254_v43 = vsel %vm1043_vm11, %v4246_v55, %v6476_v58 }
 0x39a   : > { %v6484_v3 = vpop.permute.xlu1 %6483  ;;  %5235 = vmatprep.mubr.msk.bf16.mxu0 %vm1101_vm13, %v4267_v28 }
 0x39b   : > { %v4262_v57 = vsel %vm1052_vm12, %v4254_v43, %v6491_v48  ;;  %v4261_v4 = vsel %vm1052_vm12, %v4253_v31, %v6490_v34  ;;  %v6486_v56 = vunpack.i.h.bf16 %v6484_v3  ;;  %v6485_v25 = vunpack.i.l.bf16 %v6484_v3 }
 0x39c   : > { %v4268_v2 = vpack.c.bf16 %v4262_v57, %v4261_v4  ;;  %v6499_v32 = vpop.permute.xlu0 %6498 }
 0x39d   : > { %v6501_v14 = vunpack.i.h.bf16 %v6499_v32  ;;  %v6500_v42 = vunpack.i.l.bf16 %v6499_v32  ;;  %v4208_v21 = vsel %vm327_vm0, %v9037_v30, %v6486_v56  ;;  %v4207_v15 = vsel %vm327_vm0, %v6611_v27, %v6485_v25 }
 0x39e   : > { %v6494_v40 = vpop.permute.xlu1 %6493  ;;  %5236 = vmatmul.mubr.msk.bf16.vlgmr.msra.gmra.mrb[24].mxu0 %vm1101_vm13, %v4268_v2 }
 0x39f   : > { %v6496_v38 = vunpack.i.h.bf16 %v6494_v40  ;;  %v6495_v47 = vunpack.i.l.bf16 %v6494_v40  ;;  %v4216_v54 = vsel %vm998_vm6, %v4208_v21, %v6501_v14  ;;  %v4215_v24 = vsel %vm998_vm6, %v4207_v15, %v6500_v42 }
 0x3a0   : > { %v6509_v7 = vpop.permute.xlu0 %6508 }
 0x3a1   : > { %v6511_v46 = vunpack.i.h.bf16 %v6509_v7  ;;  %v6510_v63 = vunpack.i.l.bf16 %v6509_v7  ;;  %v4210_v26 = vsel %vm327_vm0, %v9050_v45, %v6496_v38  ;;  %v4209_v53 = vsel %vm327_vm0, %v9060_v6, %v6495_v47 }
 0x3a2   : > { %v6504_v18 = vpop.permute.xlu1 %6503 }
 0x3a3   : > { %v6506_v23 = vunpack.i.h.bf16 %v6504_v18  ;;  %v6505_v16 = vunpack.i.l.bf16 %v6504_v18  ;;  %v4223_v61 = vsel %vm1007_vm7, %v4215_v24, %v6510_v63  ;;  %v4224_v20 = vsel %vm1007_vm7, %v4216_v54, %v6511_v46 }
 0x3a4   : > { %v6519_v33 = vpop.permute.xlu0 %6518 }
 0x3a5   : > { %v6521_v22 = vunpack.i.h.bf16 %v6519_v33  ;;  %v6520_v0 = vunpack.i.l.bf16 %v6519_v33  ;;  %v4217_v41 = vsel %vm998_vm6, %v4209_v53, %v6505_v16  ;;  %v4218_v8 = vsel %vm998_vm6, %v4210_v26, %v6506_v23 }
 0x3a6   : > { %v6514_v51 = vpop.permute.xlu1 %6513 }
 0x3a7   : > { %v6516_v9 = vunpack.i.h.bf16 %v6514_v51  ;;  %v6515_v30 = vunpack.i.l.bf16 %v6514_v51  ;;  %v4231_v45 = vsel %vm1016_vm8, %v4223_v61, %v6520_v0  ;;  %v4232_v6 = vsel %vm1016_vm8, %v4224_v20, %v6521_v22  ;;  %v9502_v0 = vld [vmem:[%s9663_s7] ss:$0 sm:$0xff] }
 0x3a8   : > { %v6529_v35 = vpop.permute.xlu0 %6528 }
 0x3a9   : > { %v6531_v52 = vunpack.i.h.bf16 %v6529_v35  ;;  %v6530_v19 = vunpack.i.l.bf16 %v6529_v35  ;;  %v4225_v36 = vsel %vm1007_vm7, %v4217_v41, %v6515_v30  ;;  %v4226_v12 = vsel %vm1007_vm7, %v4218_v8, %v6516_v9 }
 0x3aa   : > { %v6524_v62 = vpop.permute.xlu1 %6523 }
 0x3ab   : > { %v6526_v29 = vunpack.i.h.bf16 %v6524_v62  ;;  %v6525_v5 = vunpack.i.l.bf16 %v6524_v62  ;;  %v4239_v10 = vsel %vm1025_vm9, %v4231_v45, %v6530_v19  ;;  %v4240_v59 = vsel %vm1025_vm9, %v4232_v6, %v6531_v52 }
 0x3ac   : > { %v6539_v49 = vpop.permute.xlu0 %6538 }
 0x3ad   : > { %v6541_v17 = vunpack.i.h.bf16 %v6539_v49  ;;  %v6540_v44 = vunpack.i.l.bf16 %v6539_v49  ;;  %v4233_v18 = vsel %vm1016_vm8, %v4225_v36, %v6525_v5  ;;  %v4234_v33 = vsel %vm1016_vm8, %v4226_v12, %v6526_v29 }
 0x3ae   : > { %v6534_v50 = vpop.permute.xlu1 %6533 }
 0x3af   : > { %v6536_v60 = vunpack.i.h.bf16 %v6534_v50  ;;  %v6535_v28 = vunpack.i.l.bf16 %v6534_v50  ;;  %v4247_v11 = vsel %vm1034_vm10, %v4239_v10, %v6540_v44  ;;  %v4248_v55 = vsel %vm1034_vm10, %v4240_v59, %v6541_v17  ;;  %v9496_v50 = vld [vmem:[%s9662_s6] ss:$0 sm:$0xff] }
 0x3b0   : > { %v6549_v13 = vpop.permute.xlu0 %6548 }
 0x3b1   : > { %v6551_v1 = vunpack.i.h.bf16 %v6549_v13  ;;  %v6550_v58 = vunpack.i.l.bf16 %v6549_v13  ;;  %v4241_v35 = vsel %vm1025_vm9, %v4233_v18, %v6535_v28  ;;  %v4242_v56 = vsel %vm1025_vm9, %v4234_v33, %v6536_v60 }
 0x3b2   : > { %v6544_v37 = vpop.permute.xlu1 %6543 }
 0x3b3   : > { %v4255_v31 = vsel %vm1043_vm11, %v4247_v11, %v6550_v58  ;;  %v4256_v43 = vsel %vm1043_vm11, %v4248_v55, %v6551_v1  ;;  %v6546_v57 = vunpack.i.h.bf16 %v6544_v37  ;;  %v6545_v4 = vunpack.i.l.bf16 %v6544_v37 }
 0x3b4   : > { %v6559_v39 = vpop.permute.xlu0 %6558 }
 0x3b5   : > { %v6561_v48 = vunpack.i.h.bf16 %v6559_v39  ;;  %v6560_v34 = vunpack.i.l.bf16 %v6559_v39  ;;  %v4249_v62 = vsel %vm1034_vm10, %v4241_v35, %v6545_v4  ;;  %v4250_v14 = vsel %vm1034_vm10, %v4242_v56, %v6546_v57 }
 0x3b6   : > { %v6554_v3 = vpop.permute.xlu1 %6553 }
 0x3b7   : > { %v4263_v2 = vsel %vm1052_vm12, %v4255_v31, %v6560_v34  ;;  %v4264_v32 = vsel %vm1052_vm12, %v4256_v43, %v6561_v48  ;;  %v6556_v40 = vunpack.i.h.bf16 %v6554_v3  ;;  %v6555_v7 = vunpack.i.l.bf16 %v6554_v3 }
 0x3b8   : > { %v4269_v51 = vpack.c.bf16 %v4264_v32, %v4263_v2 }
 0x3b9   : > { %v4257_v47 = vsel %vm1043_vm11, %v4249_v62, %v6555_v7  ;;  %v4258_v46 = vsel %vm1043_vm11, %v4250_v14, %v6556_v40 }
 0x3ba   : > { %v6564_v25 = vpop.permute.xlu1 %6563  ;;  %5239 = vmatprep.mubr.msk.bf16.mxu0 %vm1101_vm13, %v4269_v51 }
 0x3bb   : > { %v6566_v42 = vunpack.i.h.bf16 %v6564_v25  ;;  %v6565_v38 = vunpack.i.l.bf16 %v6564_v25 }
 0x3bd   : > { %v4265_v63 = vsel %vm1052_vm12, %v4257_v47, %v6565_v38  ;;  %v4266_v49 = vsel %vm1052_vm12, %v4258_v46, %v6566_v42 }
 0x3be   : > { %v4270_v21 = vpack.c.bf16 %v4266_v49, %v4265_v63 }
 0x3c0   : > { %5240 = vmatmul.mubr.msk.bf16.gmra.mrb[28].mxu0 %vm1101_vm13, %v4270_v21 }
 0x3ef   : > { %v9485_v27 = vpop.f32.mrb[16].mxu0 }
 0x3f0   : > { %v9487_v15 = vpop.f32.mrb[17].mxu0 }
 0x3f1   : > { %v9489_v23 = vpop.f32.mrb[18].mxu0 }
 0x3f2   : > { %v9491_v16 = vpop.f32.mrb[19].mxu0 }
 0x3fe   : > { %v5219_v54 = vpop.f32.mrb[16].mxu1 }
 0x3ff   : > { %v3802_v24 = vmul.f32 %v5219_v54, %v9496_v50  ;;  %v3769_v22 = vpop.f32.mrb[17].mxu1 }
 0x400   : > { %v3800_v26 = vmul.f32 %v9496_v50, %v3769_v22  ;;  %v5220_v53 = vpop.f32.mrb[18].mxu1 }
 0x401   : > { %v3810_v9 = vadd.f32 %v9502_v0, %v3802_v24  ;;  %v3803_v30 = vmul.f32 %v5220_v53, %v9496_v50  ;;  %v3772_v61 = vpop.f32.mrb[19].mxu1 }
 0x402   : > { %v3801_v20 = vmul.f32 %v9496_v50, %v3772_v61  ;;  %v3808_v19 = vadd.f32 %v9502_v0, %v3800_v26 }
 0x403   : > { %v3818_v52 = vmax.f32 %v3810_v9, 0.0  ;;  %v3811_v13 = vadd.f32 %v9502_v0, %v3803_v30 }
 0x404   : > { %v3809_v8 = vadd.f32 %v9502_v0, %v3801_v20  ;;  %v3816_v17 = vmax.f32 %v3808_v19, 0.0  ;;  %v3387_v19 = vmul.f32 %v9485_v27, %v9496_v50 }
 0x405   : > { %v3819_v41 = vmax.f32 %v3811_v13, 0.0  ;;  %3836 = vrot.lane.b32.xlu0 %v3818_v52, %s6629_s22  ;;  %v3388_v13 = vmul.f32 %v9489_v23, %v9496_v50 }
 0x406   : > { %v3817_v44 = vmax.f32 %v3809_v8, 0.0 }
 0x407   : > { %3838 = vrot.lane.b32.xlu1 %v3819_v41, %s6629_s22 }
 0x409   : > { %3832 = vrot.lane.b32.xlu0 %v3816_v17, %s6629_s22  ;;  %v3401_v17 = vadd.f32 %v9502_v0, %v3387_v19 }
 0x40b   : > { %3834 = vrot.lane.b32.xlu1 %v3817_v44, %s6629_s22  ;;  %v3385_v44 = vmul.f32 %v9496_v50, %v9487_v15  ;;  %v3409_v27 = vmax.f32 %v3401_v17, 0.0 }
 0x40d   : > { %v3399_v15 = vadd.f32 %v9502_v0, %v3385_v44 }
 0x424   : > { %v9515_v37 = vpop.f32.mrb[20].mxu0 }
 0x425   : > { %v9517_v45 = vpop.f32.mrb[21].mxu0 }
 0x426   : > { %v9519_v6 = vpop.f32.mrb[22].mxu0 }
 0x427   : > { %v9521_v1 = vpop.f32.mrb[23].mxu0 }
 0x42d   : > { %v5223_v58 = vpop.f32.mrb[20].mxu1 }
 0x42e   : > { %v3806_v36 = vmul.f32 %v5223_v58, %v9496_v50  ;;  %v3785_v12 = vpop.f32.mrb[21].mxu1 }
 0x42f   : > { %v3804_v29 = vmul.f32 %v9496_v50, %v3785_v12  ;;  %v5224_v5 = vpop.f32.mrb[22].mxu1  ;;  %v3402_v12 = vadd.f32 %v9502_v0, %v3388_v13 }
 0x430   : > { %v3814_v10 = vadd.f32 %v9502_v0, %v3806_v36  ;;  %v3807_v59 = vmul.f32 %v5224_v5, %v9496_v50  ;;  %v3788_v60 = vpop.f32.mrb[23].mxu1 }
 0x431   : > { %v3805_v28 = vmul.f32 %v9496_v50, %v3788_v60  ;;  %v3812_v11 = vadd.f32 %v9502_v0, %v3804_v29  ;;  %v3386_v29 = vmul.f32 %v9496_v50, %v9491_v16  ;;  %v3410_v5 = vmax.f32 %v3402_v12, 0.0 }
 0x432   : > { %v3822_v39 = vmax.f32 %v3814_v10, 0.0  ;;  %v3815_v55 = vadd.f32 %v9502_v0, %v3807_v59  ;;  %v3407_v60 = vmax.f32 %v3399_v15, 0.0 }
 0x433   : > { %v3813_v34 = vadd.f32 %v9502_v0, %v3805_v28  ;;  %v3820_v31 = vmax.f32 %v3812_v11, 0.0  ;;  %v3400_v10 = vadd.f32 %v9502_v0, %v3386_v29 }
 0x434   : > { %v3823_v48 = vmax.f32 %v3815_v55, 0.0  ;;  %3844 = vrot.lane.b32.xlu0 %v3822_v39, %s6629_s22 }
 0x435   : > { %v5255_v3 = vpop.f32.mrb[24].mxu1  ;;  %v3821_v32 = vmax.f32 %v3813_v34, 0.0  ;;  %v3408_v11 = vmax.f32 %v3400_v10, 0.0 }
 0x436   : > { %v4798_v43 = vmul.f32 %v5255_v3, %v9496_v50  ;;  %3846 = vrot.lane.b32.xlu1 %v3823_v48, %s6629_s22  ;;  %v4765_v57 = vpop.f32.mrb[25].mxu1 }
 0x437   : > { %v4796_v4 = vmul.f32 %v9496_v50, %v4765_v57  ;;  %v5256_v2 = vpop.f32.mrb[26].mxu1 }
 0x438   : > { %v4806_v40 = vadd.f32 %v9502_v0, %v4798_v43  ;;  %v4799_v7 = vmul.f32 %v5256_v2, %v9496_v50  ;;  %3840 = vrot.lane.b32.xlu0 %v3820_v31, %s6629_s22  ;;  %v4768_v18 = vpop.f32.mrb[27].mxu1  ;;  %v3392_v2 = vmul.f32 %v9519_v6, %v9496_v50 }
 0x439   : > { %v4797_v33 = vmul.f32 %v9496_v50, %v4768_v18  ;;  %v4804_v35 = vadd.f32 %v9502_v0, %v4796_v4  ;;  %v3391_v4 = vmul.f32 %v9515_v37, %v9496_v50  ;;  %v3390_v18 = vmul.f32 %v9496_v50, %v9521_v1 }
 0x43a   : > { %v4814_v51 = vmax.f32 %v4806_v40, 0.0  ;;  %v4807_v56 = vadd.f32 %v9502_v0, %v4799_v7  ;;  %3842 = vrot.lane.b32.xlu1 %v3821_v32, %s6629_s22  ;;  %v3389_v40 = vmul.f32 %v9496_v50, %v9517_v45  ;;  %v3406_v7 = vadd.f32 %v9502_v0, %v3392_v2 }
 0x43b   : > { %v4805_v62 = vadd.f32 %v9502_v0, %v4797_v33  ;;  %v4812_v14 = vmax.f32 %v4804_v35, 0.0  ;;  %v3405_v32 = vadd.f32 %v9502_v0, %v3391_v4  ;;  %v3404_v6 = vadd.f32 %v9502_v0, %v3390_v18 }
 0x43c   : > { %v4815_v25 = vmax.f32 %v4807_v56, 0.0  ;;  %4832 = vrot.lane.b32.xlu0 %v4814_v51, %s6629_s22  ;;  %v3403_v51 = vadd.f32 %v9502_v0, %v3389_v40  ;;  %v3414_v56 = vmax.f32 %v3406_v7, 0.0 }
 0x43d   : > { %v4813_v42 = vmax.f32 %v4805_v62, 0.0  ;;  %v3413_v33 = vmax.f32 %v3405_v32, 0.0 }
 0x43e   : > { %4834 = vrot.lane.b32.xlu1 %v4815_v25, %s6629_s22 }
 0x440   : > { %4828 = vrot.lane.b32.xlu0 %v4812_v14, %s6629_s22  ;;  %v3411_v14 = vmax.f32 %v3403_v51, 0.0 }
 0x442   : > { %4830 = vrot.lane.b32.xlu1 %v4813_v42, %s6629_s22 }
 0x451   : > { %v5259_v38 = vpop.f32.mrb[28].mxu1 }
 0x452   : > { %v4781_v47 = vpop.f32.mrb[29].mxu1  ;;  %v4802_v46 = vmul.f32 %v5259_v38, %v9496_v50 }
 0x453   : > { %v4800_v63 = vmul.f32 %v9496_v50, %v4781_v47  ;;  %v5260_v49 = vpop.f32.mrb[30].mxu1 }
 0x454   : > { %v4784_v21 = vpop.f32.mrb[31].mxu1  ;;  %v4803_v24 = vmul.f32 %v5260_v49, %v9496_v50  ;;  %v4810_v26 = vadd.f32 %v9502_v0, %v4802_v46  ;;  %v3412_v46 = vmax.f32 %v3404_v6, 0.0 }
 0x455   : > { %v4808_v54 = vadd.f32 %v9502_v0, %v4800_v63  ;;  %v4801_v22 = vmul.f32 %v9496_v50, %v4784_v21 }
 0x456   : > { %v4811_v30 = vadd.f32 %v9502_v0, %v4803_v24  ;;  %v4818_v20 = vmax.f32 %v4810_v26, 0.0 }
 0x457   : > { %v4816_v53 = vmax.f32 %v4808_v54, 0.0  ;;  %v4809_v9 = vadd.f32 %v9502_v0, %v4801_v22 }
 0x458   : > { %v4819_v52 = vmax.f32 %v4811_v30, 0.0 }
 0x459   : > { %v4817_v61 = vmax.f32 %v4809_v9, 0.0  ;;  %4836 = vrot.lane.b32.xlu0 %v4816_v53, %s6629_s22 }
 0x45b   : > { %4838 = vrot.lane.b32.xlu1 %v4817_v61, %s6629_s22 }
 0x45d   : > { %4840 = vrot.lane.b32.xlu0 %v4818_v20, %s6629_s22 }
 0x45f   : > { %4842 = vrot.lane.b32.xlu1 %v4819_v52, %s6629_s22 }
 0x471   : > { %v5237_v41 = vpop.f32.mrb[24].mxu0 }
 0x472   : > { %v4356_v8 = vpop.f32.mrb[25].mxu0  ;;  %v4389_v35 = vmul.f32 %v5237_v41, %v9496_v50 }
 0x473   : > { %v5238_v58 = vpop.f32.mrb[26].mxu0  ;;  %v4387_v42 = vmul.f32 %v9496_v50, %v4356_v8 }
 0x474   : > { %v4359_v36 = vpop.f32.mrb[27].mxu0  ;;  %v4390_v25 = vmul.f32 %v5238_v58, %v9496_v50  ;;  %v4397_v1 = vadd.f32 %v9502_v0, %v4389_v35 }
 0x475   : > { %v4388_v49 = vmul.f32 %v9496_v50, %v4359_v36  ;;  %v4395_v22 = vadd.f32 %v9502_v0, %v4387_v42 }
 0x476   : > { %v4398_v63 = vadd.f32 %v9502_v0, %v4390_v25  ;;  %v4405_v24 = vmax.f32 %v4397_v1, 0.0 }
 0x477   : > { %v3837_v23 = vpop.permute.xlu0 %3836  ;;  %v4396_v30 = vadd.f32 %v9502_v0, %v4388_v49  ;;  %v4403_v52 = vmax.f32 %v4395_v22, 0.0 }
 0x478   : > { %v3859_v59 = vsel %vm3856_vm14, %v3409_v27, %v3837_v23  ;;  %v4406_v9 = vmax.f32 %v4398_v63, 0.0 }
 0x479   : > { %3867 = vst.msk [vmem:[%s9573_s25 + $0x10] sm:$0xff] %vm327_vm0, %v3859_v59  ;;  %v3839_v16 = vpop.permute.xlu1 %3838  ;;  %v4404_v41 = vmax.f32 %v4396_v30, 0.0 }
 0x47a   : > { %v3860_v28 = vsel %vm3856_vm14, %v3410_v5, %v3839_v16 }
 0x47b   : > { %3868 = vst.msk [vmem:[%s9573_s25 + $0x18] sm:$0xff] %vm327_vm0, %v3860_v28  ;;  %v3833_v39 = vpop.permute.xlu0 %3832 }
 0x47c   : > { %v3857_v55 = vsel %vm3856_vm14, %v3407_v60, %v3833_v39 }
 0x47d   : > { %3865 = vst.msk [vmem:[%s9573_s25] sm:$0xff] %vm327_vm0, %v3857_v55  ;;  %v3835_v48 = vpop.permute.xlu1 %3834 }
 0x47e   : > { %v3858_v34 = vsel %vm3856_vm14, %v3408_v11, %v3835_v48 }
 0x47f   : > { %3866 = vst.msk [vmem:[%s9573_s25 + $0x8] sm:$0xff] %vm327_vm0, %v3858_v34 }
 0x493   : > { %v5241_v3 = vpop.f32.mrb[28].mxu0 }
 0x494   : > { %v4372_v31 = vpop.f32.mrb[29].mxu0  ;;  %v4393_v12 = vmul.f32 %v5241_v3, %v9496_v50 }
 0x495   : > { %v5242_v43 = vpop.f32.mrb[30].mxu0  ;;  %v4391_v58 = vmul.f32 %v9496_v50, %v4372_v31 }
 0x496   : > { %v4375_v57 = vpop.f32.mrb[31].mxu0  ;;  %v4394_v27 = vmul.f32 %v5242_v43, %v9496_v50  ;;  %v4401_v23 = vadd.f32 %v9502_v0, %v4393_v12 }
 0x497   : > { %v4392_v36 = vmul.f32 %v9496_v50, %v4375_v57  ;;  %v4399_v29 = vadd.f32 %v9502_v0, %v4391_v58 }
 0x498   : > { %v4402_v59 = vadd.f32 %v9502_v0, %v4394_v27  ;;  %v4409_v39 = vmax.f32 %v4401_v23, 0.0 }
 0x499   : > { %v4400_v15 = vadd.f32 %v9502_v0, %v4392_v36  ;;  %v4407_v5 = vmax.f32 %v4399_v29, 0.0 }
 0x49a   : > { %v4410_v55 = vmax.f32 %v4402_v59, 0.0 }
 0x49b   : > { %v4408_v16 = vmax.f32 %v4400_v15, 0.0 }
 0x4a6   : > { %v3845_v37 = vpop.permute.xlu0 %3844 }
 0x4a7   : > { %v3863_v45 = vsel %vm3856_vm14, %v3413_v33, %v3845_v37 }
 0x4a8   : > { %3871 = vst.msk [vmem:[%s9573_s25 + $0x30] sm:$0xff] %vm327_vm0, %v3863_v45  ;;  %v3847_v62 = vpop.permute.xlu1 %3846 }
 0x4a9   : > { %v3864_v38 = vsel %vm3856_vm14, %v3414_v56, %v3847_v62 }
 0x4aa   : > { %3872 = vst.msk [vmem:[%s9573_s25 + $0x38] sm:$0xff] %vm327_vm0, %v3864_v38  ;;  %v3841_v47 = vpop.permute.xlu0 %3840 }
 0x4ab   : > { %v3861_v21 = vsel %vm3856_vm14, %v3411_v14, %v3841_v47 }
 0x4ac   : > { %3869 = vst.msk [vmem:[%s9573_s25 + $0x20] sm:$0xff] %vm327_vm0, %v3861_v21  ;;  %v3843_v54 = vpop.permute.xlu1 %3842 }
 0x4ad   : > { %v3862_v26 = vsel %vm3856_vm14, %v3412_v46, %v3843_v54 }
 0x4ae   : > { %3870 = vst.msk [vmem:[%s9573_s25 + $0x28] sm:$0xff] %vm327_vm0, %v3862_v26  ;;  %v4833_v53 = vpop.permute.xlu0 %4832 }
 0x4af   : > { %v4854_v61 = vsel %vm3856_vm14, %v4405_v24, %v4833_v53 }
 0x4b0   : > { %5015 = vst.msk [vmem:[%s9573_s25 + $0x50] sm:$0xff] %vm327_vm0, %v4854_v61  ;;  %v4835_v20 = vpop.permute.xlu1 %4834 }
 0x4b1   : > { %v4855_v19 = vsel %vm3856_vm14, %v4406_v9, %v4835_v20 }
 0x4b2   : > { %5016 = vst.msk [vmem:[%s9573_s25 + $0x58] sm:$0xff] %vm327_vm0, %v4855_v19  ;;  %v4829_v13 = vpop.permute.xlu0 %4828 }
 0x4b3   : > { %v4852_v8 = vsel %vm3856_vm14, %v4403_v52, %v4829_v13 }
 0x4b4   : > { %5013 = vst.msk [vmem:[%s9573_s25 + $0x40] sm:$0xff] %vm327_vm0, %v4852_v8  ;;  %v4831_v17 = vpop.permute.xlu1 %4830 }
 0x4b5   : > { %v4853_v44 = vsel %vm3856_vm14, %v4404_v41, %v4831_v17 }
 0x4b6   : > { %5014 = vst.msk [vmem:[%s9573_s25 + $0x48] sm:$0xff] %vm327_vm0, %v4853_v44 }
 0x4cb   : > { %v4837_v10 = vpop.permute.xlu0 %4836 }
 0x4cc   : > { %v4856_v60 = vsel %vm3856_vm14, %v4407_v5, %v4837_v10 }
 0x4cd   : > { %5017 = vst.msk [vmem:[%s9573_s25 + $0x60] sm:$0xff] %vm327_vm0, %v4856_v60  ;;  %v4839_v28 = vpop.permute.xlu1 %4838 }
 0x4ce   : > { %v4857_v11 = vsel %vm3856_vm14, %v4408_v16, %v4839_v28 }
 0x4cf   : > { %5018 = vst.msk [vmem:[%s9573_s25 + $0x68] sm:$0xff] %vm327_vm0, %v4857_v11  ;;  %v4841_v50 = vpop.permute.xlu0 %4840 }
 0x4d0   : > { %v4858_v48 = vsel %vm3856_vm14, %v4409_v39, %v4841_v50 }
 0x4d1   : > { %5019 = vst.msk [vmem:[%s9573_s25 + $0x70] sm:$0xff] %vm327_vm0, %v4858_v48  ;;  %v4843_v34 = vpop.permute.xlu1 %4842 }
 0x4d2   : > { %v4859_v0 = vsel %vm3856_vm14, %v4410_v55, %v4843_v34 }
 0x4d3   : > { %5020 = vst.msk [vmem:[%s9573_s25 + $0x78] sm:$0xff] %vm327_vm0, %v4859_v0 }
 0x4d4 PF: > { %s18_s27 = sadd.s32 1, %s6618_s27  }
 0x4d5   : > { %p15_p4 = scmp.ge.s32.totalorder %s18_s27, 4  }
 0x4d7   :  { %17 = sbr.rel (!%p15_p4) target bundleno = 1 (0x1), region = 112 }

</bundles_post_ra>
